<compile_context>
chip_gen: v6e
topology: v6e:2x2x1
jax: 0.10.0
libtpu: 0.0.40
codegen_flags: <defaults>
</compile_context>

<pallas_src>
import functools

import numpy as np
import jax
import jax.numpy as jnp
from jax.experimental import pallas as pl
from jax.experimental.pallas import tpu as pltpu


# ----------------------------------------------------------------------------
# Trace-time constant builders (pure geometry -> small numpy matrices).
# ----------------------------------------------------------------------------

def _bilinear_matrix_align_corners(n_in, n_out):
    """(n_out, n_in) 1-D interpolation matrix, align_corners=True."""
    m = np.zeros((n_out, n_in), np.float32)
    if n_in == 1 or n_out == 1:
        m[:, 0] = 1.0
        return m
    scale = (n_in - 1) / (n_out - 1)
    for i in range(n_out):
        s = i * scale
        i0 = min(int(np.floor(s)), n_in - 1)
        i1 = min(i0 + 1, n_in - 1)
        f = s - i0
        m[i, i0] += 1.0 - f
        m[i, i1] += f
    return m


def _pad_crop_rows(m, n_target):
    """Embed/crop rows of m following F.pad([d//2, d - d//2]) semantics."""
    n_src, k = m.shape
    before = (n_target - n_src) // 2          # Python floor matches diff // 2
    out = np.zeros((n_target, k), np.float32)
    for i in range(n_target):
        src = i - before
        if 0 <= src < n_src:
            out[i] = m[src]
    return out


def _shift_matrices(n):
    """mats[d] @ x  ==  x with row i reading x[i + d - 1] (zero padded)."""
    mats = np.zeros((3, n, n), np.float32)
    for d in range(3):
        off = d - 1
        for i in range(n):
            j = i + off
            if 0 <= j < n:
                mats[d, i, j] = 1.0
    return mats


# ----------------------------------------------------------------------------
# Pallas kernel: one batch sample per grid step, full spatial extent in VMEM.
# ----------------------------------------------------------------------------

def _mix_conv_kernel(x1_ref, x2_ref, ah_ref, awt_ref, sh_ref, swt_ref,
                     w1_ref, w2_ref, out_ref, *, cin, cmid, cout, eps):
    H, W = out_ref.shape[2], out_ref.shape[3]

    ah = ah_ref[...]                       # (H, H1)  fused upsample+pad, rows
    awt = awt_ref[...]                     # (W1, W)  fused upsample+pad, cols (transposed)
    sh = [sh_ref[d] for d in range(3)]     # (H, H)   row-shift operators (left-applied)
    swt = [swt_ref[d] for d in range(3)]   # (W, W)   col-shift operators (right-applied)

    def conv3x3(planes, w_ref, n_in, n_out):
        # Direct 3x3 conv, padding=1, no bias.  Shifted taps come from exact
        # 0/1 shift-matrix matmuls (MXU); channel mixing is scalar FMAs with
        # the weights read from SMEM.
        accs = [jnp.zeros((H, W), jnp.float32) for _ in range(n_out)]
        for c in range(n_in):
            xc = planes[c]
            for dy in range(3):
                r = xc if dy == 1 else jnp.dot(
                    sh[dy], xc, preferred_element_type=jnp.float32)
                for dx in range(3):
                    tap = r if dx == 1 else jnp.dot(
                        r, swt[dx], preferred_element_type=jnp.float32)
                    for m in range(n_out):
                        wv = w_ref[((m * n_in + c) * 3 + dy) * 3 + dx]
                        accs[m] = accs[m] + wv * tap
        return accs

    def inorm_relu(p):
        # InstanceNorm2d defaults: biased variance, eps=1e-5, no affine.
        mu = jnp.mean(p)
        var = jnp.mean((p - mu) * (p - mu))
        return jnp.maximum((p - mu) * jax.lax.rsqrt(var + eps), 0.0)

    # 1) bilinear 2x upsample (align_corners=True) + center pad/crop + add x2.
    xs = []
    for c in range(cin):
        up = jnp.dot(jnp.dot(ah, x1_ref[0, c], preferred_element_type=jnp.float32),
                     awt, preferred_element_type=jnp.float32)
        xs.append(x2_ref[0, c] + up)

    # 2) DoubleConv: (conv3x3 -> InstanceNorm -> ReLU) twice.
    ys = [inorm_relu(p) for p in conv3x3(xs, w1_ref, cin, cmid)]
    zs = [inorm_relu(p) for p in conv3x3(ys, w2_ref, cmid, cout)]

    for m in range(cout):
        out_ref[0, m] = zs[m].astype(out_ref.dtype)


# ----------------------------------------------------------------------------
# Wrapper.
# ----------------------------------------------------------------------------

def mix_conv_pallas(x1, x2, w1, w2, *, eps=1e-5):
    B, C1, H1, W1 = x1.shape
    B2, C2, H2, W2 = x2.shape
    assert B == B2 and C1 == C2, "Mix_conv adds x2 + up(x1): B and C must match"
    cmid, cin_w, kh, kw = w1.shape
    cout = w2.shape[0]
    assert cin_w == C1 and kh == 3 and kw == 3 and w2.shape[1] == cmid

    # Fused upsample + F.pad operator, applied per channel as  Ah @ x @ Aw^T.
    ah = _pad_crop_rows(_bilinear_matrix_align_corners(H1, 2 * H1), H2)   # (H2, H1)
    aw = _pad_crop_rows(_bilinear_matrix_align_corners(W1, 2 * W1), W2)   # (W2, W1)
    awt = np.ascontiguousarray(aw.T)                                      # (W1, W2)

    sh = _shift_matrices(H2)                                              # (3, H2, H2)
    swt = np.ascontiguousarray(np.transpose(_shift_matrices(W2), (0, 2, 1)))  # (3, W2, W2)

    w1_flat = w1.reshape(-1).astype(jnp.float32)   # (cmid*C*9,)  -> SMEM scalars
    w2_flat = w2.reshape(-1).astype(jnp.float32)   # (cout*cmid*9,)

    kernel = functools.partial(_mix_conv_kernel, cin=C1, cmid=cmid, cout=cout,
                               eps=float(eps))

    grid_spec = pltpu.PrefetchScalarGridSpec(
        num_scalar_prefetch=0,
        grid=(B,),
        in_specs=[
            pl.BlockSpec((1, C1, H1, W1), lambda b: (b, 0, 0, 0)),
            pl.BlockSpec((1, C2, H2, W2), lambda b: (b, 0, 0, 0)),
            pl.BlockSpec((H2, H1), lambda b: (0, 0)),
            pl.BlockSpec((W1, W2), lambda b: (0, 0)),
            pl.BlockSpec((3, H2, H2), lambda b: (0, 0, 0)),
            pl.BlockSpec((3, W2, W2), lambda b: (0, 0, 0)),
            pl.BlockSpec(memory_space=pltpu.MemorySpace.SMEM),
            pl.BlockSpec(memory_space=pltpu.MemorySpace.SMEM),
        ],
        out_specs=pl.BlockSpec((1, cout, H2, W2), lambda b: (b, 0, 0, 0)),
    )

    return pl.pallas_call(
        kernel,
        out_shape=jax.ShapeDtypeStruct((B, cout, H2, W2), jnp.float32),
        grid_spec=grid_spec,
        compiler_params=pltpu.CompilerParams(
            # B >= 2 grid steps + parallel axis -> shards across v7x's two TCs.
            dimension_semantics=("parallel",),
        ),
    )(x1.astype(jnp.float32), x2.astype(jnp.float32),
      jnp.asarray(ah), jnp.asarray(awt), jnp.asarray(sh), jnp.asarray(swt),
      w1_flat, w2_flat)


# ----------------------------------------------------------------------------
# Plain-JAX reference mirroring the PyTorch forward.
# ----------------------------------------------------------------------------

def _upsample_bilinear_align_corners(x, ho, wo):
    b, c, hi, wi = x.shape
    def src(n_out, n_in):
        if n_out == 1 or n_in == 1:
            return jnp.zeros((n_out,), jnp.float32)
        return jnp.arange(n_out, dtype=jnp.float32) * ((n_in - 1) / (n_out - 1))
    sy, sx = src(ho, hi), src(wo, wi)
    y0 = jnp.clip(jnp.floor(sy).astype(jnp.int32), 0, hi - 1)
    y1 = jnp.clip(y0 + 1, 0, hi - 1)
    fy = (sy - y0.astype(jnp.float32))[None, None, :, None]
    x0 = jnp.clip(jnp.floor(sx).astype(jnp.int32), 0, wi - 1)
    x1i = jnp.clip(x0 + 1, 0, wi - 1)
    fx = (sx - x0.astype(jnp.float32))[None, None, None, :]
    rows = x[:, :, y0, :] * (1.0 - fy) + x[:, :, y1, :] * fy
    return rows[:, :, :, x0] * (1.0 - fx) + rows[:, :, :, x1i] * fx


def mix_conv_reference(x1, x2, w1, w2, eps=1e-5):
    b, c, h1, w1s = x1.shape
    h2, w2s = x2.shape[2], x2.shape[3]
    up = _upsample_bilinear_align_corners(x1, 2 * h1, 2 * w1s)
    dY, dX = h2 - 2 * h1, w2s - 2 * w1s
    up = jax.lax.pad(up, 0.0, ((0, 0, 0), (0, 0, 0),
                               (dY // 2, dY - dY // 2, 0),
                               (dX // 2, dX - dX // 2, 0)))
    x = x2 + up

    def conv(t, w):
        return jax.lax.conv_general_dilated(
            t, w, window_strides=(1, 1), padding=((1, 1), (1, 1)),
            dimension_numbers=('NCHW', 'OIHW', 'NCHW'),
            precision=jax.lax.Precision.HIGHEST)

    def inorm_relu(t):
        mu = jnp.mean(t, axis=(2, 3), keepdims=True)
        var = jnp.mean((t - mu) ** 2, axis=(2, 3), keepdims=True)
        return jnp.maximum((t - mu) * jax.lax.rsqrt(var + eps), 0.0)

    return inorm_relu(conv(inorm_relu(conv(x, w1)), w2))


if __name__ == "__main__":
    key = jax.random.PRNGKey(0)
    k1, k2, k3, k4 = jax.random.split(key, 4)

    # Mix_conv(in_channels=4, out_channels=4, bilinear=True):
    #   up = bilinear 2x (align_corners=True), conv = DoubleConv(4, 4, mid=2)
    B, Cin, Cout = 2, 4, 4
    Cmid = Cin // 2
    H1, W1 = 8, 8              # x1: low-res feature map -> upsampled to 16x16
    H2, W2 = 16, 16            # x2: high-res skip feature map

    x1 = jax.random.normal(k1, (B, Cin, H1, W1), dtype=jnp.float32)
    x2 = jax.random.normal(k2, (B, Cin, H2, W2), dtype=jnp.float32)
    w1 = jax.random.normal(k3, (Cmid, Cin, 3, 3), dtype=jnp.float32) * 0.25
    w2 = jax.random.normal(k4, (Cout, Cmid, 3, 3), dtype=jnp.float32) * 0.25

    out = jax.block_until_ready(mix_conv_pallas(x1, x2, w1, w2))
    ref = jax.block_until_ready(mix_conv_reference(x1, x2, w1, w2))

    assert out.shape == (B, Cout, H2, W2), (out.shape, (B, Cout, H2, W2))
    max_err = float(jnp.max(jnp.abs(out - ref)))
    # 1e-3 leaves headroom for MXU f32 pass differences; real bugs are O(0.1+).
    assert max_err < 1e-3, f"max abs err {max_err}"
    print("KERNEL_OK")
</pallas_src>

<mosaic_0001>
module attributes {stable_mosaic.version = 11 : i64} {
  func.func @_mix_conv_kernel(%arg0: i32, %arg1: memref<1x4x8x8xf32, #tpu.memory_space<vmem>>, %arg2: memref<1x4x16x16xf32, #tpu.memory_space<vmem>>, %arg3: memref<16x8xf32, #tpu.memory_space<vmem>>, %arg4: memref<8x16xf32, #tpu.memory_space<vmem>>, %arg5: memref<3x16x16xf32, #tpu.memory_space<vmem>>, %arg6: memref<3x16x16xf32, #tpu.memory_space<vmem>>, %arg7: memref<72xf32, #tpu.memory_space<smem>>, %arg8: memref<72xf32, #tpu.memory_space<smem>>, %arg9: memref<1x4x16x16xf32, #tpu.memory_space<vmem>>) attributes {dimension_semantics = [#tpu.dimension_semantics<parallel>], iteration_bounds = array<i64: 2>, scalar_prefetch = 0 : i64, scratch_operands = 0 : i64, tpu.core_type = #tpu.core_type<tc>, window_params = [{transform_indices = @transform_0, window_bounds = array<i64: 1, 4, 8, 8>}, {transform_indices = @transform_1, window_bounds = array<i64: 1, 4, 16, 16>}, {pipeline_mode = #tpu.pipeline_mode<synchronous>, transform_indices = @transform_2, window_bounds = array<i64: 16, 8>}, {pipeline_mode = #tpu.pipeline_mode<synchronous>, transform_indices = @transform_3, window_bounds = array<i64: 8, 16>}, {pipeline_mode = #tpu.pipeline_mode<synchronous>, transform_indices = @transform_4, window_bounds = array<i64: 3, 16, 16>}, {pipeline_mode = #tpu.pipeline_mode<synchronous>, transform_indices = @transform_5, window_bounds = array<i64: 3, 16, 16>}, {transform_indices = @transform_6, window_bounds = array<i64: 72>}, {transform_indices = @transform_7, window_bounds = array<i64: 72>}, {transform_indices = @transform_8, window_bounds = array<i64: 1, 4, 16, 16>}]} {
    %c0 = arith.constant 0 : index
    %c0_0 = arith.constant 0 : index
    %0 = vector.load %arg3[%c0, %c0_0] : memref<16x8xf32, #tpu.memory_space<vmem>>, vector<16x8xf32>
    %c0_1 = arith.constant 0 : index
    %c0_2 = arith.constant 0 : index
    %1 = vector.load %arg4[%c0_1, %c0_2] : memref<8x16xf32, #tpu.memory_space<vmem>>, vector<8x16xf32>
    %c0_3 = arith.constant 0 : index
    %c0_4 = arith.constant 0 : index
    %c0_5 = arith.constant 0 : index
    %2 = vector.load %arg5[%c0_3, %c0_4, %c0_5] : memref<3x16x16xf32, #tpu.memory_space<vmem>>, vector<1x16x16xf32>
    %3 = vector.shape_cast %2 : vector<1x16x16xf32> to vector<16x16xf32>
    %c2 = arith.constant 2 : index
    %c0_6 = arith.constant 0 : index
    %c0_7 = arith.constant 0 : index
    %4 = vector.load %arg5[%c2, %c0_6, %c0_7] : memref<3x16x16xf32, #tpu.memory_space<vmem>>, vector<1x16x16xf32>
    %5 = vector.shape_cast %4 : vector<1x16x16xf32> to vector<16x16xf32>
    %c0_8 = arith.constant 0 : index
    %c0_9 = arith.constant 0 : index
    %c0_10 = arith.constant 0 : index
    %6 = vector.load %arg6[%c0_8, %c0_9, %c0_10] : memref<3x16x16xf32, #tpu.memory_space<vmem>>, vector<1x16x16xf32>
    %7 = vector.shape_cast %6 : vector<1x16x16xf32> to vector<16x16xf32>
    %c2_11 = arith.constant 2 : index
    %c0_12 = arith.constant 0 : index
    %c0_13 = arith.constant 0 : index
    %8 = vector.load %arg6[%c2_11, %c0_12, %c0_13] : memref<3x16x16xf32, #tpu.memory_space<vmem>>, vector<1x16x16xf32>
    %9 = vector.shape_cast %8 : vector<1x16x16xf32> to vector<16x16xf32>
    %c0_14 = arith.constant 0 : index
    %c0_15 = arith.constant 0 : index
    %c0_16 = arith.constant 0 : index
    %c0_17 = arith.constant 0 : index
    %10 = vector.load %arg1[%c0_14, %c0_15, %c0_16, %c0_17] : memref<1x4x8x8xf32, #tpu.memory_space<vmem>>, vector<1x1x8x8xf32>
    %11 = vector.shape_cast %10 : vector<1x1x8x8xf32> to vector<8x8xf32>
    %cst = arith.constant dense<0.000000e+00> : vector<16x8xf32>
    %12 = tpu.matmul %0, %11, %cst {dimension_numbers = #tpu.dot_dimension_numbers<[1], [0], [0], [1], [0, 0, 1, 1], [], []>} : vector<16x8xf32>, vector<8x8xf32>, vector<16x8xf32> -> vector<16x8xf32>
    %cst_18 = arith.constant dense<0.000000e+00> : vector<16x16xf32>
    %13 = tpu.matmul %12, %1, %cst_18 {dimension_numbers = #tpu.dot_dimension_numbers<[1], [0], [0], [1], [0, 0, 1, 1], [], []>} : vector<16x8xf32>, vector<8x16xf32>, vector<16x16xf32> -> vector<16x16xf32>
    %c0_19 = arith.constant 0 : index
    %c0_20 = arith.constant 0 : index
    %c0_21 = arith.constant 0 : index
    %c0_22 = arith.constant 0 : index
    %14 = vector.load %arg2[%c0_19, %c0_20, %c0_21, %c0_22] : memref<1x4x16x16xf32, #tpu.memory_space<vmem>>, vector<1x1x16x16xf32>
    %15 = vector.shape_cast %14 : vector<1x1x16x16xf32> to vector<16x16xf32>
    %16 = arith.addf %15, %13 : vector<16x16xf32>
    %c0_23 = arith.constant 0 : index
    %c1 = arith.constant 1 : index
    %c0_24 = arith.constant 0 : index
    %c0_25 = arith.constant 0 : index
    %17 = vector.load %arg1[%c0_23, %c1, %c0_24, %c0_25] : memref<1x4x8x8xf32, #tpu.memory_space<vmem>>, vector<1x1x8x8xf32>
    %18 = vector.shape_cast %17 : vector<1x1x8x8xf32> to vector<8x8xf32>
    %cst_26 = arith.constant dense<0.000000e+00> : vector<16x8xf32>
    %19 = tpu.matmul %0, %18, %cst_26 {dimension_numbers = #tpu.dot_dimension_numbers<[1], [0], [0], [1], [0, 0, 1, 1], [], []>} : vector<16x8xf32>, vector<8x8xf32>, vector<16x8xf32> -> vector<16x8xf32>
    %cst_27 = arith.constant dense<0.000000e+00> : vector<16x16xf32>
    %20 = tpu.matmul %19, %1, %cst_27 {dimension_numbers = #tpu.dot_dimension_numbers<[1], [0], [0], [1], [0, 0, 1, 1], [], []>} : vector<16x8xf32>, vector<8x16xf32>, vector<16x16xf32> -> vector<16x16xf32>
    %c0_28 = arith.constant 0 : index
    %c1_29 = arith.constant 1 : index
    %c0_30 = arith.constant 0 : index
    %c0_31 = arith.constant 0 : index
    %21 = vector.load %arg2[%c0_28, %c1_29, %c0_30, %c0_31] : memref<1x4x16x16xf32, #tpu.memory_space<vmem>>, vector<1x1x16x16xf32>
    %22 = vector.shape_cast %21 : vector<1x1x16x16xf32> to vector<16x16xf32>
    %23 = arith.addf %22, %20 : vector<16x16xf32>
    %c0_32 = arith.constant 0 : index
    %c2_33 = arith.constant 2 : index
    %c0_34 = arith.constant 0 : index
    %c0_35 = arith.constant 0 : index
    %24 = vector.load %arg1[%c0_32, %c2_33, %c0_34, %c0_35] : memref<1x4x8x8xf32, #tpu.memory_space<vmem>>, vector<1x1x8x8xf32>
    %25 = vector.shape_cast %24 : vector<1x1x8x8xf32> to vector<8x8xf32>
    %cst_36 = arith.constant dense<0.000000e+00> : vector<16x8xf32>
    %26 = tpu.matmul %0, %25, %cst_36 {dimension_numbers = #tpu.dot_dimension_numbers<[1], [0], [0], [1], [0, 0, 1, 1], [], []>} : vector<16x8xf32>, vector<8x8xf32>, vector<16x8xf32> -> vector<16x8xf32>
    %cst_37 = arith.constant dense<0.000000e+00> : vector<16x16xf32>
    %27 = tpu.matmul %26, %1, %cst_37 {dimension_numbers = #tpu.dot_dimension_numbers<[1], [0], [0], [1], [0, 0, 1, 1], [], []>} : vector<16x8xf32>, vector<8x16xf32>, vector<16x16xf32> -> vector<16x16xf32>
    %c0_38 = arith.constant 0 : index
    %c2_39 = arith.constant 2 : index
    %c0_40 = arith.constant 0 : index
    %c0_41 = arith.constant 0 : index
    %28 = vector.load %arg2[%c0_38, %c2_39, %c0_40, %c0_41] : memref<1x4x16x16xf32, #tpu.memory_space<vmem>>, vector<1x1x16x16xf32>
    %29 = vector.shape_cast %28 : vector<1x1x16x16xf32> to vector<16x16xf32>
    %30 = arith.addf %29, %27 : vector<16x16xf32>
    %c0_42 = arith.constant 0 : index
    %c3 = arith.constant 3 : index
    %c0_43 = arith.constant 0 : index
    %c0_44 = arith.constant 0 : index
    %31 = vector.load %arg1[%c0_42, %c3, %c0_43, %c0_44] : memref<1x4x8x8xf32, #tpu.memory_space<vmem>>, vector<1x1x8x8xf32>
    %32 = vector.shape_cast %31 : vector<1x1x8x8xf32> to vector<8x8xf32>
    %cst_45 = arith.constant dense<0.000000e+00> : vector<16x8xf32>
    %33 = tpu.matmul %0, %32, %cst_45 {dimension_numbers = #tpu.dot_dimension_numbers<[1], [0], [0], [1], [0, 0, 1, 1], [], []>} : vector<16x8xf32>, vector<8x8xf32>, vector<16x8xf32> -> vector<16x8xf32>
    %cst_46 = arith.constant dense<0.000000e+00> : vector<16x16xf32>
    %34 = tpu.matmul %33, %1, %cst_46 {dimension_numbers = #tpu.dot_dimension_numbers<[1], [0], [0], [1], [0, 0, 1, 1], [], []>} : vector<16x8xf32>, vector<8x16xf32>, vector<16x16xf32> -> vector<16x16xf32>
    %c0_47 = arith.constant 0 : index
    %c3_48 = arith.constant 3 : index
    %c0_49 = arith.constant 0 : index
    %c0_50 = arith.constant 0 : index
    %35 = vector.load %arg2[%c0_47, %c3_48, %c0_49, %c0_50] : memref<1x4x16x16xf32, #tpu.memory_space<vmem>>, vector<1x1x16x16xf32>
    %36 = vector.shape_cast %35 : vector<1x1x16x16xf32> to vector<16x16xf32>
    %37 = arith.addf %36, %34 : vector<16x16xf32>
    %cst_51 = arith.constant 0.000000e+00 : f32
    %38 = vector.broadcast %cst_51 : f32 to vector<16x16xf32>
    %cst_52 = arith.constant 0.000000e+00 : f32
    %39 = vector.broadcast %cst_52 : f32 to vector<16x16xf32>
    %cst_53 = arith.constant dense<0.000000e+00> : vector<16x16xf32>
    %40 = tpu.matmul %3, %16, %cst_53 {dimension_numbers = #tpu.dot_dimension_numbers<[1], [0], [0], [1], [0, 0, 1, 1], [], []>} : vector<16x16xf32>, vector<16x16xf32>, vector<16x16xf32> -> vector<16x16xf32>
    %cst_54 = arith.constant dense<0.000000e+00> : vector<16x16xf32>
    %41 = tpu.matmul %40, %7, %cst_54 {dimension_numbers = #tpu.dot_dimension_numbers<[1], [0], [0], [1], [0, 0, 1, 1], [], []>} : vector<16x16xf32>, vector<16x16xf32>, vector<16x16xf32> -> vector<16x16xf32>
    %c0_55 = arith.constant 0 : index
    %42 = memref.load %arg7[%c0_55] : memref<72xf32, #tpu.memory_space<smem>>
    %43 = vector.broadcast %42 : f32 to vector<16x16xf32>
    %44 = arith.mulf %43, %41 : vector<16x16xf32>
    %45 = arith.addf %38, %44 : vector<16x16xf32>
    %c36 = arith.constant 36 : index
    %46 = memref.load %arg7[%c36] : memref<72xf32, #tpu.memory_space<smem>>
    %47 = vector.broadcast %46 : f32 to vector<16x16xf32>
    %48 = arith.mulf %47, %41 : vector<16x16xf32>
    %49 = arith.addf %39, %48 : vector<16x16xf32>
    %c1_56 = arith.constant 1 : index
    %50 = memref.load %arg7[%c1_56] : memref<72xf32, #tpu.memory_space<smem>>
    %51 = vector.broadcast %50 : f32 to vector<16x16xf32>
    %52 = arith.mulf %51, %40 : vector<16x16xf32>
    %53 = arith.addf %45, %52 : vector<16x16xf32>
    %c37 = arith.constant 37 : index
    %54 = memref.load %arg7[%c37] : memref<72xf32, #tpu.memory_space<smem>>
    %55 = vector.broadcast %54 : f32 to vector<16x16xf32>
    %56 = arith.mulf %55, %40 : vector<16x16xf32>
    %57 = arith.addf %49, %56 : vector<16x16xf32>
    %cst_57 = arith.constant dense<0.000000e+00> : vector<16x16xf32>
    %58 = tpu.matmul %40, %9, %cst_57 {dimension_numbers = #tpu.dot_dimension_numbers<[1], [0], [0], [1], [0, 0, 1, 1], [], []>} : vector<16x16xf32>, vector<16x16xf32>, vector<16x16xf32> -> vector<16x16xf32>
    %c2_58 = arith.constant 2 : index
    %59 = memref.load %arg7[%c2_58] : memref<72xf32, #tpu.memory_space<smem>>
    %60 = vector.broadcast %59 : f32 to vector<16x16xf32>
    %61 = arith.mulf %60, %58 : vector<16x16xf32>
    %62 = arith.addf %53, %61 : vector<16x16xf32>
    %c38 = arith.constant 38 : index
    %63 = memref.load %arg7[%c38] : memref<72xf32, #tpu.memory_space<smem>>
    %64 = vector.broadcast %63 : f32 to vector<16x16xf32>
    %65 = arith.mulf %64, %58 : vector<16x16xf32>
    %66 = arith.addf %57, %65 : vector<16x16xf32>
    %cst_59 = arith.constant dense<0.000000e+00> : vector<16x16xf32>
    %67 = tpu.matmul %16, %7, %cst_59 {dimension_numbers = #tpu.dot_dimension_numbers<[1], [0], [0], [1], [0, 0, 1, 1], [], []>} : vector<16x16xf32>, vector<16x16xf32>, vector<16x16xf32> -> vector<16x16xf32>
    %c3_60 = arith.constant 3 : index
    %68 = memref.load %arg7[%c3_60] : memref<72xf32, #tpu.memory_space<smem>>
    %69 = vector.broadcast %68 : f32 to vector<16x16xf32>
    %70 = arith.mulf %69, %67 : vector<16x16xf32>
    %71 = arith.addf %62, %70 : vector<16x16xf32>
    %c39 = arith.constant 39 : index
    %72 = memref.load %arg7[%c39] : memref<72xf32, #tpu.memory_space<smem>>
    %73 = vector.broadcast %72 : f32 to vector<16x16xf32>
    %74 = arith.mulf %73, %67 : vector<16x16xf32>
    %75 = arith.addf %66, %74 : vector<16x16xf32>
    %c4 = arith.constant 4 : index
    %76 = memref.load %arg7[%c4] : memref<72xf32, #tpu.memory_space<smem>>
    %77 = vector.broadcast %76 : f32 to vector<16x16xf32>
    %78 = arith.mulf %77, %16 : vector<16x16xf32>
    %79 = arith.addf %71, %78 : vector<16x16xf32>
    %c40 = arith.constant 40 : index
    %80 = memref.load %arg7[%c40] : memref<72xf32, #tpu.memory_space<smem>>
    %81 = vector.broadcast %80 : f32 to vector<16x16xf32>
    %82 = arith.mulf %81, %16 : vector<16x16xf32>
    %83 = arith.addf %75, %82 : vector<16x16xf32>
    %cst_61 = arith.constant dense<0.000000e+00> : vector<16x16xf32>
    %84 = tpu.matmul %16, %9, %cst_61 {dimension_numbers = #tpu.dot_dimension_numbers<[1], [0], [0], [1], [0, 0, 1, 1], [], []>} : vector<16x16xf32>, vector<16x16xf32>, vector<16x16xf32> -> vector<16x16xf32>
    %c5 = arith.constant 5 : index
    %85 = memref.load %arg7[%c5] : memref<72xf32, #tpu.memory_space<smem>>
    %86 = vector.broadcast %85 : f32 to vector<16x16xf32>
    %87 = arith.mulf %86, %84 : vector<16x16xf32>
    %88 = arith.addf %79, %87 : vector<16x16xf32>
    %c41 = arith.constant 41 : index
    %89 = memref.load %arg7[%c41] : memref<72xf32, #tpu.memory_space<smem>>
    %90 = vector.broadcast %89 : f32 to vector<16x16xf32>
    %91 = arith.mulf %90, %84 : vector<16x16xf32>
    %92 = arith.addf %83, %91 : vector<16x16xf32>
    %cst_62 = arith.constant dense<0.000000e+00> : vector<16x16xf32>
    %93 = tpu.matmul %5, %16, %cst_62 {dimension_numbers = #tpu.dot_dimension_numbers<[1], [0], [0], [1], [0, 0, 1, 1], [], []>} : vector<16x16xf32>, vector<16x16xf32>, vector<16x16xf32> -> vector<16x16xf32>
    %cst_63 = arith.constant dense<0.000000e+00> : vector<16x16xf32>
    %94 = tpu.matmul %93, %7, %cst_63 {dimension_numbers = #tpu.dot_dimension_numbers<[1], [0], [0], [1], [0, 0, 1, 1], [], []>} : vector<16x16xf32>, vector<16x16xf32>, vector<16x16xf32> -> vector<16x16xf32>
    %c6 = arith.constant 6 : index
    %95 = memref.load %arg7[%c6] : memref<72xf32, #tpu.memory_space<smem>>
    %96 = vector.broadcast %95 : f32 to vector<16x16xf32>
    %97 = arith.mulf %96, %94 : vector<16x16xf32>
    %98 = arith.addf %88, %97 : vector<16x16xf32>
    %c42 = arith.constant 42 : index
    %99 = memref.load %arg7[%c42] : memref<72xf32, #tpu.memory_space<smem>>
    %100 = vector.broadcast %99 : f32 to vector<16x16xf32>
    %101 = arith.mulf %100, %94 : vector<16x16xf32>
    %102 = arith.addf %92, %101 : vector<16x16xf32>
    %c7 = arith.constant 7 : index
    %103 = memref.load %arg7[%c7] : memref<72xf32, #tpu.memory_space<smem>>
    %104 = vector.broadcast %103 : f32 to vector<16x16xf32>
    %105 = arith.mulf %104, %93 : vector<16x16xf32>
    %106 = arith.addf %98, %105 : vector<16x16xf32>
    %c43 = arith.constant 43 : index
    %107 = memref.load %arg7[%c43] : memref<72xf32, #tpu.memory_space<smem>>
    %108 = vector.broadcast %107 : f32 to vector<16x16xf32>
    %109 = arith.mulf %108, %93 : vector<16x16xf32>
    %110 = arith.addf %102, %109 : vector<16x16xf32>
    %cst_64 = arith.constant dense<0.000000e+00> : vector<16x16xf32>
    %111 = tpu.matmul %93, %9, %cst_64 {dimension_numbers = #tpu.dot_dimension_numbers<[1], [0], [0], [1], [0, 0, 1, 1], [], []>} : vector<16x16xf32>, vector<16x16xf32>, vector<16x16xf32> -> vector<16x16xf32>
    %c8 = arith.constant 8 : index
    %112 = memref.load %arg7[%c8] : memref<72xf32, #tpu.memory_space<smem>>
    %113 = vector.broadcast %112 : f32 to vector<16x16xf32>
    %114 = arith.mulf %113, %111 : vector<16x16xf32>
    %115 = arith.addf %106, %114 : vector<16x16xf32>
    %c44 = arith.constant 44 : index
    %116 = memref.load %arg7[%c44] : memref<72xf32, #tpu.memory_space<smem>>
    %117 = vector.broadcast %116 : f32 to vector<16x16xf32>
    %118 = arith.mulf %117, %111 : vector<16x16xf32>
    %119 = arith.addf %110, %118 : vector<16x16xf32>
    %cst_65 = arith.constant dense<0.000000e+00> : vector<16x16xf32>
    %120 = tpu.matmul %3, %23, %cst_65 {dimension_numbers = #tpu.dot_dimension_numbers<[1], [0], [0], [1], [0, 0, 1, 1], [], []>} : vector<16x16xf32>, vector<16x16xf32>, vector<16x16xf32> -> vector<16x16xf32>
    %cst_66 = arith.constant dense<0.000000e+00> : vector<16x16xf32>
    %121 = tpu.matmul %120, %7, %cst_66 {dimension_numbers = #tpu.dot_dimension_numbers<[1], [0], [0], [1], [0, 0, 1, 1], [], []>} : vector<16x16xf32>, vector<16x16xf32>, vector<16x16xf32> -> vector<16x16xf32>
    %c9 = arith.constant 9 : index
    %122 = memref.load %arg7[%c9] : memref<72xf32, #tpu.memory_space<smem>>
    %123 = vector.broadcast %122 : f32 to vector<16x16xf32>
    %124 = arith.mulf %123, %121 : vector<16x16xf32>
    %125 = arith.addf %115, %124 : vector<16x16xf32>
    %c45 = arith.constant 45 : index
    %126 = memref.load %arg7[%c45] : memref<72xf32, #tpu.memory_space<smem>>
    %127 = vector.broadcast %126 : f32 to vector<16x16xf32>
    %128 = arith.mulf %127, %121 : vector<16x16xf32>
    %129 = arith.addf %119, %128 : vector<16x16xf32>
    %c10 = arith.constant 10 : index
    %130 = memref.load %arg7[%c10] : memref<72xf32, #tpu.memory_space<smem>>
    %131 = vector.broadcast %130 : f32 to vector<16x16xf32>
    %132 = arith.mulf %131, %120 : vector<16x16xf32>
    %133 = arith.addf %125, %132 : vector<16x16xf32>
    %c46 = arith.constant 46 : index
    %134 = memref.load %arg7[%c46] : memref<72xf32, #tpu.memory_space<smem>>
    %135 = vector.broadcast %134 : f32 to vector<16x16xf32>
    %136 = arith.mulf %135, %120 : vector<16x16xf32>
    %137 = arith.addf %129, %136 : vector<16x16xf32>
    %cst_67 = arith.constant dense<0.000000e+00> : vector<16x16xf32>
    %138 = tpu.matmul %120, %9, %cst_67 {dimension_numbers = #tpu.dot_dimension_numbers<[1], [0], [0], [1], [0, 0, 1, 1], [], []>} : vector<16x16xf32>, vector<16x16xf32>, vector<16x16xf32> -> vector<16x16xf32>
    %c11 = arith.constant 11 : index
    %139 = memref.load %arg7[%c11] : memref<72xf32, #tpu.memory_space<smem>>
    %140 = vector.broadcast %139 : f32 to vector<16x16xf32>
    %141 = arith.mulf %140, %138 : vector<16x16xf32>
    %142 = arith.addf %133, %141 : vector<16x16xf32>
    %c47 = arith.constant 47 : index
    %143 = memref.load %arg7[%c47] : memref<72xf32, #tpu.memory_space<smem>>
    %144 = vector.broadcast %143 : f32 to vector<16x16xf32>
    %145 = arith.mulf %144, %138 : vector<16x16xf32>
    %146 = arith.addf %137, %145 : vector<16x16xf32>
    %cst_68 = arith.constant dense<0.000000e+00> : vector<16x16xf32>
    %147 = tpu.matmul %23, %7, %cst_68 {dimension_numbers = #tpu.dot_dimension_numbers<[1], [0], [0], [1], [0, 0, 1, 1], [], []>} : vector<16x16xf32>, vector<16x16xf32>, vector<16x16xf32> -> vector<16x16xf32>
    %c12 = arith.constant 12 : index
    %148 = memref.load %arg7[%c12] : memref<72xf32, #tpu.memory_space<smem>>
    %149 = vector.broadcast %148 : f32 to vector<16x16xf32>
    %150 = arith.mulf %149, %147 : vector<16x16xf32>
    %151 = arith.addf %142, %150 : vector<16x16xf32>
    %c48 = arith.constant 48 : index
    %152 = memref.load %arg7[%c48] : memref<72xf32, #tpu.memory_space<smem>>
    %153 = vector.broadcast %152 : f32 to vector<16x16xf32>
    %154 = arith.mulf %153, %147 : vector<16x16xf32>
    %155 = arith.addf %146, %154 : vector<16x16xf32>
    %c13 = arith.constant 13 : index
    %156 = memref.load %arg7[%c13] : memref<72xf32, #tpu.memory_space<smem>>
    %157 = vector.broadcast %156 : f32 to vector<16x16xf32>
    %158 = arith.mulf %157, %23 : vector<16x16xf32>
    %159 = arith.addf %151, %158 : vector<16x16xf32>
    %c49 = arith.constant 49 : index
    %160 = memref.load %arg7[%c49] : memref<72xf32, #tpu.memory_space<smem>>
    %161 = vector.broadcast %160 : f32 to vector<16x16xf32>
    %162 = arith.mulf %161, %23 : vector<16x16xf32>
    %163 = arith.addf %155, %162 : vector<16x16xf32>
    %cst_69 = arith.constant dense<0.000000e+00> : vector<16x16xf32>
    %164 = tpu.matmul %23, %9, %cst_69 {dimension_numbers = #tpu.dot_dimension_numbers<[1], [0], [0], [1], [0, 0, 1, 1], [], []>} : vector<16x16xf32>, vector<16x16xf32>, vector<16x16xf32> -> vector<16x16xf32>
    %c14 = arith.constant 14 : index
    %165 = memref.load %arg7[%c14] : memref<72xf32, #tpu.memory_space<smem>>
    %166 = vector.broadcast %165 : f32 to vector<16x16xf32>
    %167 = arith.mulf %166, %164 : vector<16x16xf32>
    %168 = arith.addf %159, %167 : vector<16x16xf32>
    %c50 = arith.constant 50 : index
    %169 = memref.load %arg7[%c50] : memref<72xf32, #tpu.memory_space<smem>>
    %170 = vector.broadcast %169 : f32 to vector<16x16xf32>
    %171 = arith.mulf %170, %164 : vector<16x16xf32>
    %172 = arith.addf %163, %171 : vector<16x16xf32>
    %cst_70 = arith.constant dense<0.000000e+00> : vector<16x16xf32>
    %173 = tpu.matmul %5, %23, %cst_70 {dimension_numbers = #tpu.dot_dimension_numbers<[1], [0], [0], [1], [0, 0, 1, 1], [], []>} : vector<16x16xf32>, vector<16x16xf32>, vector<16x16xf32> -> vector<16x16xf32>
    %cst_71 = arith.constant dense<0.000000e+00> : vector<16x16xf32>
    %174 = tpu.matmul %173, %7, %cst_71 {dimension_numbers = #tpu.dot_dimension_numbers<[1], [0], [0], [1], [0, 0, 1, 1], [], []>} : vector<16x16xf32>, vector<16x16xf32>, vector<16x16xf32> -> vector<16x16xf32>
    %c15 = arith.constant 15 : index
    %175 = memref.load %arg7[%c15] : memref<72xf32, #tpu.memory_space<smem>>
    %176 = vector.broadcast %175 : f32 to vector<16x16xf32>
    %177 = arith.mulf %176, %174 : vector<16x16xf32>
    %178 = arith.addf %168, %177 : vector<16x16xf32>
    %c51 = arith.constant 51 : index
    %179 = memref.load %arg7[%c51] : memref<72xf32, #tpu.memory_space<smem>>
    %180 = vector.broadcast %179 : f32 to vector<16x16xf32>
    %181 = arith.mulf %180, %174 : vector<16x16xf32>
    %182 = arith.addf %172, %181 : vector<16x16xf32>
    %c16 = arith.constant 16 : index
    %183 = memref.load %arg7[%c16] : memref<72xf32, #tpu.memory_space<smem>>
    %184 = vector.broadcast %183 : f32 to vector<16x16xf32>
    %185 = arith.mulf %184, %173 : vector<16x16xf32>
    %186 = arith.addf %178, %185 : vector<16x16xf32>
    %c52 = arith.constant 52 : index
    %187 = memref.load %arg7[%c52] : memref<72xf32, #tpu.memory_space<smem>>
    %188 = vector.broadcast %187 : f32 to vector<16x16xf32>
    %189 = arith.mulf %188, %173 : vector<16x16xf32>
    %190 = arith.addf %182, %189 : vector<16x16xf32>
    %cst_72 = arith.constant dense<0.000000e+00> : vector<16x16xf32>
    %191 = tpu.matmul %173, %9, %cst_72 {dimension_numbers = #tpu.dot_dimension_numbers<[1], [0], [0], [1], [0, 0, 1, 1], [], []>} : vector<16x16xf32>, vector<16x16xf32>, vector<16x16xf32> -> vector<16x16xf32>
    %c17 = arith.constant 17 : index
    %192 = memref.load %arg7[%c17] : memref<72xf32, #tpu.memory_space<smem>>
    %193 = vector.broadcast %192 : f32 to vector<16x16xf32>
    %194 = arith.mulf %193, %191 : vector<16x16xf32>
    %195 = arith.addf %186, %194 : vector<16x16xf32>
    %c53 = arith.constant 53 : index
    %196 = memref.load %arg7[%c53] : memref<72xf32, #tpu.memory_space<smem>>
    %197 = vector.broadcast %196 : f32 to vector<16x16xf32>
    %198 = arith.mulf %197, %191 : vector<16x16xf32>
    %199 = arith.addf %190, %198 : vector<16x16xf32>
    %cst_73 = arith.constant dense<0.000000e+00> : vector<16x16xf32>
    %200 = tpu.matmul %3, %30, %cst_73 {dimension_numbers = #tpu.dot_dimension_numbers<[1], [0], [0], [1], [0, 0, 1, 1], [], []>} : vector<16x16xf32>, vector<16x16xf32>, vector<16x16xf32> -> vector<16x16xf32>
    %cst_74 = arith.constant dense<0.000000e+00> : vector<16x16xf32>
    %201 = tpu.matmul %200, %7, %cst_74 {dimension_numbers = #tpu.dot_dimension_numbers<[1], [0], [0], [1], [0, 0, 1, 1], [], []>} : vector<16x16xf32>, vector<16x16xf32>, vector<16x16xf32> -> vector<16x16xf32>
    %c18 = arith.constant 18 : index
    %202 = memref.load %arg7[%c18] : memref<72xf32, #tpu.memory_space<smem>>
    %203 = vector.broadcast %202 : f32 to vector<16x16xf32>
    %204 = arith.mulf %203, %201 : vector<16x16xf32>
    %205 = arith.addf %195, %204 : vector<16x16xf32>
    %c54 = arith.constant 54 : index
    %206 = memref.load %arg7[%c54] : memref<72xf32, #tpu.memory_space<smem>>
    %207 = vector.broadcast %206 : f32 to vector<16x16xf32>
    %208 = arith.mulf %207, %201 : vector<16x16xf32>
    %209 = arith.addf %199, %208 : vector<16x16xf32>
    %c19 = arith.constant 19 : index
    %210 = memref.load %arg7[%c19] : memref<72xf32, #tpu.memory_space<smem>>
    %211 = vector.broadcast %210 : f32 to vector<16x16xf32>
    %212 = arith.mulf %211, %200 : vector<16x16xf32>
    %213 = arith.addf %205, %212 : vector<16x16xf32>
    %c55 = arith.constant 55 : index
    %214 = memref.load %arg7[%c55] : memref<72xf32, #tpu.memory_space<smem>>
    %215 = vector.broadcast %214 : f32 to vector<16x16xf32>
    %216 = arith.mulf %215, %200 : vector<16x16xf32>
    %217 = arith.addf %209, %216 : vector<16x16xf32>
    %cst_75 = arith.constant dense<0.000000e+00> : vector<16x16xf32>
    %218 = tpu.matmul %200, %9, %cst_75 {dimension_numbers = #tpu.dot_dimension_numbers<[1], [0], [0], [1], [0, 0, 1, 1], [], []>} : vector<16x16xf32>, vector<16x16xf32>, vector<16x16xf32> -> vector<16x16xf32>
    %c20 = arith.constant 20 : index
    %219 = memref.load %arg7[%c20] : memref<72xf32, #tpu.memory_space<smem>>
    %220 = vector.broadcast %219 : f32 to vector<16x16xf32>
    %221 = arith.mulf %220, %218 : vector<16x16xf32>
    %222 = arith.addf %213, %221 : vector<16x16xf32>
    %c56 = arith.constant 56 : index
    %223 = memref.load %arg7[%c56] : memref<72xf32, #tpu.memory_space<smem>>
    %224 = vector.broadcast %223 : f32 to vector<16x16xf32>
    %225 = arith.mulf %224, %218 : vector<16x16xf32>
    %226 = arith.addf %217, %225 : vector<16x16xf32>
    %cst_76 = arith.constant dense<0.000000e+00> : vector<16x16xf32>
    %227 = tpu.matmul %30, %7, %cst_76 {dimension_numbers = #tpu.dot_dimension_numbers<[1], [0], [0], [1], [0, 0, 1, 1], [], []>} : vector<16x16xf32>, vector<16x16xf32>, vector<16x16xf32> -> vector<16x16xf32>
    %c21 = arith.constant 21 : index
    %228 = memref.load %arg7[%c21] : memref<72xf32, #tpu.memory_space<smem>>
    %229 = vector.broadcast %228 : f32 to vector<16x16xf32>
    %230 = arith.mulf %229, %227 : vector<16x16xf32>
    %231 = arith.addf %222, %230 : vector<16x16xf32>
    %c57 = arith.constant 57 : index
    %232 = memref.load %arg7[%c57] : memref<72xf32, #tpu.memory_space<smem>>
    %233 = vector.broadcast %232 : f32 to vector<16x16xf32>
    %234 = arith.mulf %233, %227 : vector<16x16xf32>
    %235 = arith.addf %226, %234 : vector<16x16xf32>
    %c22 = arith.constant 22 : index
    %236 = memref.load %arg7[%c22] : memref<72xf32, #tpu.memory_space<smem>>
    %237 = vector.broadcast %236 : f32 to vector<16x16xf32>
    %238 = arith.mulf %237, %30 : vector<16x16xf32>
    %239 = arith.addf %231, %238 : vector<16x16xf32>
    %c58 = arith.constant 58 : index
    %240 = memref.load %arg7[%c58] : memref<72xf32, #tpu.memory_space<smem>>
    %241 = vector.broadcast %240 : f32 to vector<16x16xf32>
    %242 = arith.mulf %241, %30 : vector<16x16xf32>
    %243 = arith.addf %235, %242 : vector<16x16xf32>
    %cst_77 = arith.constant dense<0.000000e+00> : vector<16x16xf32>
    %244 = tpu.matmul %30, %9, %cst_77 {dimension_numbers = #tpu.dot_dimension_numbers<[1], [0], [0], [1], [0, 0, 1, 1], [], []>} : vector<16x16xf32>, vector<16x16xf32>, vector<16x16xf32> -> vector<16x16xf32>
    %c23 = arith.constant 23 : index
    %245 = memref.load %arg7[%c23] : memref<72xf32, #tpu.memory_space<smem>>
    %246 = vector.broadcast %245 : f32 to vector<16x16xf32>
    %247 = arith.mulf %246, %244 : vector<16x16xf32>
    %248 = arith.addf %239, %247 : vector<16x16xf32>
    %c59 = arith.constant 59 : index
    %249 = memref.load %arg7[%c59] : memref<72xf32, #tpu.memory_space<smem>>
    %250 = vector.broadcast %249 : f32 to vector<16x16xf32>
    %251 = arith.mulf %250, %244 : vector<16x16xf32>
    %252 = arith.addf %243, %251 : vector<16x16xf32>
    %cst_78 = arith.constant dense<0.000000e+00> : vector<16x16xf32>
    %253 = tpu.matmul %5, %30, %cst_78 {dimension_numbers = #tpu.dot_dimension_numbers<[1], [0], [0], [1], [0, 0, 1, 1], [], []>} : vector<16x16xf32>, vector<16x16xf32>, vector<16x16xf32> -> vector<16x16xf32>
    %cst_79 = arith.constant dense<0.000000e+00> : vector<16x16xf32>
    %254 = tpu.matmul %253, %7, %cst_79 {dimension_numbers = #tpu.dot_dimension_numbers<[1], [0], [0], [1], [0, 0, 1, 1], [], []>} : vector<16x16xf32>, vector<16x16xf32>, vector<16x16xf32> -> vector<16x16xf32>
    %c24 = arith.constant 24 : index
    %255 = memref.load %arg7[%c24] : memref<72xf32, #tpu.memory_space<smem>>
    %256 = vector.broadcast %255 : f32 to vector<16x16xf32>
    %257 = arith.mulf %256, %254 : vector<16x16xf32>
    %258 = arith.addf %248, %257 : vector<16x16xf32>
    %c60 = arith.constant 60 : index
    %259 = memref.load %arg7[%c60] : memref<72xf32, #tpu.memory_space<smem>>
    %260 = vector.broadcast %259 : f32 to vector<16x16xf32>
    %261 = arith.mulf %260, %254 : vector<16x16xf32>
    %262 = arith.addf %252, %261 : vector<16x16xf32>
    %c25 = arith.constant 25 : index
    %263 = memref.load %arg7[%c25] : memref<72xf32, #tpu.memory_space<smem>>
    %264 = vector.broadcast %263 : f32 to vector<16x16xf32>
    %265 = arith.mulf %264, %253 : vector<16x16xf32>
    %266 = arith.addf %258, %265 : vector<16x16xf32>
    %c61 = arith.constant 61 : index
    %267 = memref.load %arg7[%c61] : memref<72xf32, #tpu.memory_space<smem>>
    %268 = vector.broadcast %267 : f32 to vector<16x16xf32>
    %269 = arith.mulf %268, %253 : vector<16x16xf32>
    %270 = arith.addf %262, %269 : vector<16x16xf32>
    %cst_80 = arith.constant dense<0.000000e+00> : vector<16x16xf32>
    %271 = tpu.matmul %253, %9, %cst_80 {dimension_numbers = #tpu.dot_dimension_numbers<[1], [0], [0], [1], [0, 0, 1, 1], [], []>} : vector<16x16xf32>, vector<16x16xf32>, vector<16x16xf32> -> vector<16x16xf32>
    %c26 = arith.constant 26 : index
    %272 = memref.load %arg7[%c26] : memref<72xf32, #tpu.memory_space<smem>>
    %273 = vector.broadcast %272 : f32 to vector<16x16xf32>
    %274 = arith.mulf %273, %271 : vector<16x16xf32>
    %275 = arith.addf %266, %274 : vector<16x16xf32>
    %c62 = arith.constant 62 : index
    %276 = memref.load %arg7[%c62] : memref<72xf32, #tpu.memory_space<smem>>
    %277 = vector.broadcast %276 : f32 to vector<16x16xf32>
    %278 = arith.mulf %277, %271 : vector<16x16xf32>
    %279 = arith.addf %270, %278 : vector<16x16xf32>
    %cst_81 = arith.constant dense<0.000000e+00> : vector<16x16xf32>
    %280 = tpu.matmul %3, %37, %cst_81 {dimension_numbers = #tpu.dot_dimension_numbers<[1], [0], [0], [1], [0, 0, 1, 1], [], []>} : vector<16x16xf32>, vector<16x16xf32>, vector<16x16xf32> -> vector<16x16xf32>
    %cst_82 = arith.constant dense<0.000000e+00> : vector<16x16xf32>
    %281 = tpu.matmul %280, %7, %cst_82 {dimension_numbers = #tpu.dot_dimension_numbers<[1], [0], [0], [1], [0, 0, 1, 1], [], []>} : vector<16x16xf32>, vector<16x16xf32>, vector<16x16xf32> -> vector<16x16xf32>
    %c27 = arith.constant 27 : index
    %282 = memref.load %arg7[%c27] : memref<72xf32, #tpu.memory_space<smem>>
    %283 = vector.broadcast %282 : f32 to vector<16x16xf32>
    %284 = arith.mulf %283, %281 : vector<16x16xf32>
    %285 = arith.addf %275, %284 : vector<16x16xf32>
    %c63 = arith.constant 63 : index
    %286 = memref.load %arg7[%c63] : memref<72xf32, #tpu.memory_space<smem>>
    %287 = vector.broadcast %286 : f32 to vector<16x16xf32>
    %288 = arith.mulf %287, %281 : vector<16x16xf32>
    %289 = arith.addf %279, %288 : vector<16x16xf32>
    %c28 = arith.constant 28 : index
    %290 = memref.load %arg7[%c28] : memref<72xf32, #tpu.memory_space<smem>>
    %291 = vector.broadcast %290 : f32 to vector<16x16xf32>
    %292 = arith.mulf %291, %280 : vector<16x16xf32>
    %293 = arith.addf %285, %292 : vector<16x16xf32>
    %c64 = arith.constant 64 : index
    %294 = memref.load %arg7[%c64] : memref<72xf32, #tpu.memory_space<smem>>
    %295 = vector.broadcast %294 : f32 to vector<16x16xf32>
    %296 = arith.mulf %295, %280 : vector<16x16xf32>
    %297 = arith.addf %289, %296 : vector<16x16xf32>
    %cst_83 = arith.constant dense<0.000000e+00> : vector<16x16xf32>
    %298 = tpu.matmul %280, %9, %cst_83 {dimension_numbers = #tpu.dot_dimension_numbers<[1], [0], [0], [1], [0, 0, 1, 1], [], []>} : vector<16x16xf32>, vector<16x16xf32>, vector<16x16xf32> -> vector<16x16xf32>
    %c29 = arith.constant 29 : index
    %299 = memref.load %arg7[%c29] : memref<72xf32, #tpu.memory_space<smem>>
    %300 = vector.broadcast %299 : f32 to vector<16x16xf32>
    %301 = arith.mulf %300, %298 : vector<16x16xf32>
    %302 = arith.addf %293, %301 : vector<16x16xf32>
    %c65 = arith.constant 65 : index
    %303 = memref.load %arg7[%c65] : memref<72xf32, #tpu.memory_space<smem>>
    %304 = vector.broadcast %303 : f32 to vector<16x16xf32>
    %305 = arith.mulf %304, %298 : vector<16x16xf32>
    %306 = arith.addf %297, %305 : vector<16x16xf32>
    %cst_84 = arith.constant dense<0.000000e+00> : vector<16x16xf32>
    %307 = tpu.matmul %37, %7, %cst_84 {dimension_numbers = #tpu.dot_dimension_numbers<[1], [0], [0], [1], [0, 0, 1, 1], [], []>} : vector<16x16xf32>, vector<16x16xf32>, vector<16x16xf32> -> vector<16x16xf32>
    %c30 = arith.constant 30 : index
    %308 = memref.load %arg7[%c30] : memref<72xf32, #tpu.memory_space<smem>>
    %309 = vector.broadcast %308 : f32 to vector<16x16xf32>
    %310 = arith.mulf %309, %307 : vector<16x16xf32>
    %311 = arith.addf %302, %310 : vector<16x16xf32>
    %c66 = arith.constant 66 : index
    %312 = memref.load %arg7[%c66] : memref<72xf32, #tpu.memory_space<smem>>
    %313 = vector.broadcast %312 : f32 to vector<16x16xf32>
    %314 = arith.mulf %313, %307 : vector<16x16xf32>
    %315 = arith.addf %306, %314 : vector<16x16xf32>
    %c31 = arith.constant 31 : index
    %316 = memref.load %arg7[%c31] : memref<72xf32, #tpu.memory_space<smem>>
    %317 = vector.broadcast %316 : f32 to vector<16x16xf32>
    %318 = arith.mulf %317, %37 : vector<16x16xf32>
    %319 = arith.addf %311, %318 : vector<16x16xf32>
    %c67 = arith.constant 67 : index
    %320 = memref.load %arg7[%c67] : memref<72xf32, #tpu.memory_space<smem>>
    %321 = vector.broadcast %320 : f32 to vector<16x16xf32>
    %322 = arith.mulf %321, %37 : vector<16x16xf32>
    %323 = arith.addf %315, %322 : vector<16x16xf32>
    %cst_85 = arith.constant dense<0.000000e+00> : vector<16x16xf32>
    %324 = tpu.matmul %37, %9, %cst_85 {dimension_numbers = #tpu.dot_dimension_numbers<[1], [0], [0], [1], [0, 0, 1, 1], [], []>} : vector<16x16xf32>, vector<16x16xf32>, vector<16x16xf32> -> vector<16x16xf32>
    %c32 = arith.constant 32 : index
    %325 = memref.load %arg7[%c32] : memref<72xf32, #tpu.memory_space<smem>>
    %326 = vector.broadcast %325 : f32 to vector<16x16xf32>
    %327 = arith.mulf %326, %324 : vector<16x16xf32>
    %328 = arith.addf %319, %327 : vector<16x16xf32>
    %c68 = arith.constant 68 : index
    %329 = memref.load %arg7[%c68] : memref<72xf32, #tpu.memory_space<smem>>
    %330 = vector.broadcast %329 : f32 to vector<16x16xf32>
    %331 = arith.mulf %330, %324 : vector<16x16xf32>
    %332 = arith.addf %323, %331 : vector<16x16xf32>
    %cst_86 = arith.constant dense<0.000000e+00> : vector<16x16xf32>
    %333 = tpu.matmul %5, %37, %cst_86 {dimension_numbers = #tpu.dot_dimension_numbers<[1], [0], [0], [1], [0, 0, 1, 1], [], []>} : vector<16x16xf32>, vector<16x16xf32>, vector<16x16xf32> -> vector<16x16xf32>
    %cst_87 = arith.constant dense<0.000000e+00> : vector<16x16xf32>
    %334 = tpu.matmul %333, %7, %cst_87 {dimension_numbers = #tpu.dot_dimension_numbers<[1], [0], [0], [1], [0, 0, 1, 1], [], []>} : vector<16x16xf32>, vector<16x16xf32>, vector<16x16xf32> -> vector<16x16xf32>
    %c33 = arith.constant 33 : index
    %335 = memref.load %arg7[%c33] : memref<72xf32, #tpu.memory_space<smem>>
    %336 = vector.broadcast %335 : f32 to vector<16x16xf32>
    %337 = arith.mulf %336, %334 : vector<16x16xf32>
    %338 = arith.addf %328, %337 : vector<16x16xf32>
    %c69 = arith.constant 69 : index
    %339 = memref.load %arg7[%c69] : memref<72xf32, #tpu.memory_space<smem>>
    %340 = vector.broadcast %339 : f32 to vector<16x16xf32>
    %341 = arith.mulf %340, %334 : vector<16x16xf32>
    %342 = arith.addf %332, %341 : vector<16x16xf32>
    %c34 = arith.constant 34 : index
    %343 = memref.load %arg7[%c34] : memref<72xf32, #tpu.memory_space<smem>>
    %344 = vector.broadcast %343 : f32 to vector<16x16xf32>
    %345 = arith.mulf %344, %333 : vector<16x16xf32>
    %346 = arith.addf %338, %345 : vector<16x16xf32>
    %c70 = arith.constant 70 : index
    %347 = memref.load %arg7[%c70] : memref<72xf32, #tpu.memory_space<smem>>
    %348 = vector.broadcast %347 : f32 to vector<16x16xf32>
    %349 = arith.mulf %348, %333 : vector<16x16xf32>
    %350 = arith.addf %342, %349 : vector<16x16xf32>
    %cst_88 = arith.constant dense<0.000000e+00> : vector<16x16xf32>
    %351 = tpu.matmul %333, %9, %cst_88 {dimension_numbers = #tpu.dot_dimension_numbers<[1], [0], [0], [1], [0, 0, 1, 1], [], []>} : vector<16x16xf32>, vector<16x16xf32>, vector<16x16xf32> -> vector<16x16xf32>
    %c35 = arith.constant 35 : index
    %352 = memref.load %arg7[%c35] : memref<72xf32, #tpu.memory_space<smem>>
    %353 = vector.broadcast %352 : f32 to vector<16x16xf32>
    %354 = arith.mulf %353, %351 : vector<16x16xf32>
    %355 = arith.addf %346, %354 : vector<16x16xf32>
    %c71 = arith.constant 71 : index
    %356 = memref.load %arg7[%c71] : memref<72xf32, #tpu.memory_space<smem>>
    %357 = vector.broadcast %356 : f32 to vector<16x16xf32>
    %358 = arith.mulf %357, %351 : vector<16x16xf32>
    %359 = arith.addf %350, %358 : vector<16x16xf32>
    %360 = vector.shape_cast %355 : vector<16x16xf32> to vector<1x16x16xf32>
    %cst_89 = arith.constant dense<0.000000e+00> : vector<1xf32>
    %361 = vector.multi_reduction <add>, %360, %cst_89 [1, 2] : vector<1x16x16xf32> to vector<1xf32>
    %362 = vector.shape_cast %361 : vector<1xf32> to vector<1x1x1xf32>
    %363 = vector.extract %362[0, 0, 0] : f32 from vector<1x1x1xf32>
    %cst_90 = arith.constant 2.560000e+02 : f32
    %364 = arith.divf %363, %cst_90 : f32
    %365 = vector.broadcast %364 : f32 to vector<16x16xf32>
    %366 = arith.subf %355, %365 : vector<16x16xf32>
    %367 = vector.broadcast %364 : f32 to vector<16x16xf32>
    %368 = arith.subf %355, %367 : vector<16x16xf32>
    %369 = arith.mulf %366, %368 : vector<16x16xf32>
    %370 = vector.shape_cast %369 : vector<16x16xf32> to vector<1x16x16xf32>
    %cst_91 = arith.constant dense<0.000000e+00> : vector<1xf32>
    %371 = vector.multi_reduction <add>, %370, %cst_91 [1, 2] : vector<1x16x16xf32> to vector<1xf32>
    %372 = vector.shape_cast %371 : vector<1xf32> to vector<1x1x1xf32>
    %373 = vector.extract %372[0, 0, 0] : f32 from vector<1x1x1xf32>
    %cst_92 = arith.constant 2.560000e+02 : f32
    %374 = arith.divf %373, %cst_92 : f32
    %375 = vector.broadcast %364 : f32 to vector<16x16xf32>
    %376 = arith.subf %355, %375 : vector<16x16xf32>
    %cst_93 = arith.constant 9.99999974E-6 : f32
    %377 = arith.addf %374, %cst_93 : f32
    %378 = math.rsqrt %377 : f32
    %379 = vector.broadcast %378 : f32 to vector<16x16xf32>
    %380 = arith.mulf %376, %379 : vector<16x16xf32>
    %cst_94 = arith.constant 0.000000e+00 : f32
    %381 = vector.broadcast %cst_94 : f32 to vector<16x16xf32>
    %382 = arith.maximumf %380, %381 : vector<16x16xf32>
    %383 = vector.shape_cast %359 : vector<16x16xf32> to vector<1x16x16xf32>
    %cst_95 = arith.constant dense<0.000000e+00> : vector<1xf32>
    %384 = vector.multi_reduction <add>, %383, %cst_95 [1, 2] : vector<1x16x16xf32> to vector<1xf32>
    %385 = vector.shape_cast %384 : vector<1xf32> to vector<1x1x1xf32>
    %386 = vector.extract %385[0, 0, 0] : f32 from vector<1x1x1xf32>
    %cst_96 = arith.constant 2.560000e+02 : f32
    %387 = arith.divf %386, %cst_96 : f32
    %388 = vector.broadcast %387 : f32 to vector<16x16xf32>
    %389 = arith.subf %359, %388 : vector<16x16xf32>
    %390 = vector.broadcast %387 : f32 to vector<16x16xf32>
    %391 = arith.subf %359, %390 : vector<16x16xf32>
    %392 = arith.mulf %389, %391 : vector<16x16xf32>
    %393 = vector.shape_cast %392 : vector<16x16xf32> to vector<1x16x16xf32>
    %cst_97 = arith.constant dense<0.000000e+00> : vector<1xf32>
    %394 = vector.multi_reduction <add>, %393, %cst_97 [1, 2] : vector<1x16x16xf32> to vector<1xf32>
    %395 = vector.shape_cast %394 : vector<1xf32> to vector<1x1x1xf32>
    %396 = vector.extract %395[0, 0, 0] : f32 from vector<1x1x1xf32>
    %cst_98 = arith.constant 2.560000e+02 : f32
    %397 = arith.divf %396, %cst_98 : f32
    %398 = vector.broadcast %387 : f32 to vector<16x16xf32>
    %399 = arith.subf %359, %398 : vector<16x16xf32>
    %cst_99 = arith.constant 9.99999974E-6 : f32
    %400 = arith.addf %397, %cst_99 : f32
    %401 = math.rsqrt %400 : f32
    %402 = vector.broadcast %401 : f32 to vector<16x16xf32>
    %403 = arith.mulf %399, %402 : vector<16x16xf32>
    %cst_100 = arith.constant 0.000000e+00 : f32
    %404 = vector.broadcast %cst_100 : f32 to vector<16x16xf32>
    %405 = arith.maximumf %403, %404 : vector<16x16xf32>
    %cst_101 = arith.constant 0.000000e+00 : f32
    %406 = vector.broadcast %cst_101 : f32 to vector<16x16xf32>
    %cst_102 = arith.constant 0.000000e+00 : f32
    %407 = vector.broadcast %cst_102 : f32 to vector<16x16xf32>
    %cst_103 = arith.constant 0.000000e+00 : f32
    %408 = vector.broadcast %cst_103 : f32 to vector<16x16xf32>
    %cst_104 = arith.constant 0.000000e+00 : f32
    %409 = vector.broadcast %cst_104 : f32 to vector<16x16xf32>
    %cst_105 = arith.constant dense<0.000000e+00> : vector<16x16xf32>
    %410 = tpu.matmul %3, %382, %cst_105 {dimension_numbers = #tpu.dot_dimension_numbers<[1], [0], [0], [1], [0, 0, 1, 1], [], []>} : vector<16x16xf32>, vector<16x16xf32>, vector<16x16xf32> -> vector<16x16xf32>
    %cst_106 = arith.constant dense<0.000000e+00> : vector<16x16xf32>
    %411 = tpu.matmul %410, %7, %cst_106 {dimension_numbers = #tpu.dot_dimension_numbers<[1], [0], [0], [1], [0, 0, 1, 1], [], []>} : vector<16x16xf32>, vector<16x16xf32>, vector<16x16xf32> -> vector<16x16xf32>
    %c0_107 = arith.constant 0 : index
    %412 = memref.load %arg8[%c0_107] : memref<72xf32, #tpu.memory_space<smem>>
    %413 = vector.broadcast %412 : f32 to vector<16x16xf32>
    %414 = arith.mulf %413, %411 : vector<16x16xf32>
    %415 = arith.addf %406, %414 : vector<16x16xf32>
    %c18_108 = arith.constant 18 : index
    %416 = memref.load %arg8[%c18_108] : memref<72xf32, #tpu.memory_space<smem>>
    %417 = vector.broadcast %416 : f32 to vector<16x16xf32>
    %418 = arith.mulf %417, %411 : vector<16x16xf32>
    %419 = arith.addf %407, %418 : vector<16x16xf32>
    %c36_109 = arith.constant 36 : index
    %420 = memref.load %arg8[%c36_109] : memref<72xf32, #tpu.memory_space<smem>>
    %421 = vector.broadcast %420 : f32 to vector<16x16xf32>
    %422 = arith.mulf %421, %411 : vector<16x16xf32>
    %423 = arith.addf %408, %422 : vector<16x16xf32>
    %c54_110 = arith.constant 54 : index
    %424 = memref.load %arg8[%c54_110] : memref<72xf32, #tpu.memory_space<smem>>
    %425 = vector.broadcast %424 : f32 to vector<16x16xf32>
    %426 = arith.mulf %425, %411 : vector<16x16xf32>
    %427 = arith.addf %409, %426 : vector<16x16xf32>
    %c1_111 = arith.constant 1 : index
    %428 = memref.load %arg8[%c1_111] : memref<72xf32, #tpu.memory_space<smem>>
    %429 = vector.broadcast %428 : f32 to vector<16x16xf32>
    %430 = arith.mulf %429, %410 : vector<16x16xf32>
    %431 = arith.addf %415, %430 : vector<16x16xf32>
    %c19_112 = arith.constant 19 : index
    %432 = memref.load %arg8[%c19_112] : memref<72xf32, #tpu.memory_space<smem>>
    %433 = vector.broadcast %432 : f32 to vector<16x16xf32>
    %434 = arith.mulf %433, %410 : vector<16x16xf32>
    %435 = arith.addf %419, %434 : vector<16x16xf32>
    %c37_113 = arith.constant 37 : index
    %436 = memref.load %arg8[%c37_113] : memref<72xf32, #tpu.memory_space<smem>>
    %437 = vector.broadcast %436 : f32 to vector<16x16xf32>
    %438 = arith.mulf %437, %410 : vector<16x16xf32>
    %439 = arith.addf %423, %438 : vector<16x16xf32>
    %c55_114 = arith.constant 55 : index
    %440 = memref.load %arg8[%c55_114] : memref<72xf32, #tpu.memory_space<smem>>
    %441 = vector.broadcast %440 : f32 to vector<16x16xf32>
    %442 = arith.mulf %441, %410 : vector<16x16xf32>
    %443 = arith.addf %427, %442 : vector<16x16xf32>
    %cst_115 = arith.constant dense<0.000000e+00> : vector<16x16xf32>
    %444 = tpu.matmul %410, %9, %cst_115 {dimension_numbers = #tpu.dot_dimension_numbers<[1], [0], [0], [1], [0, 0, 1, 1], [], []>} : vector<16x16xf32>, vector<16x16xf32>, vector<16x16xf32> -> vector<16x16xf32>
    %c2_116 = arith.constant 2 : index
    %445 = memref.load %arg8[%c2_116] : memref<72xf32, #tpu.memory_space<smem>>
    %446 = vector.broadcast %445 : f32 to vector<16x16xf32>
    %447 = arith.mulf %446, %444 : vector<16x16xf32>
    %448 = arith.addf %431, %447 : vector<16x16xf32>
    %c20_117 = arith.constant 20 : index
    %449 = memref.load %arg8[%c20_117] : memref<72xf32, #tpu.memory_space<smem>>
    %450 = vector.broadcast %449 : f32 to vector<16x16xf32>
    %451 = arith.mulf %450, %444 : vector<16x16xf32>
    %452 = arith.addf %435, %451 : vector<16x16xf32>
    %c38_118 = arith.constant 38 : index
    %453 = memref.load %arg8[%c38_118] : memref<72xf32, #tpu.memory_space<smem>>
    %454 = vector.broadcast %453 : f32 to vector<16x16xf32>
    %455 = arith.mulf %454, %444 : vector<16x16xf32>
    %456 = arith.addf %439, %455 : vector<16x16xf32>
    %c56_119 = arith.constant 56 : index
    %457 = memref.load %arg8[%c56_119] : memref<72xf32, #tpu.memory_space<smem>>
    %458 = vector.broadcast %457 : f32 to vector<16x16xf32>
    %459 = arith.mulf %458, %444 : vector<16x16xf32>
    %460 = arith.addf %443, %459 : vector<16x16xf32>
    %cst_120 = arith.constant dense<0.000000e+00> : vector<16x16xf32>
    %461 = tpu.matmul %382, %7, %cst_120 {dimension_numbers = #tpu.dot_dimension_numbers<[1], [0], [0], [1], [0, 0, 1, 1], [], []>} : vector<16x16xf32>, vector<16x16xf32>, vector<16x16xf32> -> vector<16x16xf32>
    %c3_121 = arith.constant 3 : index
    %462 = memref.load %arg8[%c3_121] : memref<72xf32, #tpu.memory_space<smem>>
    %463 = vector.broadcast %462 : f32 to vector<16x16xf32>
    %464 = arith.mulf %463, %461 : vector<16x16xf32>
    %465 = arith.addf %448, %464 : vector<16x16xf32>
    %c21_122 = arith.constant 21 : index
    %466 = memref.load %arg8[%c21_122] : memref<72xf32, #tpu.memory_space<smem>>
    %467 = vector.broadcast %466 : f32 to vector<16x16xf32>
    %468 = arith.mulf %467, %461 : vector<16x16xf32>
    %469 = arith.addf %452, %468 : vector<16x16xf32>
    %c39_123 = arith.constant 39 : index
    %470 = memref.load %arg8[%c39_123] : memref<72xf32, #tpu.memory_space<smem>>
    %471 = vector.broadcast %470 : f32 to vector<16x16xf32>
    %472 = arith.mulf %471, %461 : vector<16x16xf32>
    %473 = arith.addf %456, %472 : vector<16x16xf32>
    %c57_124 = arith.constant 57 : index
    %474 = memref.load %arg8[%c57_124] : memref<72xf32, #tpu.memory_space<smem>>
    %475 = vector.broadcast %474 : f32 to vector<16x16xf32>
    %476 = arith.mulf %475, %461 : vector<16x16xf32>
    %477 = arith.addf %460, %476 : vector<16x16xf32>
    %c4_125 = arith.constant 4 : index
    %478 = memref.load %arg8[%c4_125] : memref<72xf32, #tpu.memory_space<smem>>
    %479 = vector.broadcast %478 : f32 to vector<16x16xf32>
    %480 = arith.mulf %479, %382 : vector<16x16xf32>
    %481 = arith.addf %465, %480 : vector<16x16xf32>
    %c22_126 = arith.constant 22 : index
    %482 = memref.load %arg8[%c22_126] : memref<72xf32, #tpu.memory_space<smem>>
    %483 = vector.broadcast %482 : f32 to vector<16x16xf32>
    %484 = arith.mulf %483, %382 : vector<16x16xf32>
    %485 = arith.addf %469, %484 : vector<16x16xf32>
    %c40_127 = arith.constant 40 : index
    %486 = memref.load %arg8[%c40_127] : memref<72xf32, #tpu.memory_space<smem>>
    %487 = vector.broadcast %486 : f32 to vector<16x16xf32>
    %488 = arith.mulf %487, %382 : vector<16x16xf32>
    %489 = arith.addf %473, %488 : vector<16x16xf32>
    %c58_128 = arith.constant 58 : index
    %490 = memref.load %arg8[%c58_128] : memref<72xf32, #tpu.memory_space<smem>>
    %491 = vector.broadcast %490 : f32 to vector<16x16xf32>
    %492 = arith.mulf %491, %382 : vector<16x16xf32>
    %493 = arith.addf %477, %492 : vector<16x16xf32>
    %cst_129 = arith.constant dense<0.000000e+00> : vector<16x16xf32>
    %494 = tpu.matmul %382, %9, %cst_129 {dimension_numbers = #tpu.dot_dimension_numbers<[1], [0], [0], [1], [0, 0, 1, 1], [], []>} : vector<16x16xf32>, vector<16x16xf32>, vector<16x16xf32> -> vector<16x16xf32>
    %c5_130 = arith.constant 5 : index
    %495 = memref.load %arg8[%c5_130] : memref<72xf32, #tpu.memory_space<smem>>
    %496 = vector.broadcast %495 : f32 to vector<16x16xf32>
    %497 = arith.mulf %496, %494 : vector<16x16xf32>
    %498 = arith.addf %481, %497 : vector<16x16xf32>
    %c23_131 = arith.constant 23 : index
    %499 = memref.load %arg8[%c23_131] : memref<72xf32, #tpu.memory_space<smem>>
    %500 = vector.broadcast %499 : f32 to vector<16x16xf32>
    %501 = arith.mulf %500, %494 : vector<16x16xf32>
    %502 = arith.addf %485, %501 : vector<16x16xf32>
    %c41_132 = arith.constant 41 : index
    %503 = memref.load %arg8[%c41_132] : memref<72xf32, #tpu.memory_space<smem>>
    %504 = vector.broadcast %503 : f32 to vector<16x16xf32>
    %505 = arith.mulf %504, %494 : vector<16x16xf32>
    %506 = arith.addf %489, %505 : vector<16x16xf32>
    %c59_133 = arith.constant 59 : index
    %507 = memref.load %arg8[%c59_133] : memref<72xf32, #tpu.memory_space<smem>>
    %508 = vector.broadcast %507 : f32 to vector<16x16xf32>
    %509 = arith.mulf %508, %494 : vector<16x16xf32>
    %510 = arith.addf %493, %509 : vector<16x16xf32>
    %cst_134 = arith.constant dense<0.000000e+00> : vector<16x16xf32>
    %511 = tpu.matmul %5, %382, %cst_134 {dimension_numbers = #tpu.dot_dimension_numbers<[1], [0], [0], [1], [0, 0, 1, 1], [], []>} : vector<16x16xf32>, vector<16x16xf32>, vector<16x16xf32> -> vector<16x16xf32>
    %cst_135 = arith.constant dense<0.000000e+00> : vector<16x16xf32>
    %512 = tpu.matmul %511, %7, %cst_135 {dimension_numbers = #tpu.dot_dimension_numbers<[1], [0], [0], [1], [0, 0, 1, 1], [], []>} : vector<16x16xf32>, vector<16x16xf32>, vector<16x16xf32> -> vector<16x16xf32>
    %c6_136 = arith.constant 6 : index
    %513 = memref.load %arg8[%c6_136] : memref<72xf32, #tpu.memory_space<smem>>
    %514 = vector.broadcast %513 : f32 to vector<16x16xf32>
    %515 = arith.mulf %514, %512 : vector<16x16xf32>
    %516 = arith.addf %498, %515 : vector<16x16xf32>
    %c24_137 = arith.constant 24 : index
    %517 = memref.load %arg8[%c24_137] : memref<72xf32, #tpu.memory_space<smem>>
    %518 = vector.broadcast %517 : f32 to vector<16x16xf32>
    %519 = arith.mulf %518, %512 : vector<16x16xf32>
    %520 = arith.addf %502, %519 : vector<16x16xf32>
    %c42_138 = arith.constant 42 : index
    %521 = memref.load %arg8[%c42_138] : memref<72xf32, #tpu.memory_space<smem>>
    %522 = vector.broadcast %521 : f32 to vector<16x16xf32>
    %523 = arith.mulf %522, %512 : vector<16x16xf32>
    %524 = arith.addf %506, %523 : vector<16x16xf32>
    %c60_139 = arith.constant 60 : index
    %525 = memref.load %arg8[%c60_139] : memref<72xf32, #tpu.memory_space<smem>>
    %526 = vector.broadcast %525 : f32 to vector<16x16xf32>
    %527 = arith.mulf %526, %512 : vector<16x16xf32>
    %528 = arith.addf %510, %527 : vector<16x16xf32>
    %c7_140 = arith.constant 7 : index
    %529 = memref.load %arg8[%c7_140] : memref<72xf32, #tpu.memory_space<smem>>
    %530 = vector.broadcast %529 : f32 to vector<16x16xf32>
    %531 = arith.mulf %530, %511 : vector<16x16xf32>
    %532 = arith.addf %516, %531 : vector<16x16xf32>
    %c25_141 = arith.constant 25 : index
    %533 = memref.load %arg8[%c25_141] : memref<72xf32, #tpu.memory_space<smem>>
    %534 = vector.broadcast %533 : f32 to vector<16x16xf32>
    %535 = arith.mulf %534, %511 : vector<16x16xf32>
    %536 = arith.addf %520, %535 : vector<16x16xf32>
    %c43_142 = arith.constant 43 : index
    %537 = memref.load %arg8[%c43_142] : memref<72xf32, #tpu.memory_space<smem>>
    %538 = vector.broadcast %537 : f32 to vector<16x16xf32>
    %539 = arith.mulf %538, %511 : vector<16x16xf32>
    %540 = arith.addf %524, %539 : vector<16x16xf32>
    %c61_143 = arith.constant 61 : index
    %541 = memref.load %arg8[%c61_143] : memref<72xf32, #tpu.memory_space<smem>>
    %542 = vector.broadcast %541 : f32 to vector<16x16xf32>
    %543 = arith.mulf %542, %511 : vector<16x16xf32>
    %544 = arith.addf %528, %543 : vector<16x16xf32>
    %cst_144 = arith.constant dense<0.000000e+00> : vector<16x16xf32>
    %545 = tpu.matmul %511, %9, %cst_144 {dimension_numbers = #tpu.dot_dimension_numbers<[1], [0], [0], [1], [0, 0, 1, 1], [], []>} : vector<16x16xf32>, vector<16x16xf32>, vector<16x16xf32> -> vector<16x16xf32>
    %c8_145 = arith.constant 8 : index
    %546 = memref.load %arg8[%c8_145] : memref<72xf32, #tpu.memory_space<smem>>
    %547 = vector.broadcast %546 : f32 to vector<16x16xf32>
    %548 = arith.mulf %547, %545 : vector<16x16xf32>
    %549 = arith.addf %532, %548 : vector<16x16xf32>
    %c26_146 = arith.constant 26 : index
    %550 = memref.load %arg8[%c26_146] : memref<72xf32, #tpu.memory_space<smem>>
    %551 = vector.broadcast %550 : f32 to vector<16x16xf32>
    %552 = arith.mulf %551, %545 : vector<16x16xf32>
    %553 = arith.addf %536, %552 : vector<16x16xf32>
    %c44_147 = arith.constant 44 : index
    %554 = memref.load %arg8[%c44_147] : memref<72xf32, #tpu.memory_space<smem>>
    %555 = vector.broadcast %554 : f32 to vector<16x16xf32>
    %556 = arith.mulf %555, %545 : vector<16x16xf32>
    %557 = arith.addf %540, %556 : vector<16x16xf32>
    %c62_148 = arith.constant 62 : index
    %558 = memref.load %arg8[%c62_148] : memref<72xf32, #tpu.memory_space<smem>>
    %559 = vector.broadcast %558 : f32 to vector<16x16xf32>
    %560 = arith.mulf %559, %545 : vector<16x16xf32>
    %561 = arith.addf %544, %560 : vector<16x16xf32>
    %cst_149 = arith.constant dense<0.000000e+00> : vector<16x16xf32>
    %562 = tpu.matmul %3, %405, %cst_149 {dimension_numbers = #tpu.dot_dimension_numbers<[1], [0], [0], [1], [0, 0, 1, 1], [], []>} : vector<16x16xf32>, vector<16x16xf32>, vector<16x16xf32> -> vector<16x16xf32>
    %cst_150 = arith.constant dense<0.000000e+00> : vector<16x16xf32>
    %563 = tpu.matmul %562, %7, %cst_150 {dimension_numbers = #tpu.dot_dimension_numbers<[1], [0], [0], [1], [0, 0, 1, 1], [], []>} : vector<16x16xf32>, vector<16x16xf32>, vector<16x16xf32> -> vector<16x16xf32>
    %c9_151 = arith.constant 9 : index
    %564 = memref.load %arg8[%c9_151] : memref<72xf32, #tpu.memory_space<smem>>
    %565 = vector.broadcast %564 : f32 to vector<16x16xf32>
    %566 = arith.mulf %565, %563 : vector<16x16xf32>
    %567 = arith.addf %549, %566 : vector<16x16xf32>
    %c27_152 = arith.constant 27 : index
    %568 = memref.load %arg8[%c27_152] : memref<72xf32, #tpu.memory_space<smem>>
    %569 = vector.broadcast %568 : f32 to vector<16x16xf32>
    %570 = arith.mulf %569, %563 : vector<16x16xf32>
    %571 = arith.addf %553, %570 : vector<16x16xf32>
    %c45_153 = arith.constant 45 : index
    %572 = memref.load %arg8[%c45_153] : memref<72xf32, #tpu.memory_space<smem>>
    %573 = vector.broadcast %572 : f32 to vector<16x16xf32>
    %574 = arith.mulf %573, %563 : vector<16x16xf32>
    %575 = arith.addf %557, %574 : vector<16x16xf32>
    %c63_154 = arith.constant 63 : index
    %576 = memref.load %arg8[%c63_154] : memref<72xf32, #tpu.memory_space<smem>>
    %577 = vector.broadcast %576 : f32 to vector<16x16xf32>
    %578 = arith.mulf %577, %563 : vector<16x16xf32>
    %579 = arith.addf %561, %578 : vector<16x16xf32>
    %c10_155 = arith.constant 10 : index
    %580 = memref.load %arg8[%c10_155] : memref<72xf32, #tpu.memory_space<smem>>
    %581 = vector.broadcast %580 : f32 to vector<16x16xf32>
    %582 = arith.mulf %581, %562 : vector<16x16xf32>
    %583 = arith.addf %567, %582 : vector<16x16xf32>
    %c28_156 = arith.constant 28 : index
    %584 = memref.load %arg8[%c28_156] : memref<72xf32, #tpu.memory_space<smem>>
    %585 = vector.broadcast %584 : f32 to vector<16x16xf32>
    %586 = arith.mulf %585, %562 : vector<16x16xf32>
    %587 = arith.addf %571, %586 : vector<16x16xf32>
    %c46_157 = arith.constant 46 : index
    %588 = memref.load %arg8[%c46_157] : memref<72xf32, #tpu.memory_space<smem>>
    %589 = vector.broadcast %588 : f32 to vector<16x16xf32>
    %590 = arith.mulf %589, %562 : vector<16x16xf32>
    %591 = arith.addf %575, %590 : vector<16x16xf32>
    %c64_158 = arith.constant 64 : index
    %592 = memref.load %arg8[%c64_158] : memref<72xf32, #tpu.memory_space<smem>>
    %593 = vector.broadcast %592 : f32 to vector<16x16xf32>
    %594 = arith.mulf %593, %562 : vector<16x16xf32>
    %595 = arith.addf %579, %594 : vector<16x16xf32>
    %cst_159 = arith.constant dense<0.000000e+00> : vector<16x16xf32>
    %596 = tpu.matmul %562, %9, %cst_159 {dimension_numbers = #tpu.dot_dimension_numbers<[1], [0], [0], [1], [0, 0, 1, 1], [], []>} : vector<16x16xf32>, vector<16x16xf32>, vector<16x16xf32> -> vector<16x16xf32>
    %c11_160 = arith.constant 11 : index
    %597 = memref.load %arg8[%c11_160] : memref<72xf32, #tpu.memory_space<smem>>
    %598 = vector.broadcast %597 : f32 to vector<16x16xf32>
    %599 = arith.mulf %598, %596 : vector<16x16xf32>
    %600 = arith.addf %583, %599 : vector<16x16xf32>
    %c29_161 = arith.constant 29 : index
    %601 = memref.load %arg8[%c29_161] : memref<72xf32, #tpu.memory_space<smem>>
    %602 = vector.broadcast %601 : f32 to vector<16x16xf32>
    %603 = arith.mulf %602, %596 : vector<16x16xf32>
    %604 = arith.addf %587, %603 : vector<16x16xf32>
    %c47_162 = arith.constant 47 : index
    %605 = memref.load %arg8[%c47_162] : memref<72xf32, #tpu.memory_space<smem>>
    %606 = vector.broadcast %605 : f32 to vector<16x16xf32>
    %607 = arith.mulf %606, %596 : vector<16x16xf32>
    %608 = arith.addf %591, %607 : vector<16x16xf32>
    %c65_163 = arith.constant 65 : index
    %609 = memref.load %arg8[%c65_163] : memref<72xf32, #tpu.memory_space<smem>>
    %610 = vector.broadcast %609 : f32 to vector<16x16xf32>
    %611 = arith.mulf %610, %596 : vector<16x16xf32>
    %612 = arith.addf %595, %611 : vector<16x16xf32>
    %cst_164 = arith.constant dense<0.000000e+00> : vector<16x16xf32>
    %613 = tpu.matmul %405, %7, %cst_164 {dimension_numbers = #tpu.dot_dimension_numbers<[1], [0], [0], [1], [0, 0, 1, 1], [], []>} : vector<16x16xf32>, vector<16x16xf32>, vector<16x16xf32> -> vector<16x16xf32>
    %c12_165 = arith.constant 12 : index
    %614 = memref.load %arg8[%c12_165] : memref<72xf32, #tpu.memory_space<smem>>
    %615 = vector.broadcast %614 : f32 to vector<16x16xf32>
    %616 = arith.mulf %615, %613 : vector<16x16xf32>
    %617 = arith.addf %600, %616 : vector<16x16xf32>
    %c30_166 = arith.constant 30 : index
    %618 = memref.load %arg8[%c30_166] : memref<72xf32, #tpu.memory_space<smem>>
    %619 = vector.broadcast %618 : f32 to vector<16x16xf32>
    %620 = arith.mulf %619, %613 : vector<16x16xf32>
    %621 = arith.addf %604, %620 : vector<16x16xf32>
    %c48_167 = arith.constant 48 : index
    %622 = memref.load %arg8[%c48_167] : memref<72xf32, #tpu.memory_space<smem>>
    %623 = vector.broadcast %622 : f32 to vector<16x16xf32>
    %624 = arith.mulf %623, %613 : vector<16x16xf32>
    %625 = arith.addf %608, %624 : vector<16x16xf32>
    %c66_168 = arith.constant 66 : index
    %626 = memref.load %arg8[%c66_168] : memref<72xf32, #tpu.memory_space<smem>>
    %627 = vector.broadcast %626 : f32 to vector<16x16xf32>
    %628 = arith.mulf %627, %613 : vector<16x16xf32>
    %629 = arith.addf %612, %628 : vector<16x16xf32>
    %c13_169 = arith.constant 13 : index
    %630 = memref.load %arg8[%c13_169] : memref<72xf32, #tpu.memory_space<smem>>
    %631 = vector.broadcast %630 : f32 to vector<16x16xf32>
    %632 = arith.mulf %631, %405 : vector<16x16xf32>
    %633 = arith.addf %617, %632 : vector<16x16xf32>
    %c31_170 = arith.constant 31 : index
    %634 = memref.load %arg8[%c31_170] : memref<72xf32, #tpu.memory_space<smem>>
    %635 = vector.broadcast %634 : f32 to vector<16x16xf32>
    %636 = arith.mulf %635, %405 : vector<16x16xf32>
    %637 = arith.addf %621, %636 : vector<16x16xf32>
    %c49_171 = arith.constant 49 : index
    %638 = memref.load %arg8[%c49_171] : memref<72xf32, #tpu.memory_space<smem>>
    %639 = vector.broadcast %638 : f32 to vector<16x16xf32>
    %640 = arith.mulf %639, %405 : vector<16x16xf32>
    %641 = arith.addf %625, %640 : vector<16x16xf32>
    %c67_172 = arith.constant 67 : index
    %642 = memref.load %arg8[%c67_172] : memref<72xf32, #tpu.memory_space<smem>>
    %643 = vector.broadcast %642 : f32 to vector<16x16xf32>
    %644 = arith.mulf %643, %405 : vector<16x16xf32>
    %645 = arith.addf %629, %644 : vector<16x16xf32>
    %cst_173 = arith.constant dense<0.000000e+00> : vector<16x16xf32>
    %646 = tpu.matmul %405, %9, %cst_173 {dimension_numbers = #tpu.dot_dimension_numbers<[1], [0], [0], [1], [0, 0, 1, 1], [], []>} : vector<16x16xf32>, vector<16x16xf32>, vector<16x16xf32> -> vector<16x16xf32>
    %c14_174 = arith.constant 14 : index
    %647 = memref.load %arg8[%c14_174] : memref<72xf32, #tpu.memory_space<smem>>
    %648 = vector.broadcast %647 : f32 to vector<16x16xf32>
    %649 = arith.mulf %648, %646 : vector<16x16xf32>
    %650 = arith.addf %633, %649 : vector<16x16xf32>
    %c32_175 = arith.constant 32 : index
    %651 = memref.load %arg8[%c32_175] : memref<72xf32, #tpu.memory_space<smem>>
    %652 = vector.broadcast %651 : f32 to vector<16x16xf32>
    %653 = arith.mulf %652, %646 : vector<16x16xf32>
    %654 = arith.addf %637, %653 : vector<16x16xf32>
    %c50_176 = arith.constant 50 : index
    %655 = memref.load %arg8[%c50_176] : memref<72xf32, #tpu.memory_space<smem>>
    %656 = vector.broadcast %655 : f32 to vector<16x16xf32>
    %657 = arith.mulf %656, %646 : vector<16x16xf32>
    %658 = arith.addf %641, %657 : vector<16x16xf32>
    %c68_177 = arith.constant 68 : index
    %659 = memref.load %arg8[%c68_177] : memref<72xf32, #tpu.memory_space<smem>>
    %660 = vector.broadcast %659 : f32 to vector<16x16xf32>
    %661 = arith.mulf %660, %646 : vector<16x16xf32>
    %662 = arith.addf %645, %661 : vector<16x16xf32>
    %cst_178 = arith.constant dense<0.000000e+00> : vector<16x16xf32>
    %663 = tpu.matmul %5, %405, %cst_178 {dimension_numbers = #tpu.dot_dimension_numbers<[1], [0], [0], [1], [0, 0, 1, 1], [], []>} : vector<16x16xf32>, vector<16x16xf32>, vector<16x16xf32> -> vector<16x16xf32>
    %cst_179 = arith.constant dense<0.000000e+00> : vector<16x16xf32>
    %664 = tpu.matmul %663, %7, %cst_179 {dimension_numbers = #tpu.dot_dimension_numbers<[1], [0], [0], [1], [0, 0, 1, 1], [], []>} : vector<16x16xf32>, vector<16x16xf32>, vector<16x16xf32> -> vector<16x16xf32>
    %c15_180 = arith.constant 15 : index
    %665 = memref.load %arg8[%c15_180] : memref<72xf32, #tpu.memory_space<smem>>
    %666 = vector.broadcast %665 : f32 to vector<16x16xf32>
    %667 = arith.mulf %666, %664 : vector<16x16xf32>
    %668 = arith.addf %650, %667 : vector<16x16xf32>
    %c33_181 = arith.constant 33 : index
    %669 = memref.load %arg8[%c33_181] : memref<72xf32, #tpu.memory_space<smem>>
    %670 = vector.broadcast %669 : f32 to vector<16x16xf32>
    %671 = arith.mulf %670, %664 : vector<16x16xf32>
    %672 = arith.addf %654, %671 : vector<16x16xf32>
    %c51_182 = arith.constant 51 : index
    %673 = memref.load %arg8[%c51_182] : memref<72xf32, #tpu.memory_space<smem>>
    %674 = vector.broadcast %673 : f32 to vector<16x16xf32>
    %675 = arith.mulf %674, %664 : vector<16x16xf32>
    %676 = arith.addf %658, %675 : vector<16x16xf32>
    %c69_183 = arith.constant 69 : index
    %677 = memref.load %arg8[%c69_183] : memref<72xf32, #tpu.memory_space<smem>>
    %678 = vector.broadcast %677 : f32 to vector<16x16xf32>
    %679 = arith.mulf %678, %664 : vector<16x16xf32>
    %680 = arith.addf %662, %679 : vector<16x16xf32>
    %c16_184 = arith.constant 16 : index
    %681 = memref.load %arg8[%c16_184] : memref<72xf32, #tpu.memory_space<smem>>
    %682 = vector.broadcast %681 : f32 to vector<16x16xf32>
    %683 = arith.mulf %682, %663 : vector<16x16xf32>
    %684 = arith.addf %668, %683 : vector<16x16xf32>
    %c34_185 = arith.constant 34 : index
    %685 = memref.load %arg8[%c34_185] : memref<72xf32, #tpu.memory_space<smem>>
    %686 = vector.broadcast %685 : f32 to vector<16x16xf32>
    %687 = arith.mulf %686, %663 : vector<16x16xf32>
    %688 = arith.addf %672, %687 : vector<16x16xf32>
    %c52_186 = arith.constant 52 : index
    %689 = memref.load %arg8[%c52_186] : memref<72xf32, #tpu.memory_space<smem>>
    %690 = vector.broadcast %689 : f32 to vector<16x16xf32>
    %691 = arith.mulf %690, %663 : vector<16x16xf32>
    %692 = arith.addf %676, %691 : vector<16x16xf32>
    %c70_187 = arith.constant 70 : index
    %693 = memref.load %arg8[%c70_187] : memref<72xf32, #tpu.memory_space<smem>>
    %694 = vector.broadcast %693 : f32 to vector<16x16xf32>
    %695 = arith.mulf %694, %663 : vector<16x16xf32>
    %696 = arith.addf %680, %695 : vector<16x16xf32>
    %cst_188 = arith.constant dense<0.000000e+00> : vector<16x16xf32>
    %697 = tpu.matmul %663, %9, %cst_188 {dimension_numbers = #tpu.dot_dimension_numbers<[1], [0], [0], [1], [0, 0, 1, 1], [], []>} : vector<16x16xf32>, vector<16x16xf32>, vector<16x16xf32> -> vector<16x16xf32>
    %c17_189 = arith.constant 17 : index
    %698 = memref.load %arg8[%c17_189] : memref<72xf32, #tpu.memory_space<smem>>
    %699 = vector.broadcast %698 : f32 to vector<16x16xf32>
    %700 = arith.mulf %699, %697 : vector<16x16xf32>
    %701 = arith.addf %684, %700 : vector<16x16xf32>
    %c35_190 = arith.constant 35 : index
    %702 = memref.load %arg8[%c35_190] : memref<72xf32, #tpu.memory_space<smem>>
    %703 = vector.broadcast %702 : f32 to vector<16x16xf32>
    %704 = arith.mulf %703, %697 : vector<16x16xf32>
    %705 = arith.addf %688, %704 : vector<16x16xf32>
    %c53_191 = arith.constant 53 : index
    %706 = memref.load %arg8[%c53_191] : memref<72xf32, #tpu.memory_space<smem>>
    %707 = vector.broadcast %706 : f32 to vector<16x16xf32>
    %708 = arith.mulf %707, %697 : vector<16x16xf32>
    %709 = arith.addf %692, %708 : vector<16x16xf32>
    %c71_192 = arith.constant 71 : index
    %710 = memref.load %arg8[%c71_192] : memref<72xf32, #tpu.memory_space<smem>>
    %711 = vector.broadcast %710 : f32 to vector<16x16xf32>
    %712 = arith.mulf %711, %697 : vector<16x16xf32>
    %713 = arith.addf %696, %712 : vector<16x16xf32>
    %714 = vector.shape_cast %701 : vector<16x16xf32> to vector<1x16x16xf32>
    %cst_193 = arith.constant dense<0.000000e+00> : vector<1xf32>
    %715 = vector.multi_reduction <add>, %714, %cst_193 [1, 2] : vector<1x16x16xf32> to vector<1xf32>
    %716 = vector.shape_cast %715 : vector<1xf32> to vector<1x1x1xf32>
    %717 = vector.extract %716[0, 0, 0] : f32 from vector<1x1x1xf32>
    %cst_194 = arith.constant 2.560000e+02 : f32
    %718 = arith.divf %717, %cst_194 : f32
    %719 = vector.broadcast %718 : f32 to vector<16x16xf32>
    %720 = arith.subf %701, %719 : vector<16x16xf32>
    %721 = vector.broadcast %718 : f32 to vector<16x16xf32>
    %722 = arith.subf %701, %721 : vector<16x16xf32>
    %723 = arith.mulf %720, %722 : vector<16x16xf32>
    %724 = vector.shape_cast %723 : vector<16x16xf32> to vector<1x16x16xf32>
    %cst_195 = arith.constant dense<0.000000e+00> : vector<1xf32>
    %725 = vector.multi_reduction <add>, %724, %cst_195 [1, 2] : vector<1x16x16xf32> to vector<1xf32>
    %726 = vector.shape_cast %725 : vector<1xf32> to vector<1x1x1xf32>
    %727 = vector.extract %726[0, 0, 0] : f32 from vector<1x1x1xf32>
    %cst_196 = arith.constant 2.560000e+02 : f32
    %728 = arith.divf %727, %cst_196 : f32
    %729 = vector.broadcast %718 : f32 to vector<16x16xf32>
    %730 = arith.subf %701, %729 : vector<16x16xf32>
    %cst_197 = arith.constant 9.99999974E-6 : f32
    %731 = arith.addf %728, %cst_197 : f32
    %732 = math.rsqrt %731 : f32
    %733 = vector.broadcast %732 : f32 to vector<16x16xf32>
    %734 = arith.mulf %730, %733 : vector<16x16xf32>
    %cst_198 = arith.constant 0.000000e+00 : f32
    %735 = vector.broadcast %cst_198 : f32 to vector<16x16xf32>
    %736 = arith.maximumf %734, %735 : vector<16x16xf32>
    %737 = vector.shape_cast %705 : vector<16x16xf32> to vector<1x16x16xf32>
    %cst_199 = arith.constant dense<0.000000e+00> : vector<1xf32>
    %738 = vector.multi_reduction <add>, %737, %cst_199 [1, 2] : vector<1x16x16xf32> to vector<1xf32>
    %739 = vector.shape_cast %738 : vector<1xf32> to vector<1x1x1xf32>
    %740 = vector.extract %739[0, 0, 0] : f32 from vector<1x1x1xf32>
    %cst_200 = arith.constant 2.560000e+02 : f32
    %741 = arith.divf %740, %cst_200 : f32
    %742 = vector.broadcast %741 : f32 to vector<16x16xf32>
    %743 = arith.subf %705, %742 : vector<16x16xf32>
    %744 = vector.broadcast %741 : f32 to vector<16x16xf32>
    %745 = arith.subf %705, %744 : vector<16x16xf32>
    %746 = arith.mulf %743, %745 : vector<16x16xf32>
    %747 = vector.shape_cast %746 : vector<16x16xf32> to vector<1x16x16xf32>
    %cst_201 = arith.constant dense<0.000000e+00> : vector<1xf32>
    %748 = vector.multi_reduction <add>, %747, %cst_201 [1, 2] : vector<1x16x16xf32> to vector<1xf32>
    %749 = vector.shape_cast %748 : vector<1xf32> to vector<1x1x1xf32>
    %750 = vector.extract %749[0, 0, 0] : f32 from vector<1x1x1xf32>
    %cst_202 = arith.constant 2.560000e+02 : f32
    %751 = arith.divf %750, %cst_202 : f32
    %752 = vector.broadcast %741 : f32 to vector<16x16xf32>
    %753 = arith.subf %705, %752 : vector<16x16xf32>
    %cst_203 = arith.constant 9.99999974E-6 : f32
    %754 = arith.addf %751, %cst_203 : f32
    %755 = math.rsqrt %754 : f32
    %756 = vector.broadcast %755 : f32 to vector<16x16xf32>
    %757 = arith.mulf %753, %756 : vector<16x16xf32>
    %cst_204 = arith.constant 0.000000e+00 : f32
    %758 = vector.broadcast %cst_204 : f32 to vector<16x16xf32>
    %759 = arith.maximumf %757, %758 : vector<16x16xf32>
    %760 = vector.shape_cast %709 : vector<16x16xf32> to vector<1x16x16xf32>
    %cst_205 = arith.constant dense<0.000000e+00> : vector<1xf32>
    %761 = vector.multi_reduction <add>, %760, %cst_205 [1, 2] : vector<1x16x16xf32> to vector<1xf32>
    %762 = vector.shape_cast %761 : vector<1xf32> to vector<1x1x1xf32>
    %763 = vector.extract %762[0, 0, 0] : f32 from vector<1x1x1xf32>
    %cst_206 = arith.constant 2.560000e+02 : f32
    %764 = arith.divf %763, %cst_206 : f32
    %765 = vector.broadcast %764 : f32 to vector<16x16xf32>
    %766 = arith.subf %709, %765 : vector<16x16xf32>
    %767 = vector.broadcast %764 : f32 to vector<16x16xf32>
    %768 = arith.subf %709, %767 : vector<16x16xf32>
    %769 = arith.mulf %766, %768 : vector<16x16xf32>
    %770 = vector.shape_cast %769 : vector<16x16xf32> to vector<1x16x16xf32>
    %cst_207 = arith.constant dense<0.000000e+00> : vector<1xf32>
    %771 = vector.multi_reduction <add>, %770, %cst_207 [1, 2] : vector<1x16x16xf32> to vector<1xf32>
    %772 = vector.shape_cast %771 : vector<1xf32> to vector<1x1x1xf32>
    %773 = vector.extract %772[0, 0, 0] : f32 from vector<1x1x1xf32>
    %cst_208 = arith.constant 2.560000e+02 : f32
    %774 = arith.divf %773, %cst_208 : f32
    %775 = vector.broadcast %764 : f32 to vector<16x16xf32>
    %776 = arith.subf %709, %775 : vector<16x16xf32>
    %cst_209 = arith.constant 9.99999974E-6 : f32
    %777 = arith.addf %774, %cst_209 : f32
    %778 = math.rsqrt %777 : f32
    %779 = vector.broadcast %778 : f32 to vector<16x16xf32>
    %780 = arith.mulf %776, %779 : vector<16x16xf32>
    %cst_210 = arith.constant 0.000000e+00 : f32
    %781 = vector.broadcast %cst_210 : f32 to vector<16x16xf32>
    %782 = arith.maximumf %780, %781 : vector<16x16xf32>
    %783 = vector.shape_cast %713 : vector<16x16xf32> to vector<1x16x16xf32>
    %cst_211 = arith.constant dense<0.000000e+00> : vector<1xf32>
    %784 = vector.multi_reduction <add>, %783, %cst_211 [1, 2] : vector<1x16x16xf32> to vector<1xf32>
    %785 = vector.shape_cast %784 : vector<1xf32> to vector<1x1x1xf32>
    %786 = vector.extract %785[0, 0, 0] : f32 from vector<1x1x1xf32>
    %cst_212 = arith.constant 2.560000e+02 : f32
    %787 = arith.divf %786, %cst_212 : f32
    %788 = vector.broadcast %787 : f32 to vector<16x16xf32>
    %789 = arith.subf %713, %788 : vector<16x16xf32>
    %790 = vector.broadcast %787 : f32 to vector<16x16xf32>
    %791 = arith.subf %713, %790 : vector<16x16xf32>
    %792 = arith.mulf %789, %791 : vector<16x16xf32>
    %793 = vector.shape_cast %792 : vector<16x16xf32> to vector<1x16x16xf32>
    %cst_213 = arith.constant dense<0.000000e+00> : vector<1xf32>
    %794 = vector.multi_reduction <add>, %793, %cst_213 [1, 2] : vector<1x16x16xf32> to vector<1xf32>
    %795 = vector.shape_cast %794 : vector<1xf32> to vector<1x1x1xf32>
    %796 = vector.extract %795[0, 0, 0] : f32 from vector<1x1x1xf32>
    %cst_214 = arith.constant 2.560000e+02 : f32
    %797 = arith.divf %796, %cst_214 : f32
    %798 = vector.broadcast %787 : f32 to vector<16x16xf32>
    %799 = arith.subf %713, %798 : vector<16x16xf32>
    %cst_215 = arith.constant 9.99999974E-6 : f32
    %800 = arith.addf %797, %cst_215 : f32
    %801 = math.rsqrt %800 : f32
    %802 = vector.broadcast %801 : f32 to vector<16x16xf32>
    %803 = arith.mulf %799, %802 : vector<16x16xf32>
    %cst_216 = arith.constant 0.000000e+00 : f32
    %804 = vector.broadcast %cst_216 : f32 to vector<16x16xf32>
    %805 = arith.maximumf %803, %804 : vector<16x16xf32>
    %c0_217 = arith.constant 0 : index
    %c0_218 = arith.constant 0 : index
    %c0_219 = arith.constant 0 : index
    %c0_220 = arith.constant 0 : index
    %806 = vector.load %arg9[%c0_217, %c0_218, %c0_219, %c0_220] : memref<1x4x16x16xf32, #tpu.memory_space<vmem>>, vector<1x1x16x16xf32>
    %807 = vector.shape_cast %806 : vector<1x1x16x16xf32> to vector<16x16xf32>
    %808 = vector.shape_cast %736 : vector<16x16xf32> to vector<1x1x16x16xf32>
    tpu.vector_store %arg9[%c0_217, %c0_218, %c0_219, %c0_220], %808 {strides = array<i32>} : memref<1x4x16x16xf32, #tpu.memory_space<vmem>>, vector<1x1x16x16xf32>,
    %c0_221 = arith.constant 0 : index
    %c1_222 = arith.constant 1 : index
    %c0_223 = arith.constant 0 : index
    %c0_224 = arith.constant 0 : index
    %809 = vector.load %arg9[%c0_221, %c1_222, %c0_223, %c0_224] : memref<1x4x16x16xf32, #tpu.memory_space<vmem>>, vector<1x1x16x16xf32>
    %810 = vector.shape_cast %809 : vector<1x1x16x16xf32> to vector<16x16xf32>
    %811 = vector.shape_cast %759 : vector<16x16xf32> to vector<1x1x16x16xf32>
    tpu.vector_store %arg9[%c0_221, %c1_222, %c0_223, %c0_224], %811 {strides = array<i32>} : memref<1x4x16x16xf32, #tpu.memory_space<vmem>>, vector<1x1x16x16xf32>,
    %c0_225 = arith.constant 0 : index
    %c2_226 = arith.constant 2 : index
    %c0_227 = arith.constant 0 : index
    %c0_228 = arith.constant 0 : index
    %812 = vector.load %arg9[%c0_225, %c2_226, %c0_227, %c0_228] : memref<1x4x16x16xf32, #tpu.memory_space<vmem>>, vector<1x1x16x16xf32>
    %813 = vector.shape_cast %812 : vector<1x1x16x16xf32> to vector<16x16xf32>
    %814 = vector.shape_cast %782 : vector<16x16xf32> to vector<1x1x16x16xf32>
    tpu.vector_store %arg9[%c0_225, %c2_226, %c0_227, %c0_228], %814 {strides = array<i32>} : memref<1x4x16x16xf32, #tpu.memory_space<vmem>>, vector<1x1x16x16xf32>,
    %c0_229 = arith.constant 0 : index
    %c3_230 = arith.constant 3 : index
    %c0_231 = arith.constant 0 : index
    %c0_232 = arith.constant 0 : index
    %815 = vector.load %arg9[%c0_229, %c3_230, %c0_231, %c0_232] : memref<1x4x16x16xf32, #tpu.memory_space<vmem>>, vector<1x1x16x16xf32>
    %816 = vector.shape_cast %815 : vector<1x1x16x16xf32> to vector<16x16xf32>
    %817 = vector.shape_cast %805 : vector<16x16xf32> to vector<1x1x16x16xf32>
    tpu.vector_store %arg9[%c0_229, %c3_230, %c0_231, %c0_232], %817 {strides = array<i32>} : memref<1x4x16x16xf32, #tpu.memory_space<vmem>>, vector<1x1x16x16xf32>,
    return
  }
  func.func @transform_0(%arg0: i32) -> (i32, i32, i32, i32) {
    %c0_i32 = arith.constant 0 : i32
    %c0_i32_0 = arith.constant 0 : i32
    %c0_i32_1 = arith.constant 0 : i32
    %c0_i32_2 = arith.constant 0 : i32
    return %arg0, %c0_i32, %c0_i32_0, %c0_i32_1 : i32, i32, i32, i32
  }
  func.func @transform_1(%arg0: i32) -> (i32, i32, i32, i32) {
    %c0_i32 = arith.constant 0 : i32
    %c0_i32_0 = arith.constant 0 : i32
    %c0_i32_1 = arith.constant 0 : i32
    %c0_i32_2 = arith.constant 0 : i32
    return %arg0, %c0_i32, %c0_i32_0, %c0_i32_1 : i32, i32, i32, i32
  }
  func.func @transform_2(%arg0: i32) -> (i32, i32) {
    %c0_i32 = arith.constant 0 : i32
    %c0_i32_0 = arith.constant 0 : i32
    %c0_i32_1 = arith.constant 0 : i32
    return %c0_i32, %c0_i32_0 : i32, i32
  }
  func.func @transform_3(%arg0: i32) -> (i32, i32) {
    %c0_i32 = arith.constant 0 : i32
    %c0_i32_0 = arith.constant 0 : i32
    %c0_i32_1 = arith.constant 0 : i32
    return %c0_i32, %c0_i32_0 : i32, i32
  }
  func.func @transform_4(%arg0: i32) -> (i32, i32, i32) {
    %c0_i32 = arith.constant 0 : i32
    %c0_i32_0 = arith.constant 0 : i32
    %c0_i32_1 = arith.constant 0 : i32
    %c0_i32_2 = arith.constant 0 : i32
    return %c0_i32, %c0_i32_0, %c0_i32_1 : i32, i32, i32
  }
  func.func @transform_5(%arg0: i32) -> (i32, i32, i32) {
    %c0_i32 = arith.constant 0 : i32
    %c0_i32_0 = arith.constant 0 : i32
    %c0_i32_1 = arith.constant 0 : i32
    %c0_i32_2 = arith.constant 0 : i32
    return %c0_i32, %c0_i32_0, %c0_i32_1 : i32, i32, i32
  }
  func.func @transform_6(%arg0: i32) -> i32 {
    %c0_i32 = arith.constant 0 : i32
    %c0_i32_0 = arith.constant 0 : i32
    return %c0_i32 : i32
  }
  func.func @transform_7(%arg0: i32) -> i32 {
    %c0_i32 = arith.constant 0 : i32
    %c0_i32_0 = arith.constant 0 : i32
    return %c0_i32 : i32
  }
  func.func @transform_8(%arg0: i32) -> (i32, i32, i32, i32) {
    %c0_i32 = arith.constant 0 : i32
    %c0_i32_0 = arith.constant 0 : i32
    %c0_i32_1 = arith.constant 0 : i32
    %c0_i32_2 = arith.constant 0 : i32
    return %arg0, %c0_i32, %c0_i32_0, %c0_i32_1 : i32, i32, i32, i32
  }
}

</mosaic_0001>

<bundles_post_ra>
// kernel: tpu_custom_call.1
= control target key start
LH: loop header
LB: loop body
LE: loop exit
PB: predicated region body
PF: predicated region fallthrough
CT: control target
= control target key end

     0   :  { %s8958_s0 = inlined_call_operand.hbm [shape: f32[2,4,8,8], index: 0, kind: input, shape index: {}]   ;;  %s8959_s1 = inlined_call_operand.hbm [shape: f32[2,4,16,16], index: 1, kind: input, shape index: {}]   ;;  %s8960_s2 = inlined_call_operand.vmem [shape: f32[16,8], index: 2, kind: input, shape index: {}]   ;;  %s8961_s3 = inlined_call_operand.vmem [shape: f32[8,16], index: 3, kind: input, shape index: {}]   ;;  %s8962_s4 = inlined_call_operand.hbm [shape: f32[3,16,16], index: 4, kind: input, shape index: {}]   ;;  %s8963_s5 = inlined_call_operand.hbm [shape: f32[3,16,16], index: 5, kind: input, shape index: {}]   ;;  %s8964_s6 = inlined_call_operand.vmem [shape: f32[72], index: 6, kind: input, shape index: {}]   ;;  %s8965_s7 = inlined_call_operand.vmem [shape: f32[72], index: 7, kind: input, shape index: {}]   ;;  %s8966_s8 = inlined_call_operand.hbm [shape: f32[2,4,16,16], index: 8, kind: output, shape index: {}]  }
   0x1   :  { %8981 = sst [smem:[#allocation26_spill]] %s8958_s0 }
   0x2   :  { %8982 = sst [smem:[#allocation27_spill]] %s8959_s1 }
   0x3   :  { %8983 = sst [smem:[#allocation28_spill]] %s8960_s2 }
   0x4   :  { %8984 = sst [smem:[#allocation29_spill]] %s8961_s3 }
   0x5   :  { %8985 = sst [smem:[#allocation30_spill]] %s8962_s4 }
   0x6   :  { %8986 = sst [smem:[#allocation31_spill]] %s8963_s5 }
   0x7   :  { %8987 = sst [smem:[#allocation32_spill]] %s8964_s6 }
   0x8   :  { %8988 = sst [smem:[#allocation33_spill]] %s8965_s7 }
   0x9   :  { %13 = vsyncpa [#allocation3], 0 }
   0xa   :  { %15 = vsyncpa [#allocation3 + $0x1], 0 }
   0xb   :  { %16 = vsyncpa [#allocation7], 0 }
   0xc   :  { %18 = vsyncpa [#allocation7 + $0x1], 0 }
   0xd   :  { %19 = vsyncpa [#allocation10], 0 }
   0xe   :  { %20 = vsyncpa [#allocation5], 0 }
   0xf   :  { %21 = vsyncpa [#allocation13], 0 }
  0x10   :  { %22 = vsyncpa [#allocation4], 0 }
  0x11   :  { %24 = vsyncpa [#allocation4 + $0x1], 0  ;;  %s7429_s27 = smov 0   ;;  %s7431_s28 = smov 0  }
  0x12   :  { %s7433_s29 = smov 0   ;;  %s7435_s30 = smov 0  }
  0x13 LB: > { %8989 = sst [smem:[#allocation22_spill]] %s7363_s28  ;;  %s7450_s9 = sadd.s32 4294967295, %s7371_s30   ;;  %s7371_s30 = sphi %s7435_s30, %s9027_s30   ;;  %s7367_s29 = sphi %s7433_s29, %s9030_s29   ;;  %s7363_s28 = sphi %s7431_s28, %s9029_s28   ;;  %s7359_s27 = sphi %s7429_s27, %s9028_s27  }
  0x14   : > { %8990 = sst [smem:[#allocation23_spill]] %s7367_s29  ;;  %s6101_s10 = sadd.s32 4294967294, %s7371_s30  }
  0x15   : > { %p50_p0 = scmp.ne.s32.totalorder %s7363_s28, %s7359_s27  ;;  %p8967_p1 = scmp.eq.s32.totalorder %s7450_s9, 0 }
  0x16   : > { %p232_p3 = scmp.eq.s32.totalorder %s6101_s10, 1  ;;  %p6102_p5 = scmp.ge.s32.totalorder %s7371_s30, 1 }
  0x17   : > { %p7459_p4 = por %p8967_p1, %p50_p0  ;;  %p239_p7 = scmp.lt.s32.totalorder %s7371_s30, 3 }
  0x18   : > { %p7464_p6 = por %p232_p3, %p50_p0  ;;  %s7373_s14 = smov [#allocation8]  }
  0x19   : > { %s8991_s11 = scalar_select %p7459_p4, 1, 0 }
  0x1a   : > { %s8992_s12 = scalar_select %p7464_p6, 1, 0 }
  0x1b   : > { %p7469_p8 = pnand %p6102_p5, %p239_p7  ;;  %s257_s15 = sshll.u32 %s7373_s14, 4  ;;  %s258_s15 = int_to_ptr.vmem [resolvable:$true] %s257_s15 }
  0x1c   : > { %s7374_s17 = smov [#allocation9]   ;;  %s8995_s6 = sld [smem:[#allocation32_spill]] }
  0x1d   : > { %s8993_s13 = scalar_select %p7469_p8, 1, 0 }
  0x1e   : > { %p7049_p9 = pneg %p7469_p8  ;;  %s270_s18 = sshll.u32 %s7374_s17, 4  ;;  %s271_s18 = int_to_ptr.vmem [resolvable:$true] %s270_s18 }
  0x1f   : > { %s7160_s22 = scalar_lea.vmem %s258_s15, 768  ;;  %p7168_p5 = scmp.lt.s32.totalorder %s258_s15, %s258_s15 }
  0x20   : > { %p7478_p11 = pnand %p7049_p9, %p8967_p1  ;;  %p7161_p13 = scmp.ne.s32.totalorder %s258_s15, %s7160_s22 }
  0x21   : > { %p7169_p7 = scmp.lt.s32.totalorder %s7160_s22, %s7160_s22 }
  0x22   : > { %s284_s21 = sshll.u32 %s8995_s6, 4  ;;  %p7151_p12 = pneg %p7478_p11  ;;  %s7485_s21 = int_to_ptr.vmem [resolvable:$true] %s284_s21 }
  0x23   : > { %p7170_p9 = por %p7169_p7, %p7168_p5 }
  0x24   : > { %p7163_p0 = pnand %p7161_p13, %p7151_p12 }
  0x26   : > { %p7164_p3 = pneg %p7163_p0 }
  0x28   : > { %p7171_p10 = pnand %p7170_p9, %p7164_p3 }
  0x2a   : > { %7174 = shalt.err (!%p7171_p10)
}
  0x2b   : > { %s8970_s23 = smov 128   ;;  %s8972_s24 = smov 8  }
  0x2c   : > { %s8996_s4 = sld [smem:[#allocation30_spill]]  ;;  %s7186_s10 = scalar_lea.vmem %s271_s18, 768 }
  0x2d   : > { %p7187_p13 = scmp.ne.s32.totalorder %s271_s18, %s7186_s10  ;;  %p7194_p3 = scmp.lt.s32.totalorder %s271_s18, %s271_s18 }
  0x2e   : > { %p7195_p10 = scmp.lt.s32.totalorder %s7186_s10, %s7186_s10 }
  0x2f   : > { %p7189_p0 = pnand %p7187_p13, %p7151_p12 }
  0x30   : > { %p7196_p7 = por %p7195_p10, %p7194_p3 }
  0x31   : > { %p7190_p5 = pneg %p7189_p0 }
  0x32   : > { %7052 = dma.hbm_to_vmem [thread:$0]  (!%p7478_p11), %s8996_s4, 768, %s258_s15, [#allocation7], %s8970_s23, %s8970_s23, %s8972_s24  }
  0x33   : > { %p7197_p9 = pnand %p7196_p7, %p7190_p5 }
  0x35   : > { %7200 = shalt.err (!%p7197_p9)
}
  0x36   : > { %s8997_s5 = sld [smem:[#allocation31_spill]]  ;;  %s7201_s22 = scalar_lea.vmem %s7485_s21, 16 }
  0x37   : > { %s8998_s7 = sld [smem:[#allocation33_spill]]  ;;  %p7202_p13 = scmp.ne.s32.totalorder %s7485_s21, %s7201_s22 }
  0x38   : > { %p7209_p3 = scmp.lt.s32.totalorder %s7485_s21, %s7485_s21  ;;  %p7210_p10 = scmp.lt.s32.totalorder %s7201_s22, %s7201_s22 }
  0x39   : > { %p7204_p0 = pnand %p7202_p13, %p7151_p12 }
  0x3a   : > { %p7211_p7 = por %p7210_p10, %p7209_p3 }
  0x3b   : > { %p7205_p5 = pneg %p7204_p0 }
  0x3c   : > { %7055 = dma.hbm_to_vmem [thread:$0]  (!%p7478_p11), %s8997_s5, 768, %s271_s18, [#allocation10], %s8970_s23, %s8970_s23, %s8972_s24  }
  0x3d   : > { %s295_s20 = sshll.u32 %s8998_s7, 4  ;;  %p7212_p9 = pnand %p7211_p7, %p7205_p5  ;;  %s296_s20 = int_to_ptr.vmem [resolvable:$true] %s295_s20 }
  0x3f   : > { %7215 = shalt.err (!%p7212_p9)
}
  0x40   : > { %s7377_s25 = smov [#allocation11]   ;;  %s7216_s18 = scalar_lea.vmem %s296_s20, 16 }
  0x41   : > { %7058 = dma.vmem_to_smem (!%p7478_p11), %s7485_s21, 16, %s7377_s25, [#allocation5]  }
  0x42   : > { %p7217_p1 = scmp.ne.s32.totalorder %s296_s20, %s7216_s18  ;;  %p7224_p0 = scmp.lt.s32.totalorder %s296_s20, %s296_s20 }
  0x43   : > { %p7225_p6 = scmp.lt.s32.totalorder %s7216_s18, %s7216_s18 }
  0x44   : > { %p7219_p2 = pnand %p7217_p1, %p7151_p12 }
  0x45   : > { %p7226_p4 = por %p7225_p6, %p7224_p0 }
  0x46   : > { %p7220_p13 = pneg %p7219_p2 }
  0x48   : > { %p7227_p8 = pnand %p7226_p4, %p7220_p13 }
  0x4a   : > { %7230 = shalt.err (!%p7227_p8)
}
  0x4b   : > { %s7378_s26 = smov [#allocation12]   ;;  %s7530_s21 = sadd.s32 1, %s7371_s30  }
  0x4c   : > { %7061 = dma.vmem_to_smem (!%p7478_p11), %s296_s20, 16, %s7378_s26, [#allocation13]  }
  0x4d   : > { %8999 = sst [smem:[#allocation24_spill]] %s7530_s21  ;;  %s34_s10 = ssub.s32 %s7371_s30, %s7530_s21 }
  0x4e   : > { %p35_p1 = scmp.eq.s32.totalorder %s34_s10, 0  ;;  %s37_s14 = sadd.s32 1, %s7367_s29 }
  0x4f   : > { %p44_p2 = scmp.ne.s32.totalorder %s7367_s29, %s7363_s28  ;;  %p45_p4 = scmp.eq.s32.totalorder %s7371_s30, 0 }
  0x50   : > { %s7539_s16 = scalar_select %p35_p1, %s7367_s29, %s37_s14  }
  0x51   : > { %p46_p6 = por %p45_p4, %p44_p2  ;;  %p9001_p8 = scmp.eq.s32.totalorder %s7450_s9, 1 }
  0x52   : > { %9000 = sst [smem:[#allocation25_spill]] %s7539_s16  ;;  %p7077_p5 = scmp.lt.s32.totalorder %s7371_s30, 2 }
  0x53   : > { %p7543_p12 = por %p9001_p8, %p44_p2  ;;  %s7549_s15 = sand.u32 1, %s7367_s29  }
  0x54   : > { %s6108_s19 = sshll.u32 %s7549_s15, 5  ;;  %s6396_s20 = sshll.u32 %s7371_s30, 9 }
  0x55   : > { %s9003_s0 = sld [smem:[#allocation26_spill]]  ;;  %s310_s26 = scalar_lea.vmem [#allocation2], %s6108_s19 }
  0x56   : > { %s317_s10 = sshll.u32 %s310_s26, 4  ;;  %p7560_p11 = pnand %p7077_p5, %p46_p6  ;;  %s7558_s10 = int_to_ptr.vmem [resolvable:$true] %s317_s10 }
  0x57   : > { %s307_s4 = scalar_lea.sflag [#allocation3], %s7549_s15 }
  0x58   : > { %p7233_p10 = pneg %p7560_p11 }
  0x5b   : > { %s7556_s18 = scalar_lea.hbm %s9003_s0, %s6396_s20  ;;  %s7236_s22 = scalar_lea.hbm %s9003_s0, 1024 }
  0x5c   : > { %s7231_s5 = scalar_lea.hbm %s7556_s18, 512  ;;  %p7237_p13 = scmp.lt.s32.totalorder %s7556_s18, %s9003_s0 }
  0x5d   : > { %p7232_p3 = scmp.ne.s32.totalorder %s7556_s18, %s7231_s5  ;;  %p7238_p0 = scmp.lt.s32.totalorder %s7236_s22, %s7231_s5 }
  0x5f   : > { %p7234_p7 = pnand %p7233_p10, %p7232_p3  ;;  %p7239_p1 = por %p7238_p0, %p7237_p13 }
  0x61   : > { %p7235_p9 = pneg %p7234_p7 }
  0x63   : > { %p7240_p2 = pnand %p7239_p1, %p7235_p9 }
  0x65   : > { %7243 = shalt.err (!%p7240_p2)
}
  0x66   : > { %s7244_s23 = scalar_lea.vmem %s7558_s10, 512  ;;  %s7379_s19 = smov [#allocation2]  }
  0x67   : > { %p7245_p4 = scmp.ne.s32.totalorder %s7558_s10, %s7244_s23  ;;  %s7249_s20 = sshll.u32 %s7379_s19, 4  ;;  %s7250_s20 = int_to_ptr.vmem [resolvable:$false] %s7249_s20 }
  0x68   : > { %s7251_s24 = scalar_lea.vmem %s7250_s20, 1024  ;;  %p7252_p5 = scmp.lt.s32.totalorder %s7558_s10, %s7250_s20 }
  0x69   : > { %p7247_p6 = pnand %p7245_p4, %p7233_p10  ;;  %p7253_p3 = scmp.lt.s32.totalorder %s7251_s24, %s7244_s23 }
  0x6b   : > { %p7248_p8 = pneg %p7247_p6  ;;  %p7254_p7 = por %p7253_p3, %p7252_p5 }
  0x6d   : > { %p7255_p13 = pnand %p7254_p7, %p7248_p8 }
  0x6f   : > { %7258 = shalt.err (!%p7255_p13)
}
  0x70   : > { %s9005_s5 = smov 8   ;;  %s9006_s22 = smov 128  }
  0x71   : > { %7065 = dma.hbm_to_vmem [thread:$0]  (!%p7560_p11), %s7556_s18, 512, %s7558_s10, %s307_s4, %s9006_s22, %s9006_s22, %s9005_s5  }
  0x72   : > { %s6397_s25 = sshll.u32 %s7371_s30, 10  ;;  %s9007_s1 = sld [smem:[#allocation27_spill]] }
  0x73   : > { %s9008_s19 = sshll.u32 %s7549_s15, 6  ;;  %s9009_s6 = sand.u32 1, %s7371_s30  }
  0x74   : > { %s331_s20 = scalar_lea.vmem [#allocation6], %s9008_s19  ;;  %s328_s7 = scalar_lea.sflag [#allocation7], %s9009_s6 }
  0x75   : > { %s338_s0 = sshll.u32 %s331_s20, 4  ;;  %s7604_s0 = int_to_ptr.vmem [resolvable:$true] %s338_s0 }
  0x78   : > { %s7600_s24 = scalar_lea.hbm %s9007_s1, %s6397_s25  ;;  %s7264_s10 = scalar_lea.hbm %s9007_s1, 2048 }
  0x79   : > { %s7259_s16 = scalar_lea.hbm %s7600_s24, 1024  ;;  %p7265_p2 = scmp.lt.s32.totalorder %s7600_s24, %s9007_s1 }
  0x7a   : > { %p7260_p9 = scmp.ne.s32.totalorder %s7600_s24, %s7259_s16  ;;  %p7266_p4 = scmp.lt.s32.totalorder %s7264_s10, %s7259_s16 }
  0x7c   : > { %p7262_p0 = pnand %p7260_p9, %p7233_p10  ;;  %p7267_p6 = por %p7266_p4, %p7265_p2 }
  0x7e   : > { %p7263_p1 = pneg %p7262_p0 }
  0x80   : > { %p7268_p8 = pnand %p7267_p6, %p7263_p1 }
  0x82   : > { %7271 = shalt.err (!%p7268_p8)
}
  0x83   : > { %s7272_s6 = scalar_lea.vmem %s7604_s0, 1024  ;;  %s7380_s26 = smov [#allocation6]  }
  0x84   : > { %p7273_p5 = scmp.ne.s32.totalorder %s7604_s0, %s7272_s6  ;;  %s7277_s23 = sshll.u32 %s7380_s26, 4  ;;  %s7278_s23 = int_to_ptr.vmem [resolvable:$false] %s7277_s23 }
  0x85   : > { %s7279_s19 = scalar_lea.vmem %s7278_s23, 2048  ;;  %p7280_p13 = scmp.lt.s32.totalorder %s7604_s0, %s7278_s23 }
  0x86   : > { %p7275_p3 = pnand %p7273_p5, %p7233_p10  ;;  %p7281_p9 = scmp.lt.s32.totalorder %s7279_s19, %s7272_s6 }
  0x88   : > { %p7276_p7 = pneg %p7275_p3  ;;  %p7282_p0 = por %p7281_p9, %p7280_p13 }
  0x8a   : > { %p7283_p2 = pnand %p7282_p0, %p7276_p7 }
  0x8c   : > { %7286 = shalt.err (!%p7283_p2)
}
  0x8d   : > { %7068 = dma.hbm_to_vmem [thread:$0]  (!%p7560_p11), %s7600_s24, 1024, %s7604_s0, %s328_s7, %s9006_s22, %s9006_s22, %s9005_s5  }
  0x8e   : > { %p9010_p10 = scmp.ne.s32.totalorder %s8993_s13, 0 }
  0x8f   : > { %s7636_s16 = sand.u32 (!%p9010_p10), 1, %s7363_s28   ;;  %p9011_p1 = scmp.ne.s32.totalorder (!%p9010_p10), %s8991_s11, 0 }
  0x90   : > { %350 = sbr.rel (%p9010_p10) target bundleno = 5238 (0x1476), region = 52  ;;  %s6115_s20 = sshll.u32 (!%p9010_p10), %s7636_s16, 5 }
  0x91   : > { %s353_s4 = scalar_lea.sflag (!%p9010_p10), [#allocation3], %s7636_s16  ;;  %s7640_s18 = scalar_lea.vmem (!%p9010_p10), [#allocation2], %s6115_s20 }
  0x95   : > { %7330 = dma.done.wait (%p9011_p1), %s353_s4, 512  }
  0x96   : > { %7332 = vsyncadd (%p9011_p1), %s353_s4, 4294966784  ;;  %s361_s0 = sand.u32 1, %s7450_s9   ;;  %s8974_s7 = sshll.u32 %s7636_s16, 6 }
  0x97   : > { %s362_s13 = scalar_lea.sflag [#allocation7], %s361_s0  ;;  %s7650_s14 = scalar_lea.vmem [#allocation6], %s8974_s7 }
  0x98   : > { %7334 = dma.done.wait (%p9011_p1), %s362_s13, 1024  }
  0x99   : > { %7336 = vsyncadd (%p9011_p1), %s362_s13, 4294966272  ;;  %p9012_p11 = scmp.eq.s32.totalorder %s7450_s9, 0 }
  0x9b   : > { %7338 = dma.done.wait (%p9012_p11), [#allocation7], 768   ;;  %p9013_p4 = pmov %p9012_p11 }
  0x9d   : > { %7340 = vsyncadd (%p9013_p4), [#allocation7], 4294966528  ;;  %p9014_p6 = pmov %p9013_p4 }
  0x9e   : > { %p9015_p8 = pmov %p9013_p4 }
  0x9f   : > { %7342 = dma.done.wait (%p9014_p6), [#allocation10], 768  }
  0xa0   : > { %7344 = vsyncadd (%p9015_p8), [#allocation10], 4294966528  ;;  %p9016_p5 = pmov %p9013_p4 }
  0xa1   : > { %p9017_p3 = pmov %p9013_p4 }
  0xa2   : > { %7346 = dma.done.wait (%p9016_p5), [#allocation5], 16  }
  0xa3   : > { %7348 = vsyncadd (%p9017_p3), [#allocation5], 4294967280  ;;  %p9018_p7 = pmov %p9017_p3 }
  0xa4   : > { %p9019_p13 = pmov %p9017_p3 }
  0xa5   : > { %7350 = dma.done.wait (%p9018_p7), [#allocation13], 16  }
  0xa6   : > { %7352 = vsyncadd (%p9019_p13), [#allocation13], 4294967280 }
  0xa7   : > { %386 = sfence }
  0xa8   : > { %v433_v0 = vld [vmem:[%s7640_s18] sm:$0xff]  ;;  %s9020_s2 = sld [smem:[#allocation28_spill]]  ;;  %vm434_vm0 = vcmask 64512   ;;  %v6126_v4 = vld [vmem:[%s7640_s18 + $0x8] sm:$0xff]  ;;  %v6133_v5 = vld [vmem:[%s7640_s18 + $0x10] sm:$0xff]  ;;  %vm1090_vm1 = vcmask 130048  }
  0xa9   : > { %6615 = vmatprep.subr.mxu0 %v433_v0  ;;  %s9021_s3 = sld [smem:[#allocation29_spill]]  ;;  %v6140_v6 = vld [vmem:[%s7640_s18 + $0x18] sm:$0xff]  ;;  %v7695_v9 = vld [vmem:[#allocation8] sm:$0xff]  ;;  %v598_v17 = vld [vmem:[%s7650_s14 + $0x8] sm:$0xff] }
  0xaa   : > { %6616 = vmatpush3.msra.mxu0 %v433_v0  ;;  %v7702_v14 = vld [vmem:[#allocation9 + $0x8] sm:$0xff]  ;;  %v597_v19 = vld [vmem:[%s7650_s14] sm:$0xff]  ;;  %v7717_v23 = vld [vmem:[#allocation8 + $0x8] sm:$0xff]  ;;  %s6152_s25 = sld [smem:[#allocation11 + $0x1]] }
  0xab   : > { %6625 = vmatprep.subr.mxu0 %v6126_v4  ;;  %v7723_v24 = vld [vmem:[#allocation9 + $0x28] sm:$0xff]  ;;  %v7726_v25 = vld [vmem:[#allocation9] sm:$0xff]  ;;  %v7755_v29 = vld [vmem:[#allocation8 + $0x20] sm:$0xff]  ;;  %s6153_s6 = sld [smem:[#allocation11 + $0x25]] }
  0xac   : > { %v7730_v26 = vld [vmem:[#allocation9 + $0x20] sm:$0xff]  ;;  %v6132_v30 = vld [vmem:[%s7650_s14 + $0x18] sm:$0xff]  ;;  %v7764_v31 = vld [vmem:[#allocation8 + $0x28] sm:$0xff]  ;;  %s7788_s26 = sld [smem:[#allocation11]] }
  0xad   : > { %s7790_s23 = sld [smem:[#allocation11 + $0x24]] }
  0xae   : > { %v420_v1 = vld [vmem:[%s9020_s2] sm:$0xff]  ;;  %v421_v2 = vld [vmem:[%s9020_s2 + $0x8] sm:$0xff]  ;;  %s7794_s19 = sld [smem:[#allocation11 + $0x2]] }
  0xaf   : > { %6617 = vmatprep.mubr.msk.f32.mxu0 %vm434_vm0, %v420_v1  ;;  %v422_v3 = vld [vmem:[%s9021_s3] sm:$0xff]  ;;  %s7796_s20 = sld [smem:[#allocation11 + $0x26]] }
  0xb0   : > { %6618 = vmatmul.mubr.msk.f32.vlgmr.msra.gmra.mxu0 %vm434_vm0, %v421_v2  ;;  %6620 = vmatprep.subr.mxu1 %v422_v3  ;;  %s7798_s4 = sld [smem:[#allocation11 + $0x3]]  ;;  %v1266_v38 = vstv %s6152_s25 }
  0xb1   : > { %6627 = vmatprep.mubr.msk.f32.mxu0 %vm434_vm0, %v420_v1  ;;  %6621 = vmatpush3.msra.mxu1 %v422_v3  ;;  %s7802_s18 = sld [smem:[#allocation11 + $0x27]]  ;;  %v1272_v39 = vstv %s6153_s6 }
  0xb2   : > { %6630 = vmatprep.subr.mxu1 %v422_v3  ;;  %6626 = vmatpush3.msra.mxu0 %v6126_v4  ;;  %s7804_s0 = sld [smem:[#allocation11 + $0x4]]  ;;  %v1254_v41 = vstv %s7788_s26 }
  0xb3   : > { %6635 = vmatprep.subr.mxu0 %v6133_v5  ;;  %s7806_s13 = sld [smem:[#allocation11 + $0x28]]  ;;  %v1260_v42 = vstv %s7790_s23 }
  0xb4   : > { %6628 = vmatmul.mubr.msk.f32.vlgmr.msra.gmra.mxu0 %vm434_vm0, %v421_v2  ;;  %s7808_s11 = sld [smem:[#allocation11 + $0x5]]  ;;  %v1353_v43 = vstv %s7794_s19 }
  0xb5   : > { %6636 = vmatpush3.msra.mxu0 %v6133_v5  ;;  %6637 = vmatprep.mubr.msk.f32.mxu0 %vm434_vm0, %v420_v1  ;;  %s7814_s5 = sld [smem:[#allocation11 + $0x29]]  ;;  %v1359_v44 = vstv %s7796_s20 }
  0xb6   : > { %6645 = vmatprep.subr.mxu0 %v6140_v6  ;;  %v1446_v57 = vstv %s7798_s4  ;;  %s7856_s22 = sld [smem:[#allocation11 + $0x7]] }
  0xb7   : > { %v1452_v58 = vstv %s7802_s18  ;;  %s6172_s24 = sld [smem:[#allocation11 + $0x6]] }
  0xb8   : > { %6638 = vmatmul.mubr.msk.f32.vlgmr.msra.gmra.mxu0 %vm434_vm0, %v421_v2  ;;  %s6173_s10 = sld [smem:[#allocation11 + $0x2a]] }
  0xb9   : > { %6646 = vmatpush3.msra.mxu0 %v6140_v6  ;;  %6647 = vmatprep.mubr.msk.f32.mxu0 %vm434_vm0, %v420_v1  ;;  %v1458_v1 = vstv %s7804_s0  ;;  %s7858_s15 = sld [smem:[#allocation11 + $0x2b]] }
  0xba   : > { %s7860_s25 = sld [smem:[#allocation11 + $0x8]] }
  0xbb   : > { %s7862_s6 = sld [smem:[#allocation11 + $0x2c]] }
  0xbc   : > { %6648 = vmatmul.mubr.msk.f32.vlgmr.msra.gmra.mxu0 %vm434_vm0, %v421_v2  ;;  %v1464_v2 = vstv %s7806_s13  ;;  %s7930_s26 = sld [smem:[#allocation11 + $0xa]] }
  0xbd   : > { %6659 = vmatprep.mubr.msk.f32.mxu0 %vm1090_vm1, %v7695_v9  ;;  %s7932_s23 = sld [smem:[#allocation11 + $0x2e]] }
  0xbe   : > { %s7934_s19 = sld [smem:[#allocation11 + $0x9]] }
  0xbf   : > { %s7936_s20 = sld [smem:[#allocation11 + $0x2d]] }
  0xc0   : > { %s7938_s4 = sld [smem:[#allocation11 + $0xb]] }
  0xc1   : > { %s7940_s18 = sld [smem:[#allocation11 + $0x2f]] }
  0xc2   : > { %s7942_s0 = sld [smem:[#allocation11 + $0xc]] }
  0xc3   : > { %s7950_s13 = sld [smem:[#allocation11 + $0x30]] }
  0xc4   : > { %s8432_s7 = sld [smem:[#allocation12 + $0x15]] }
  0xc5   : > { %s8434_s1 = sld [smem:[#allocation12 + $0x27]] }
  0xc6   : > { %s8436_s2 = sld [smem:[#allocation12 + $0x39]] }
  0xc7   : > { %s8438_s3 = sld [smem:[#allocation12 + $0x5]] }
  0xc8   : > { %s8442_s29 = sld [smem:[#allocation12 + $0x17]] }
  0xc9   : > { %s8448_s28 = sld [smem:[#allocation12 + $0x29]] }
  0xca   : > { %s8452_s21 = sld [smem:[#allocation12 + $0x3b]] }
 0x170   : > { %v6619_v7 = vpop.f32.mrf.mxu0 }
 0x172   : > { %v507_v8 = vpop.f32.mrf.mxu0 }
 0x173   : > { %6622 = vmatprep.mubr.msk.f32.mxu1 %vm434_vm0, %v507_v8 }
 0x174   : > { %6623 = vmatmul.mubr.msk.f32.vlgmr.msra.gmra.mxu1 %vm434_vm0, %v6619_v7  ;;  %v6629_v10 = vpop.f32.mrf.mxu0 }
 0x175   : > { %6631 = vmatpush3.msra.mxu1 %v422_v3 }
 0x176   : > { %6640 = vmatprep.subr.mxu1 %v422_v3  ;;  %v669_v11 = vpop.f32.mrf.mxu0 }
 0x177   : > { %6632 = vmatprep.mubr.msk.f32.mxu1 %vm434_vm0, %v669_v11 }
 0x178   : > { %6633 = vmatmul.mubr.msk.f32.vlgmr.msra.gmra.mxu1 %vm434_vm0, %v6629_v10  ;;  %v6639_v12 = vpop.f32.mrf.mxu0 }
 0x179   : > { %6641 = vmatpush3.msra.mxu1 %v422_v3 }
 0x17a   : > { %v832_v13 = vpop.f32.mrf.mxu0  ;;  %6650 = vmatprep.subr.mxu1 %v422_v3 }
 0x17b   : > { %6642 = vmatprep.mubr.msk.f32.mxu1 %vm434_vm0, %v832_v13  ;;  %v1551_v13 = vstv %s7814_s5  ;;  %s7958_s5 = sld [smem:[#allocation11 + $0x31]] }
 0x17c   : > { %6643 = vmatmul.mubr.msk.f32.vlgmr.msra.gmra.mxu1 %vm434_vm0, %v6639_v12  ;;  %v6649_v15 = vpop.f32.mrf.mxu0  ;;  %v1545_v12 = vstv %s7808_s11  ;;  %s7954_s11 = sld [smem:[#allocation11 + $0xd]] }
 0x17d   : > { %6651 = vmatpush3.msra.mxu1 %v422_v3 }
 0x17e   : > { %v995_v16 = vpop.f32.mrf.mxu0  ;;  %6662 = vmatprep.subr.mxu1 %v7702_v14 }
 0x17f   : > { %6652 = vmatprep.mubr.msk.f32.mxu1 %vm434_vm0, %v995_v16 }
 0x180   : > { %6653 = vmatmul.mubr.msk.f32.vlgmr.msra.gmra.mxu1 %vm434_vm0, %v6649_v15 }
 0x181   : > { %6663 = vmatpush3.msra.mxu1 %v7702_v14 }
 0x182   : > { %6664 = vmatprep.subr.mxu1 %v7726_v25 }
 0x183   : > { %6665 = vmatpush3.msra.mxu1 %v7726_v25 }
 0x184   : > { %6676 = vmatprep.subr.mxu1 %v7702_v14 }
 0x234   : > { %v6624_v18 = vpop.f32.mrf.mxu1 }
 0x235   : > { %v7711_v20 = vadd.f32 %v6624_v18, %v598_v17 }
 0x236   : > { %v588_v21 = vpop.f32.mrf.mxu1 }
 0x237   : > { %v7713_v22 = vadd.f32 %v597_v19, %v588_v21  ;;  %6655 = vmatprep.subr.mxu0 %v7711_v20  ;;  %v1460_v17 = vmul.f32 %v1458_v1, %v7711_v20  ;;  %v1466_v18 = vmul.f32 %v1464_v2, %v7711_v20 }
 0x238   : > { %6656 = vmatpush3.msra.mxu0 %v7711_v20  ;;  %v6634_v32 = vpop.f32.mrf.mxu1 }
 0x239   : > { %6657 = vmatprep.subr.mxu0 %v7713_v22  ;;  %v7770_v33 = vadd.f32 %v6634_v32, %v6132_v30 }
 0x23a   : > { %6658 = vmatpush3.msra.mxu0 %v7713_v22  ;;  %v7784_v34 = vpop.f32.mrf.mxu1 }
 0x23b   : > { %6660 = vmatmul.mubr.msk.f32.vlgmr.msra.gmra.mxu0 %vm1090_vm1, %v7717_v23  ;;  %6669 = vmatprep.subr.mxu0 %v7723_v24 }
 0x23c   : > { %6670 = vmatpush3.msra.mxu0 %v7723_v24  ;;  %v7786_v35 = vpop.f32.mrf.mxu1 }
 0x23d   : > { %6671 = vmatprep.subr.mxu0 %v7730_v26 }
 0x23e   : > { %6672 = vmatpush3.msra.mxu0 %v7730_v26  ;;  %v7792_v36 = vpop.f32.mrf.mxu1 }
 0x23f   : > { %6683 = vmatprep.subr.mxu0 %v7723_v24 }
 0x240   : > { %v7800_v37 = vpop.f32.mrf.mxu1 }
 0x242   : > { %v7810_v40 = vpop.f32.mrf.mxu1 }
 0x2fb   : > { %v6661_v27 = vpop.f32.mrf.mxu0 }
 0x2fc   : > { %v1268_v46 = vmul.f32 %v6661_v27, %v1266_v38  ;;  %v1274_v47 = vmul.f32 %v6661_v27, %v1272_v39 }
 0x2fd   : > { %v7737_v28 = vpop.f32.mrf.mxu0 }
 0x2fe   : > { %6666 = vmatprep.mubr.msk.f32.mxu1 %vm1090_vm1, %v7737_v28  ;;  %6673 = vmatprep.mubr.msk.f32.mxu0 %vm1090_vm1, %v7737_v28  ;;  %v1267_v51 = vmul.f32 %v1266_v38, %v7737_v28  ;;  %v1273_v52 = vmul.f32 %v1272_v39, %v7737_v28 }
 0x2ff   : > { %6667 = vmatmul.mubr.msk.f32.vlgmr.msra.gmra.mxu1 %vm1090_vm1, %v6661_v27  ;;  %6674 = vmatmul.mubr.msk.f32.vlgmr.msra.gmra.mxu0 %vm1090_vm1, %v6661_v27 }
 0x300   : > { %6677 = vmatpush3.msra.mxu1 %v7702_v14  ;;  %6680 = vmatprep.mubr.msk.f32.mxu1 %vm1090_vm1, %v7713_v22 }
 0x301   : > { %6678 = vmatprep.subr.mxu1 %v7726_v25  ;;  %6684 = vmatpush3.msra.mxu0 %v7723_v24 }
 0x302   : > { %6687 = vmatprep.mubr.msk.f32.mxu0 %vm1090_vm1, %v7713_v22  ;;  %6679 = vmatpush3.msra.mxu1 %v7726_v25 }
 0x303   : > { %6685 = vmatprep.subr.mxu0 %v7730_v26  ;;  %6690 = vmatprep.subr.mxu1 %v7711_v20 }
 0x304   : > { %6686 = vmatpush3.msra.mxu0 %v7730_v26  ;;  %6681 = vmatmul.mubr.msk.f32.vlgmr.msra.gmra.mxu1 %vm1090_vm1, %v7711_v20 }
 0x305   : > { %6688 = vmatmul.mubr.msk.f32.vlgmr.msra.gmra.mxu0 %vm1090_vm1, %v7711_v20  ;;  %6691 = vmatpush3.msra.mxu1 %v7711_v20 }
 0x306   : > { %6692 = vmatprep.subr.mxu1 %v7713_v22  ;;  %6694 = vmatprep.mubr.msk.f32.mxu1 %vm1090_vm1, %v7755_v29 }
 0x307   : > { %6693 = vmatpush3.msra.mxu1 %v7713_v22  ;;  %6697 = vmatprep.subr.mxu0 %v7702_v14 }
 0x308   : > { %6695 = vmatmul.mubr.msk.f32.vlgmr.msra.gmra.mxu1 %vm1090_vm1, %v7764_v31  ;;  %6698 = vmatpush3.msra.mxu0 %v7702_v14 }
 0x309   : > { %6699 = vmatprep.subr.mxu0 %v7726_v25  ;;  %6704 = vmatprep.subr.mxu1 %v7723_v24 }
 0x30a   : > { %6700 = vmatpush3.msra.mxu0 %v7726_v25  ;;  %6705 = vmatpush3.msra.mxu1 %v7723_v24 }
 0x30b   : > { %6711 = vmatprep.subr.mxu0 %v7770_v33  ;;  %6706 = vmatprep.subr.mxu1 %v7730_v26 }
 0x30c   : > { %6707 = vmatpush3.msra.mxu1 %v7730_v26 }
 0x30d   : > { %6718 = vmatprep.subr.mxu1 %v7702_v14 }
 0x3bf   : > { %v6668_v45 = vpop.f32.mrf.mxu1  ;;  %v6675_v48 = vpop.f32.mrf.mxu0 }
 0x3c0   : > { %v1256_v49 = vmul.f32 %v6668_v45, %v1254_v41  ;;  %v1262_v50 = vmul.f32 %v6668_v45, %v1260_v42  ;;  %v1355_v53 = vmul.f32 %v6675_v48, %v1353_v43  ;;  %v1361_v54 = vmul.f32 %v6675_v48, %v1359_v44 }
 0x3c1   : > { %v1244_v55 = vpop.f32.mrf.mxu1  ;;  %v1343_v56 = vpop.f32.mrf.mxu0 }
 0x3c2   : > { %v1270_v59 = vadd.f32 %v1268_v46, %v1256_v49  ;;  %v1276_v60 = vadd.f32 %v1274_v47, %v1262_v50  ;;  %v1255_v61 = vmul.f32 %v1254_v41, %v1244_v55  ;;  %v1261_v62 = vmul.f32 %v1260_v42, %v1244_v55  ;;  %v6131_v41 = vld [vmem:[%s7650_s14 + $0x10] sm:$0xff] }
 0x3c3   : > { %v1354_v63 = vmul.f32 %v1353_v43, %v1343_v56  ;;  %v1360_v0 = vmul.f32 %v1359_v44, %v1343_v56  ;;  %v7834_v20 = vadd.f32 %v6131_v41, %v7784_v34  ;;  %v1459_v34 = vmul.f32 %v1458_v1, %v7713_v22 }
 0x3c4   : > { %v1357_v3 = vadd.f32 %v1355_v53, %v1270_v59  ;;  %v1363_v4 = vadd.f32 %v1361_v54, %v1276_v60  ;;  %v1269_v5 = vadd.f32 %v1267_v51, %v1255_v61  ;;  %v1275_v6 = vadd.f32 %v1273_v52, %v1261_v62  ;;  %v6682_v7 = vpop.f32.mrf.mxu1 }
 0x3c5   : > { %v1448_v8 = vmul.f32 %v6682_v7, %v1446_v57  ;;  %v1454_v10 = vmul.f32 %v6682_v7, %v1452_v58  ;;  %v6689_v11 = vpop.f32.mrf.mxu0  ;;  %v1465_v49 = vmul.f32 %v1464_v2, %v7713_v22  ;;  %v1719_v53 = vstv %s6172_s24  ;;  %s7968_s24 = sld [smem:[#allocation11 + $0x32]] }
 0x3c6   : > { %v1356_v15 = vadd.f32 %v1354_v63, %v1269_v5  ;;  %v1362_v16 = vadd.f32 %v1360_v0, %v1275_v6  ;;  %v1436_v19 = vpop.f32.mrf.mxu1  ;;  %v1547_v32 = vmul.f32 %v6689_v11, %v1545_v12  ;;  %v1553_v38 = vmul.f32 %v6689_v11, %v1551_v13 }
 0x3c7   : > { %v1450_v21 = vadd.f32 %v1448_v8, %v1357_v3  ;;  %v1456_v27 = vadd.f32 %v1454_v10, %v1363_v4  ;;  %v1447_v28 = vmul.f32 %v1446_v57, %v1436_v19  ;;  %v1453_v30 = vmul.f32 %v1452_v58, %v1436_v19  ;;  %v1535_v50 = vpop.f32.mrf.mxu0 }
 0x3c8   : > { %v6696_v39 = vpop.f32.mrf.mxu1  ;;  %v1725_v54 = vstv %s6173_s10  ;;  %v1731_v55 = vstv %s7856_s22  ;;  %v1737_v56 = vstv %s7858_s15  ;;  %v1546_v57 = vmul.f32 %v1545_v12, %v1535_v50  ;;  %s7960_s22 = sld [smem:[#allocation11 + $0xe]] }
 0x3c9   : > { %v1462_v42 = vadd.f32 %v1460_v17, %v1450_v21  ;;  %v1468_v43 = vadd.f32 %v1466_v18, %v1456_v27  ;;  %v1449_v44 = vadd.f32 %v1447_v28, %v1356_v15  ;;  %v1455_v45 = vadd.f32 %v1453_v30, %v1362_v16  ;;  %v6139_v27 = vld [vmem:[%s7650_s14 + $0x28] sm:$0xff]  ;;  %s8012_s10 = sld [smem:[#allocation11 + $0x10]] }
 0x3ca   : > { %v7829_v46 = vpop.f32.mrf.mxu1  ;;  %v1552_v58 = vmul.f32 %v1551_v13, %v1535_v50  ;;  %v1818_v63 = vstv %s7860_s25  ;;  %v1824_v0 = vstv %s7862_s6  ;;  %v1733_v2 = vmul.f32 %v6696_v39, %v1731_v55  ;;  %s6206_s15 = sld [smem:[#allocation11 + $0xf]] }
 0x3cb   : > { %v1549_v47 = vadd.f32 %v1547_v32, %v1462_v42  ;;  %v1555_v48 = vadd.f32 %v1553_v38, %v1468_v43  ;;  %6701 = vmatprep.mubr.msk.f32.mxu0 %vm1090_vm1, %v7829_v46  ;;  %6708 = vmatprep.mubr.msk.f32.mxu1 %vm1090_vm1, %v7829_v46  ;;  %v1461_v51 = vadd.f32 %v1459_v34, %v1449_v44  ;;  %v1998_v38 = vstv %s7930_s26  ;;  %s6207_s25 = sld [smem:[#allocation11 + $0x33]] }
 0x3cc   : > { %6702 = vmatmul.mubr.msk.f32.vlgmr.msra.gmra.mxu0 %vm1090_vm1, %v6696_v39  ;;  %6709 = vmatmul.mubr.msk.f32.vlgmr.msra.gmra.mxu1 %vm1090_vm1, %v6696_v39  ;;  %v1467_v52 = vadd.f32 %v1465_v49, %v1455_v45  ;;  %v1739_v3 = vmul.f32 %v6696_v39, %v1737_v56  ;;  %v7915_v28 = vadd.f32 %v7786_v35, %v6139_v27  ;;  %v2004_v39 = vstv %s7932_s23  ;;  %s8014_s6 = sld [smem:[#allocation11 + $0x34]] }
 0x3cd   : > { %6712 = vmatpush3.msra.mxu0 %v7770_v33  ;;  %6715 = vmatprep.mubr.msk.f32.mxu0 %vm1090_vm1, %v7695_v9  ;;  %v1548_v22 = vadd.f32 %v1546_v57, %v1461_v51  ;;  %v1732_v35 = vmul.f32 %v1731_v55, %v7829_v46  ;;  %v1738_v30 = vmul.f32 %v1737_v56, %v7829_v46  ;;  %v1986_v43 = vstv %s7934_s19  ;;  %s8016_s26 = sld [smem:[#allocation11 + $0x11]] }
 0x3ce   : > { %6713 = vmatprep.subr.mxu0 %v7834_v20  ;;  %6719 = vmatpush3.msra.mxu1 %v7702_v14  ;;  %v1554_v1 = vadd.f32 %v1552_v58, %v1467_v52  ;;  %v1992_v44 = vstv %s7936_s20  ;;  %v2085_v52 = vstv %s7938_s4  ;;  %v2283_v27 = vstv %s7968_s24  ;;  %s8018_s23 = sld [smem:[#allocation11 + $0x35]] }
 0x3cf   : > { %6714 = vmatpush3.msra.mxu0 %v7834_v20  ;;  %6720 = vmatprep.subr.mxu1 %v7726_v25  ;;  %s8086_s19 = sld [smem:[#allocation11 + $0x13]] }
 0x3d0   : > { %6716 = vmatmul.mubr.msk.f32.vlgmr.msra.gmra.mxu0 %vm1090_vm1, %v7717_v23  ;;  %6725 = vmatprep.subr.mxu0 %v7723_v24  ;;  %s8088_s20 = sld [smem:[#allocation11 + $0x37]] }
 0x3d1   : > { %6726 = vmatpush3.msra.mxu0 %v7723_v24  ;;  %6721 = vmatpush3.msra.mxu1 %v7726_v25  ;;  %s8090_s4 = sld [smem:[#allocation11 + $0x12]] }
 0x3d2   : > { %6727 = vmatprep.subr.mxu0 %v7730_v26  ;;  %6732 = vmatprep.subr.mxu1 %v7702_v14  ;;  %s8114_s24 = sld [smem:[#allocation11 + $0x3a]] }
 0x3d3   : > { %6728 = vmatpush3.msra.mxu0 %v7730_v26 }
 0x3d4   : > { %6739 = vmatprep.subr.mxu0 %v7723_v24 }
 0x48c   : > { %v6703_v59 = vpop.f32.mrf.mxu0  ;;  %v6710_v62 = vpop.f32.mrf.mxu1 }
 0x48d   : > { %v1721_v60 = vmul.f32 %v6703_v59, %v1719_v53  ;;  %v1727_v61 = vmul.f32 %v6703_v59, %v1725_v54  ;;  %v1820_v10 = vmul.f32 %v6710_v62, %v1818_v63  ;;  %v1826_v11 = vmul.f32 %v6710_v62, %v1824_v0 }
 0x48e   : > { %v1709_v4 = vpop.f32.mrf.mxu0  ;;  %v1808_v32 = vpop.f32.mrf.mxu1 }
 0x48f   : > { %v1723_v5 = vadd.f32 %v1721_v60, %v1549_v47  ;;  %v1729_v6 = vadd.f32 %v1727_v61, %v1555_v48  ;;  %v1720_v7 = vmul.f32 %v1719_v53, %v1709_v4  ;;  %v1726_v8 = vmul.f32 %v1725_v54, %v1709_v4 }
 0x490   : > { %v7878_v12 = vpop.f32.mrf.mxu0  ;;  %v1819_v45 = vmul.f32 %v1818_v63, %v1808_v32  ;;  %v1825_v46 = vmul.f32 %v1824_v0, %v1808_v32  ;;  %v2091_v53 = vstv %s7940_s18  ;;  %s8092_s18 = sld [smem:[#allocation11 + $0x36]] }
 0x491   : > { %v1735_v13 = vadd.f32 %v1733_v2, %v1723_v5  ;;  %v1741_v15 = vadd.f32 %v1739_v3, %v1729_v6  ;;  %v1722_v16 = vadd.f32 %v1720_v7, %v1548_v22  ;;  %v1728_v17 = vadd.f32 %v1726_v8, %v1554_v1 }
 0x492   : > { %v7880_v18 = vpop.f32.mrf.mxu0  ;;  %v2000_v47 = vmul.f32 %v7878_v12, %v1998_v38  ;;  %v2006_v48 = vmul.f32 %v7878_v12, %v2004_v39  ;;  %v2178_v1 = vstv %s7942_s0  ;;  %v2184_v2 = vstv %s7950_s13  ;;  %s8094_s0 = sld [smem:[#allocation11 + $0x14]] }
 0x493   : > { %v7882_v19 = vadd.f32 %v1820_v10, %v1735_v13  ;;  %v7884_v21 = vadd.f32 %v1826_v11, %v1741_v15  ;;  %6722 = vmatprep.mubr.msk.f32.mxu1 %vm1090_vm1, %v7880_v18  ;;  %6729 = vmatprep.mubr.msk.f32.mxu0 %vm1090_vm1, %v7880_v18  ;;  %v1734_v41 = vadd.f32 %v1732_v35, %v1722_v16  ;;  %v2190_v11 = vstv %s7954_s11  ;;  %s8096_s13 = sld [smem:[#allocation11 + $0x38]] }
 0x494   : > { %6723 = vmatmul.mubr.msk.f32.vlgmr.msra.gmra.mxu1 %vm1090_vm1, %v7878_v12  ;;  %6730 = vmatmul.mubr.msk.f32.vlgmr.msra.gmra.mxu0 %vm1090_vm1, %v7878_v12  ;;  %v1740_v42 = vadd.f32 %v1738_v30, %v1728_v17  ;;  %v1999_v56 = vmul.f32 %v1998_v38, %v7880_v18  ;;  %v2005_v57 = vmul.f32 %v2004_v39, %v7880_v18  ;;  %v2196_v12 = vstv %s7958_s5  ;;  %s8098_s11 = sld [smem:[#allocation11 + $0x15]] }
 0x495   : > { %6733 = vmatpush3.msra.mxu1 %v7702_v14  ;;  %6740 = vmatpush3.msra.mxu0 %v7723_v24  ;;  %v1821_v54 = vadd.f32 %v1819_v45, %v1734_v41  ;;  %v2198_v45 = vmul.f32 %v2196_v12, %v7770_v33  ;;  %s8106_s5 = sld [smem:[#allocation11 + $0x39]] }
 0x496   : > { %6734 = vmatprep.subr.mxu1 %v7726_v25  ;;  %6736 = vmatprep.mubr.msk.f32.mxu1 %vm1090_vm1, %v7834_v20  ;;  %v1827_v55 = vadd.f32 %v1825_v46, %v1740_v42 }
 0x497   : > { %6741 = vmatprep.subr.mxu0 %v7730_v26  ;;  %6743 = vmatprep.mubr.msk.f32.mxu0 %vm1090_vm1, %v7834_v20 }
 0x498   : > { %6735 = vmatpush3.msra.mxu1 %v7726_v25  ;;  %6742 = vmatpush3.msra.mxu0 %v7730_v26 }
 0x499   : > { %6746 = vmatprep.subr.mxu1 %v7770_v33  ;;  %6753 = vmatprep.subr.mxu0 %v7702_v14 }
 0x49a   : > { %6737 = vmatmul.mubr.msk.f32.vlgmr.msra.gmra.mxu1 %vm1090_vm1, %v7770_v33  ;;  %6744 = vmatmul.mubr.msk.f32.vlgmr.msra.gmra.mxu0 %vm1090_vm1, %v7770_v33 }
 0x49b   : > { %6747 = vmatpush3.msra.mxu1 %v7770_v33  ;;  %6754 = vmatpush3.msra.mxu0 %v7702_v14 }
 0x49c   : > { %6748 = vmatprep.subr.mxu1 %v7834_v20  ;;  %6755 = vmatprep.subr.mxu0 %v7726_v25 }
 0x49d   : > { %6749 = vmatpush3.msra.mxu1 %v7834_v20  ;;  %6756 = vmatpush3.msra.mxu0 %v7726_v25 }
 0x49e   : > { %6750 = vmatprep.mubr.msk.f32.mxu1 %vm1090_vm1, %v7755_v29  ;;  %6767 = vmatprep.subr.mxu0 %v7915_v28 }
 0x49f   : > { %6751 = vmatmul.mubr.msk.f32.vlgmr.msra.gmra.mxu1 %vm1090_vm1, %v7764_v31  ;;  %6760 = vmatprep.subr.mxu1 %v7723_v24 }
 0x4a0   : > { %6761 = vmatpush3.msra.mxu1 %v7723_v24 }
 0x4a1   : > { %6762 = vmatprep.subr.mxu1 %v7730_v26 }
 0x4a2   : > { %6763 = vmatpush3.msra.mxu1 %v7730_v26 }
 0x4a3   : > { %6774 = vmatprep.subr.mxu1 %v7702_v14 }
 0x554   : > { %v6724_v34 = vpop.f32.mrf.mxu1  ;;  %v6731_v51 = vpop.f32.mrf.mxu0 }
 0x555   : > { %v1988_v49 = vmul.f32 %v6724_v34, %v1986_v43  ;;  %v1994_v50 = vmul.f32 %v6724_v34, %v1992_v44  ;;  %v2087_v0 = vmul.f32 %v6731_v51, %v2085_v52  ;;  %v2093_v22 = vmul.f32 %v6731_v51, %v2091_v53  ;;  %v6138_v34 = vld [vmem:[%s7650_s14 + $0x20] sm:$0xff] }
 0x556   : > { %v1976_v58 = vpop.f32.mrf.mxu1  ;;  %v2075_v63 = vpop.f32.mrf.mxu0 }
 0x557   : > { %v1990_v59 = vadd.f32 %v1988_v49, %v7882_v19  ;;  %v1996_v60 = vadd.f32 %v1994_v50, %v7884_v21  ;;  %v1987_v61 = vmul.f32 %v1986_v43, %v1976_v58  ;;  %v1993_v62 = vmul.f32 %v1992_v44, %v1976_v58 }
 0x558   : > { %v2086_v7 = vmul.f32 %v2085_v52, %v2075_v63  ;;  %v2092_v8 = vmul.f32 %v2091_v53, %v2075_v63  ;;  %v2277_v21 = vstv %s7960_s22  ;;  %v2192_v44 = vmul.f32 %v2190_v11, %v7770_v33  ;;  %s8110_s22 = sld [smem:[#allocation11 + $0x16]] }
 0x559   : > { %v2002_v3 = vadd.f32 %v2000_v47, %v1990_v59  ;;  %v2008_v4 = vadd.f32 %v2006_v48, %v1996_v60  ;;  %v1989_v5 = vadd.f32 %v1987_v61, %v1821_v54  ;;  %v1995_v6 = vadd.f32 %v1993_v62, %v1827_v55 }
 0x55a   : > { %v6738_v10 = vpop.f32.mrf.mxu1  ;;  %v6745_v38 = vpop.f32.mrf.mxu0  ;;  %v2197_v33 = vmul.f32 %v2196_v12, %v7834_v20  ;;  %v2445_v59 = vstv %s6206_s15  ;;  %v2451_v60 = vstv %s6207_s25  ;;  %v2457_v61 = vstv %s8012_s10  ;;  %s8116_s10 = sld [smem:[#allocation11 + $0x17]] }
 0x55b   : > { %v2089_v13 = vadd.f32 %v2087_v0, %v2002_v3  ;;  %v2095_v15 = vadd.f32 %v2093_v22, %v2008_v4  ;;  %v2001_v16 = vadd.f32 %v1999_v56, %v1989_v5  ;;  %v2007_v17 = vadd.f32 %v2005_v57, %v1995_v6  ;;  %s8124_s15 = sld [smem:[#allocation11 + $0x3b]] }
 0x55c   : > { %v2180_v18 = vmul.f32 %v6738_v10, %v2178_v1  ;;  %v2186_v19 = vmul.f32 %v6738_v10, %v2184_v2  ;;  %v2168_v35 = vpop.f32.mrf.mxu1  ;;  %v2279_v51 = vmul.f32 %v6745_v38, %v2277_v21  ;;  %v2285_v52 = vmul.f32 %v6745_v38, %v2283_v27  ;;  %s6240_s25 = sld [smem:[#allocation11 + $0x18]] }
 0x55d   : > { %v2088_v30 = vadd.f32 %v2086_v7, %v2001_v16  ;;  %v2094_v32 = vadd.f32 %v2092_v8, %v2007_v17  ;;  %v2179_v39 = vmul.f32 %v2178_v1, %v2168_v35  ;;  %v2185_v41 = vmul.f32 %v2184_v2, %v2168_v35 }
 0x55e   : > { %v2182_v42 = vadd.f32 %v2180_v18, %v2089_v13  ;;  %v2188_v43 = vadd.f32 %v2186_v19, %v2095_v15  ;;  %v7990_v56 = vadd.f32 %v6138_v34, %v7792_v36  ;;  %v2267_v36 = vpop.f32.mrf.mxu0  ;;  %v2463_v62 = vstv %s8014_s6  ;;  %s6241_s6 = sld [smem:[#allocation11 + $0x3c]] }
 0x55f   : > { %v2181_v46 = vadd.f32 %v2179_v39, %v2088_v30  ;;  %v2187_v47 = vadd.f32 %v2185_v41, %v2094_v32  ;;  %v6752_v48 = vpop.f32.mrf.mxu1  ;;  %v2278_v63 = vmul.f32 %v2277_v21, %v2267_v36  ;;  %v2284_v0 = vmul.f32 %v2283_v27, %v2267_v36  ;;  %v6146_v39 = vld [vmem:[%s7650_s14 + $0x38] sm:$0xff] }
 0x560   : > { %v2194_v49 = vadd.f32 %v2192_v44, %v2182_v42  ;;  %v2200_v50 = vadd.f32 %v2198_v45, %v2188_v43  ;;  %v2544_v4 = vstv %s8016_s26  ;;  %v2550_v5 = vstv %s8018_s23  ;;  %s8174_s26 = sld [smem:[#allocation11 + $0x3d]] }
 0x561   : > { %v7985_v53 = vpop.f32.mrf.mxu1  ;;  %v2199_v58 = vadd.f32 %v2197_v33, %v2187_v47  ;;  %v2459_v7 = vmul.f32 %v6752_v48, %v2457_v61  ;;  %v2465_v8 = vmul.f32 %v6752_v48, %v2463_v62  ;;  %v8071_v41 = vadd.f32 %v7800_v37, %v6146_v39  ;;  %s8176_s23 = sld [smem:[#allocation11 + $0x1a]] }
 0x562   : > { %v2281_v54 = vadd.f32 %v2279_v51, %v2194_v49  ;;  %v2287_v55 = vadd.f32 %v2285_v52, %v2200_v50  ;;  %6757 = vmatprep.mubr.msk.f32.mxu0 %vm1090_vm1, %v7985_v53  ;;  %6764 = vmatprep.mubr.msk.f32.mxu1 %vm1090_vm1, %v7985_v53  ;;  %v2724_v42 = vstv %s8086_s19  ;;  %v2730_v43 = vstv %s8088_s20  ;;  %s8178_s19 = sld [smem:[#allocation11 + $0x3e]] }
 0x563   : > { %6758 = vmatmul.mubr.msk.f32.vlgmr.msra.gmra.mxu0 %vm1090_vm1, %v6752_v48  ;;  %6765 = vmatmul.mubr.msk.f32.vlgmr.msra.gmra.mxu1 %vm1090_vm1, %v6752_v48  ;;  %v2286_v6 = vadd.f32 %v2284_v0, %v2199_v58  ;;  %v2718_v47 = vstv %s8092_s18  ;;  %s6254_s20 = sld [smem:[#allocation11 + $0x1c]] }
 0x564   : > { %6768 = vmatpush3.msra.mxu0 %v7915_v28  ;;  %6771 = vmatprep.mubr.msk.f32.mxu0 %vm1090_vm1, %v7695_v9  ;;  %v2191_v9 = vmul.f32 %v2190_v11, %v7834_v20  ;;  %s8247_s18 = sld [smem:[#allocation11 + $0x1b]] }
 0x565   : > { %6769 = vmatprep.subr.mxu0 %v7990_v56  ;;  %6775 = vmatpush3.msra.mxu1 %v7702_v14 }
 0x566   : > { %6770 = vmatpush3.msra.mxu0 %v7990_v56  ;;  %6776 = vmatprep.subr.mxu1 %v7726_v25  ;;  %v2193_v57 = vadd.f32 %v2191_v9, %v2181_v46  ;;  %v2712_v46 = vstv %s8090_s4  ;;  %v2817_v9 = vstv %s8096_s13  ;;  %s6255_s4 = sld [smem:[#allocation11 + $0x40]] }
 0x567   : > { %6772 = vmatmul.mubr.msk.f32.vlgmr.msra.gmra.mxu0 %vm1090_vm1, %v7717_v23  ;;  %6781 = vmatprep.subr.mxu0 %v7723_v24  ;;  %s8251_s13 = sld [smem:[#allocation11 + $0x1d]] }
 0x568   : > { %6782 = vmatpush3.msra.mxu0 %v7723_v24  ;;  %6777 = vmatpush3.msra.mxu1 %v7726_v25  ;;  %v2280_v20 = vadd.f32 %v2278_v63, %v2193_v57 }
 0x569   : > { %6783 = vmatprep.subr.mxu0 %v7730_v26  ;;  %6788 = vmatprep.subr.mxu1 %v7702_v14 }
 0x56a   : > { %6784 = vmatpush3.msra.mxu0 %v7730_v26 }
 0x56b   : > { %6795 = vmatprep.subr.mxu0 %v7723_v24 }
 0x623   : > { %v6759_v22 = vpop.f32.mrf.mxu0  ;;  %v6766_v3 = vpop.f32.mrf.mxu1 }
 0x624   : > { %v2447_v1 = vmul.f32 %v6759_v22, %v2445_v59  ;;  %v2453_v2 = vmul.f32 %v6759_v22, %v2451_v60  ;;  %v2546_v16 = vmul.f32 %v6766_v3, %v2544_v4  ;;  %v2552_v17 = vmul.f32 %v6766_v3, %v2550_v5 }
 0x625   : > { %v2435_v10 = vpop.f32.mrf.mxu0  ;;  %v2534_v37 = vpop.f32.mrf.mxu1  ;;  %v2910_v3 = vstv %s8106_s5  ;;  %s8255_s5 = sld [smem:[#allocation11 + $0x1e]] }
 0x626   : > { %v2449_v11 = vadd.f32 %v2447_v1, %v2281_v54  ;;  %v2455_v12 = vadd.f32 %v2453_v2, %v2287_v55  ;;  %v2446_v13 = vmul.f32 %v2445_v59, %v2435_v10  ;;  %v2452_v15 = vmul.f32 %v2451_v60, %v2435_v10 }
 0x627   : > { %v8034_v18 = vpop.f32.mrf.mxu0  ;;  %v2545_v48 = vmul.f32 %v2544_v4, %v2534_v37  ;;  %v2551_v34 = vmul.f32 %v2550_v5, %v2534_v37  ;;  %v2811_v55 = vstv %s8094_s0  ;;  %v2904_v2 = vstv %s8098_s11  ;;  %s8249_s0 = sld [smem:[#allocation11 + $0x3f]] }
 0x628   : > { %v2461_v19 = vadd.f32 %v2459_v7, %v2449_v11  ;;  %v2467_v21 = vadd.f32 %v2465_v8, %v2455_v12  ;;  %v2448_v27 = vadd.f32 %v2446_v13, %v2280_v20  ;;  %v2454_v35 = vadd.f32 %v2452_v15, %v2286_v6  ;;  %s8253_s11 = sld [smem:[#allocation11 + $0x41]] }
 0x629   : > { %v8036_v30 = vpop.f32.mrf.mxu0  ;;  %v2726_v49 = vmul.f32 %v8034_v18, %v2724_v42  ;;  %v2732_v50 = vmul.f32 %v8034_v18, %v2730_v43  ;;  %v2916_v11 = vstv %s8110_s22  ;;  %v2922_v12 = vstv %s8114_s24  ;;  %s8263_s22 = sld [smem:[#allocation11 + $0x42]] }
 0x62a   : > { %v8038_v32 = vadd.f32 %v2546_v16, %v2461_v19  ;;  %v8040_v38 = vadd.f32 %v2552_v17, %v2467_v21  ;;  %6778 = vmatprep.mubr.msk.f32.mxu1 %vm1090_vm1, %v8036_v30  ;;  %6785 = vmatprep.mubr.msk.f32.mxu0 %vm1090_vm1, %v8036_v30  ;;  %v2725_v57 = vmul.f32 %v2724_v42, %v8036_v30  ;;  %v3003_v21 = vstv %s8116_s10  ;;  %s6264_s24 = sld [smem:[#allocation11 + $0x1f]] }
 0x62b   : > { %6779 = vmatmul.mubr.msk.f32.vlgmr.msra.gmra.mxu1 %vm1090_vm1, %v8034_v18  ;;  %6786 = vmatmul.mubr.msk.f32.vlgmr.msra.gmra.mxu0 %vm1090_vm1, %v8034_v18  ;;  %v2731_v58 = vmul.f32 %v2730_v43, %v8036_v30  ;;  %v2918_v42 = vmul.f32 %v2916_v11, %v7915_v28  ;;  %v2924_v43 = vmul.f32 %v2922_v12, %v7915_v28  ;;  %s6265_s10 = sld [smem:[#allocation11 + $0x43]] }
 0x62c   : > { %6789 = vmatpush3.msra.mxu1 %v7702_v14  ;;  %6796 = vmatpush3.msra.mxu0 %v7723_v24 }
 0x62d   : > { %6790 = vmatprep.subr.mxu1 %v7726_v25  ;;  %6792 = vmatprep.mubr.msk.f32.mxu1 %vm1090_vm1, %v7990_v56 }
 0x62e   : > { %6797 = vmatprep.subr.mxu0 %v7730_v26  ;;  %6799 = vmatprep.mubr.msk.f32.mxu0 %vm1090_vm1, %v7990_v56 }
 0x62f   : > { %6791 = vmatpush3.msra.mxu1 %v7726_v25  ;;  %6798 = vmatpush3.msra.mxu0 %v7730_v26 }
 0x630   : > { %6802 = vmatprep.subr.mxu1 %v7915_v28  ;;  %6809 = vmatprep.subr.mxu0 %v7702_v14 }
 0x631   : > { %6793 = vmatmul.mubr.msk.f32.vlgmr.msra.gmra.mxu1 %vm1090_vm1, %v7915_v28  ;;  %6800 = vmatmul.mubr.msk.f32.vlgmr.msra.gmra.mxu0 %vm1090_vm1, %v7915_v28 }
 0x632   : > { %6803 = vmatpush3.msra.mxu1 %v7915_v28  ;;  %6810 = vmatpush3.msra.mxu0 %v7702_v14  ;;  %v8154_v28 = vld [vmem:[#allocation8] sm:$0xff] }
 0x633   : > { %6804 = vmatprep.subr.mxu1 %v7990_v56  ;;  %6811 = vmatprep.subr.mxu0 %v7726_v25 }
 0x634   : > { %6805 = vmatpush3.msra.mxu1 %v7990_v56  ;;  %6812 = vmatpush3.msra.mxu0 %v7726_v25 }
 0x635   : > { %6806 = vmatprep.mubr.msk.f32.mxu1 %vm1090_vm1, %v7755_v29  ;;  %6823 = vmatprep.subr.mxu0 %v8071_v41  ;;  %v2458_v29 = vmul.f32 %v2457_v61, %v7985_v53 }
 0x636   : > { %6807 = vmatmul.mubr.msk.f32.vlgmr.msra.gmra.mxu1 %vm1090_vm1, %v7764_v31  ;;  %6816 = vmatprep.subr.mxu1 %v7723_v24  ;;  %v2464_v31 = vmul.f32 %v2463_v62, %v7985_v53 }
 0x637   : > { %6817 = vmatpush3.msra.mxu1 %v7723_v24  ;;  %v2460_v44 = vadd.f32 %v2458_v29, %v2448_v27  ;;  %v3009_v27 = vstv %s8124_s15  ;;  %s6268_s15 = sld [smem:[#allocation11 + $0x20]] }
 0x638   : > { %6818 = vmatprep.subr.mxu1 %v7730_v26  ;;  %v2466_v45 = vadd.f32 %v2464_v31, %v2454_v35 }
 0x639   : > { %6819 = vmatpush3.msra.mxu1 %v7730_v26  ;;  %v2547_v33 = vadd.f32 %v2545_v48, %v2460_v44 }
 0x63a   : > { %6830 = vmatprep.subr.mxu1 %v7702_v14  ;;  %v2553_v36 = vadd.f32 %v2551_v34, %v2466_v45 }
 0x6eb   : > { %v6780_v51 = vpop.f32.mrf.mxu1  ;;  %v6787_v54 = vpop.f32.mrf.mxu0 }
 0x6ec   : > { %v2714_v52 = vmul.f32 %v6780_v51, %v2712_v46  ;;  %v2720_v53 = vmul.f32 %v6780_v51, %v2718_v47  ;;  %v2813_v22 = vmul.f32 %v6787_v54, %v2811_v55  ;;  %v2819_v1 = vmul.f32 %v6787_v54, %v2817_v9 }
 0x6ed   : > { %v2702_v59 = vpop.f32.mrf.mxu1  ;;  %v2801_v0 = vpop.f32.mrf.mxu0 }
 0x6ee   : > { %v2716_v60 = vadd.f32 %v2714_v52, %v8038_v32  ;;  %v2722_v61 = vadd.f32 %v2720_v53, %v8040_v38  ;;  %v2713_v62 = vmul.f32 %v2712_v46, %v2702_v59  ;;  %v2719_v63 = vmul.f32 %v2718_v47, %v2702_v59  ;;  %v6145_v47 = vld [vmem:[%s7650_s14 + $0x30] sm:$0xff]  ;;  %s8172_s14 = sld [smem:[#allocation11 + $0x19]] }
 0x6ef   : > { %v2812_v7 = vmul.f32 %v2811_v55, %v2801_v0  ;;  %v2818_v8 = vmul.f32 %v2817_v9, %v2801_v0  ;;  %v8146_v54 = vadd.f32 %v6145_v47, %v7810_v40  ;;  %v8168_v40 = vld [vmem:[#allocation9 + $0x8] sm:$0xff]  ;;  %v3171_v55 = vstv %s6240_s25  ;;  %s8289_s25 = sld [smem:[#allocation11 + $0x22]] }
 0x6f0   : > { %v2728_v4 = vadd.f32 %v2726_v49, %v2716_v60  ;;  %v2734_v5 = vadd.f32 %v2732_v50, %v2722_v61  ;;  %v2715_v20 = vadd.f32 %v2713_v62, %v2547_v33  ;;  %v2721_v6 = vadd.f32 %v2719_v63, %v2553_v36 }
 0x6f1   : > { %v6794_v10 = vpop.f32.mrf.mxu1  ;;  %v6801_v38 = vpop.f32.mrf.mxu0  ;;  %v3177_v9 = vstv %s6241_s6  ;;  %v3189_v36 = vstv %s8174_s26  ;;  %v3270_v63 = vstv %s8176_s23  ;;  %v3276_v0 = vstv %s8178_s19  ;;  %s8291_s6 = sld [smem:[#allocation11 + $0x21]] }
 0x6f2   : > { %v2815_v13 = vadd.f32 %v2813_v22, %v2728_v4  ;;  %v2821_v15 = vadd.f32 %v2819_v1, %v2734_v5  ;;  %v2727_v16 = vadd.f32 %v2725_v57, %v2715_v20  ;;  %v2733_v17 = vadd.f32 %v2731_v58, %v2721_v6  ;;  %s8293_s26 = sld [smem:[#allocation11 + $0x45]] }
 0x6f3   : > { %v2906_v18 = vmul.f32 %v6794_v10, %v2904_v2  ;;  %v2912_v19 = vmul.f32 %v6794_v10, %v2910_v3  ;;  %v2894_v35 = vpop.f32.mrf.mxu1  ;;  %v3005_v49 = vmul.f32 %v6801_v38, %v3003_v21  ;;  %v3011_v50 = vmul.f32 %v6801_v38, %v3009_v27  ;;  %s8295_s23 = sld [smem:[#allocation11 + $0x46]] }
 0x6f4   : > { %v2814_v30 = vadd.f32 %v2812_v7, %v2727_v16  ;;  %v2820_v32 = vadd.f32 %v2818_v8, %v2733_v17  ;;  %v2905_v39 = vmul.f32 %v2904_v2, %v2894_v35  ;;  %v2911_v29 = vmul.f32 %v2910_v3, %v2894_v35  ;;  %v8228_v35 = vld [vmem:[#allocation8 + $0x20] sm:$0xff]  ;;  %s8297_s19 = sld [smem:[#allocation11 + $0x23]] }
 0x6f5   : > { %v2908_v31 = vadd.f32 %v2906_v18, %v2815_v13  ;;  %v2914_v37 = vadd.f32 %v2912_v19, %v2821_v15  ;;  %v3183_v33 = vstv %s8172_s14  ;;  %v8207_v19 = vld [vmem:[#allocation9] sm:$0xff]  ;;  %s6269_s14 = sld [smem:[#allocation11 + $0x44]] }
 0x6f6   : > { %v2907_v44 = vadd.f32 %v2905_v39, %v2814_v30  ;;  %v2913_v45 = vadd.f32 %v2911_v29, %v2820_v32  ;;  %v6808_v46 = vpop.f32.mrf.mxu1  ;;  %v8236_v30 = vld [vmem:[#allocation8 + $0x28] sm:$0xff]  ;;  %v3450_v29 = vstv %s6254_s20  ;;  %s8299_s20 = sld [smem:[#allocation11 + $0x47]] }
 0x6f7   : > { %v2920_v48 = vadd.f32 %v2918_v42, %v2908_v31  ;;  %v2926_v34 = vadd.f32 %v2924_v43, %v2914_v37  ;;  %v3185_v1 = vmul.f32 %v6808_v46, %v3183_v33  ;;  %v3191_v2 = vmul.f32 %v6808_v46, %v3189_v36 }
 0x6f8   : > { %v8141_v51 = vpop.f32.mrf.mxu1  ;;  %v3456_v31 = vstv %s6255_s4  ;;  %v3438_v43 = vstv %s8247_s18 }
 0x6f9   : > { %v3007_v52 = vadd.f32 %v3005_v49, %v2920_v48  ;;  %v3013_v53 = vadd.f32 %v3011_v50, %v2926_v34  ;;  %6813 = vmatprep.mubr.msk.f32.mxu0 %vm1090_vm1, %v8141_v51  ;;  %6820 = vmatprep.mubr.msk.f32.mxu1 %vm1090_vm1, %v8141_v51  ;;  %v3184_v32 = vmul.f32 %v3183_v33, %v8141_v51 }
 0x6fa   : > { %6814 = vmatmul.mubr.msk.f32.vlgmr.msra.gmra.mxu0 %vm1090_vm1, %v6808_v46  ;;  %6821 = vmatmul.mubr.msk.f32.vlgmr.msra.gmra.mxu1 %vm1090_vm1, %v6808_v46  ;;  %v3190_v38 = vmul.f32 %v3189_v36, %v8141_v51 }
 0x6fb   : > { %6824 = vmatpush3.msra.mxu0 %v8071_v41  ;;  %6827 = vmatprep.mubr.msk.f32.mxu0 %vm1090_vm1, %v8154_v28 }
 0x6fc   : > { %6825 = vmatprep.subr.mxu0 %v8146_v54  ;;  %6831 = vmatpush3.msra.mxu1 %v7702_v14  ;;  %v2917_v14 = vmul.f32 %v2916_v11, %v7990_v56 }
 0x6fd   : > { %6826 = vmatpush3.msra.mxu0 %v8146_v54  ;;  %6832 = vmatprep.subr.mxu1 %v7726_v25 }
 0x6fe   : > { %6828 = vmatmul.mubr.msk.f32.vlgmr.msra.gmra.mxu0 %vm1090_vm1, %v7717_v23  ;;  %6837 = vmatprep.subr.mxu0 %v7723_v24  ;;  %v2923_v23 = vmul.f32 %v2922_v12, %v7990_v56 }
 0x6ff   : > { %6838 = vmatpush3.msra.mxu0 %v7723_v24  ;;  %6833 = vmatpush3.msra.mxu1 %v7726_v25  ;;  %v2993_v25 = vpop.f32.mrf.mxu0 }
 0x700   : > { %6839 = vmatprep.subr.mxu0 %v7730_v26  ;;  %6844 = vmatprep.subr.mxu1 %v8168_v40  ;;  %v3004_v57 = vmul.f32 %v3003_v21, %v2993_v25  ;;  %v3010_v58 = vmul.f32 %v3009_v27, %v2993_v25  ;;  %v8212_v21 = vld [vmem:[#allocation9 + $0x28] sm:$0xff]  ;;  %v8218_v27 = vld [vmem:[#allocation9 + $0x20] sm:$0xff] }
 0x701   : > { %6840 = vmatpush3.msra.mxu0 %v7730_v26  ;;  %v2925_v26 = vadd.f32 %v2923_v23, %v2913_v45 }
 0x702   : > { %6851 = vmatprep.subr.mxu0 %v7723_v24  ;;  %v2919_v24 = vadd.f32 %v2917_v14, %v2907_v44  ;;  %v3444_v44 = vstv %s8249_s0 }
 0x703   : > { %v3012_v22 = vadd.f32 %v3010_v58, %v2925_v26 }
 0x704   : > { %v3006_v56 = vadd.f32 %v3004_v57, %v2919_v24 }
 0x7ba   : > { %v6815_v59 = vpop.f32.mrf.mxu0  ;;  %v6822_v62 = vpop.f32.mrf.mxu1 }
 0x7bb   : > { %v3173_v60 = vmul.f32 %v6815_v59, %v3171_v55  ;;  %v3179_v61 = vmul.f32 %v6815_v59, %v3177_v9  ;;  %v3272_v7 = vmul.f32 %v6822_v62, %v3270_v63  ;;  %v3278_v8 = vmul.f32 %v6822_v62, %v3276_v0 }
 0x7bc   : > { %v3161_v3 = vpop.f32.mrf.mxu0  ;;  %v3260_v39 = vpop.f32.mrf.mxu1 }
 0x7bd   : > { %v3175_v4 = vadd.f32 %v3173_v60, %v3007_v52  ;;  %v3181_v5 = vadd.f32 %v3179_v61, %v3013_v53  ;;  %v3172_v20 = vmul.f32 %v3171_v55, %v3161_v3  ;;  %v3178_v6 = vmul.f32 %v3177_v9, %v3161_v3 }
 0x7be   : > { %v6829_v10 = vpop.f32.mrf.mxu0  ;;  %v3271_v45 = vmul.f32 %v3270_v63, %v3260_v39  ;;  %v3277_v46 = vmul.f32 %v3276_v0, %v3260_v39  ;;  %v3537_v52 = vstv %s8251_s13  ;;  %v3543_v53 = vstv %s8253_s11 }
 0x7bf   : > { %v3187_v11 = vadd.f32 %v3185_v1, %v3175_v4  ;;  %v3193_v12 = vadd.f32 %v3191_v2, %v3181_v5  ;;  %v3174_v13 = vadd.f32 %v3172_v20, %v3006_v56  ;;  %v3180_v15 = vadd.f32 %v3178_v6, %v3012_v22 }
 0x7c0   : > { %v8194_v16 = vpop.f32.mrf.mxu0  ;;  %v3452_v47 = vmul.f32 %v6829_v10, %v3450_v29  ;;  %v3458_v48 = vmul.f32 %v6829_v10, %v3456_v31  ;;  %v3630_v60 = vstv %s8255_s5  ;;  %v3636_v61 = vstv %s8263_s22 }
 0x7c1   : > { %v8196_v17 = vadd.f32 %v3272_v7, %v3187_v11  ;;  %v8198_v18 = vadd.f32 %v3278_v8, %v3193_v12  ;;  %6834 = vmatprep.mubr.msk.f32.mxu1 %vm1090_vm1, %v8194_v16  ;;  %6841 = vmatprep.mubr.msk.f32.mxu0 %vm1090_vm1, %v8194_v16  ;;  %v3186_v37 = vadd.f32 %v3184_v32, %v3174_v13  ;;  %v3642_v39 = vstv %s6264_s24 }
 0x7c2   : > { %6835 = vmatmul.mubr.msk.f32.vlgmr.msra.gmra.mxu1 %vm1090_vm1, %v6829_v10  ;;  %6842 = vmatmul.mubr.msk.f32.vlgmr.msra.gmra.mxu0 %vm1090_vm1, %v6829_v10  ;;  %v3192_v42 = vadd.f32 %v3190_v38, %v3180_v15  ;;  %v3451_v25 = vmul.f32 %v3450_v29, %v8194_v16  ;;  %v3457_v24 = vmul.f32 %v3456_v31, %v8194_v16  ;;  %v3648_v29 = vstv %s6265_s10 }
 0x7c3   : > { %6845 = vmatpush3.msra.mxu1 %v8168_v40  ;;  %6848 = vmatprep.mubr.msk.f32.mxu1 %vm1090_vm1, %v8146_v54  ;;  %v3273_v14 = vadd.f32 %v3271_v45, %v3186_v37  ;;  %v3644_v37 = vmul.f32 %v3642_v39, %v8071_v41 }
 0x7c4   : > { %6846 = vmatprep.subr.mxu1 %v8207_v19  ;;  %6852 = vmatpush3.msra.mxu0 %v8212_v21  ;;  %v3279_v23 = vadd.f32 %v3277_v46, %v3192_v42  ;;  %v3650_v42 = vmul.f32 %v3648_v29, %v8071_v41 }
 0x7c5   : > { %6855 = vmatprep.mubr.msk.f32.mxu0 %vm1090_vm1, %v8146_v54  ;;  %6847 = vmatpush3.msra.mxu1 %v8207_v19 }
 0x7c6   : > { %6853 = vmatprep.subr.mxu0 %v8218_v27  ;;  %6858 = vmatprep.subr.mxu1 %v8071_v41 }
 0x7c7   : > { %6854 = vmatpush3.msra.mxu0 %v8218_v27  ;;  %6849 = vmatmul.mubr.msk.f32.vlgmr.msra.gmra.mxu1 %vm1090_vm1, %v8071_v41 }
 0x7c8   : > { %6856 = vmatmul.mubr.msk.f32.vlgmr.msra.gmra.mxu0 %vm1090_vm1, %v8071_v41  ;;  %6859 = vmatpush3.msra.mxu1 %v8071_v41 }
 0x7c9   : > { %6862 = vmatprep.mubr.msk.f32.mxu1 %vm1090_vm1, %v8228_v35  ;;  %6860 = vmatprep.subr.mxu1 %v8146_v54 }
 0x7ca   : > { %6865 = vmatprep.subr.mxu0 %v8168_v40  ;;  %6861 = vmatpush3.msra.mxu1 %v8146_v54 }
 0x7cb   : > { %6866 = vmatpush3.msra.mxu0 %v8168_v40  ;;  %6863 = vmatmul.mubr.msk.f32.vlgmr.msra.gmra.mxu1 %vm1090_vm1, %v8236_v30 }
 0x7cc   : > { %6872 = vmatprep.subr.mxu1 %v8212_v21  ;;  %6867 = vmatprep.subr.mxu0 %v8207_v19 }
 0x7cd   : > { %6873 = vmatpush3.msra.mxu1 %v8212_v21  ;;  %6868 = vmatpush3.msra.mxu0 %v8207_v19 }
 0x7ce   : > { %6874 = vmatprep.subr.mxu1 %v8218_v27 }
 0x7cf   : > { %6875 = vmatpush3.msra.mxu1 %v8218_v27 }
 0x7d0   : > { %6886 = vmatprep.subr.mxu1 %v8168_v40 }
 0x882   : > { %v6836_v34 = vpop.f32.mrf.mxu1  ;;  %v6843_v51 = vpop.f32.mrf.mxu0 }
 0x883   : > { %v3440_v49 = vmul.f32 %v6836_v34, %v3438_v43  ;;  %v3446_v50 = vmul.f32 %v6836_v34, %v3444_v44  ;;  %v3539_v58 = vmul.f32 %v6843_v51, %v3537_v52  ;;  %v3545_v59 = vmul.f32 %v6843_v51, %v3543_v53 }
 0x884   : > { %v3428_v26 = vpop.f32.mrf.mxu1  ;;  %v3527_v57 = vpop.f32.mrf.mxu0 }
 0x885   : > { %v3442_v55 = vadd.f32 %v3440_v49, %v8196_v17  ;;  %v3448_v9 = vadd.f32 %v3446_v50, %v8198_v18  ;;  %v3439_v33 = vmul.f32 %v3438_v43, %v3428_v26  ;;  %v3445_v36 = vmul.f32 %v3444_v44, %v3428_v26 }
 0x886   : > { %v3538_v22 = vmul.f32 %v3537_v52, %v3527_v57  ;;  %v3544_v1 = vmul.f32 %v3543_v53, %v3527_v57  ;;  %v3729_v43 = vstv %s6268_s15  ;;  %v3735_v44 = vstv %s6269_s14 }
 0x887   : > { %v3454_v62 = vadd.f32 %v3452_v47, %v3442_v55  ;;  %v3460_v63 = vadd.f32 %v3458_v48, %v3448_v9  ;;  %v3441_v0 = vadd.f32 %v3439_v33, %v3273_v14  ;;  %v3447_v56 = vadd.f32 %v3445_v36, %v3279_v23  ;;  %v6850_v2 = vpop.f32.mrf.mxu1 }
 0x888   : > { %v3632_v6 = vmul.f32 %v6850_v2, %v3630_v60  ;;  %v3638_v7 = vmul.f32 %v6850_v2, %v3636_v61  ;;  %v6857_v31 = vpop.f32.mrf.mxu0  ;;  %v3643_v47 = vmul.f32 %v3642_v39, %v8146_v54  ;;  %v3649_v48 = vmul.f32 %v3648_v29, %v8146_v54 }
 0x889   : > { %v3541_v3 = vadd.f32 %v3539_v58, %v3454_v62  ;;  %v3547_v4 = vadd.f32 %v3545_v59, %v3460_v63  ;;  %v3453_v5 = vadd.f32 %v3451_v25, %v3441_v0  ;;  %v3459_v20 = vadd.f32 %v3457_v24, %v3447_v56  ;;  %v3620_v8 = vpop.f32.mrf.mxu1 }
 0x88a   : > { %v3631_v12 = vmul.f32 %v3630_v60, %v3620_v8  ;;  %v3637_v13 = vmul.f32 %v3636_v61, %v3620_v8  ;;  %v3731_v34 = vmul.f32 %v6857_v31, %v3729_v43  ;;  %v3737_v49 = vmul.f32 %v6857_v31, %v3735_v44  ;;  %v3719_v50 = vpop.f32.mrf.mxu0 }
 0x88b   : > { %v3540_v10 = vadd.f32 %v3538_v22, %v3453_v5  ;;  %v3546_v11 = vadd.f32 %v3544_v1, %v3459_v20  ;;  %v3634_v15 = vadd.f32 %v3632_v6, %v3541_v3  ;;  %v3640_v16 = vadd.f32 %v3638_v7, %v3547_v4  ;;  %v6864_v17 = vpop.f32.mrf.mxu1 }
 0x88c   : > { %v3897_v53 = vstv %s8291_s6  ;;  %v3903_v14 = vstv %s8293_s26  ;;  %v3909_v23 = vstv %s8289_s25  ;;  %v3915_v25 = vstv %s8295_s23  ;;  %s8398_s6 = sld [smem:[#allocation12 + $0x4]] }
 0x88d   : > { %v3633_v18 = vadd.f32 %v3631_v12, %v3540_v10  ;;  %v3639_v32 = vadd.f32 %v3637_v13, %v3546_v11  ;;  %v3806_v38 = vpop.f32.mrf.mxu1  ;;  %v3646_v45 = vadd.f32 %v3644_v37, %v3634_v15  ;;  %v3652_v46 = vadd.f32 %v3650_v42, %v3640_v16  ;;  %s8400_s26 = sld [smem:[#allocation12 + $0x16]] }
 0x88e   : > { %6869 = vmatprep.mubr.msk.f32.mxu0 %vm1090_vm1, %v3806_v38  ;;  %6876 = vmatprep.mubr.msk.f32.mxu1 %vm1090_vm1, %v3806_v38  ;;  %v3730_v26 = vmul.f32 %v3729_v43, %v3719_v50  ;;  %v3736_v55 = vmul.f32 %v3735_v44, %v3719_v50  ;;  %v3996_v54 = vstv %s8297_s19  ;;  %v4002_v58 = vstv %s8299_s20  ;;  %s8402_s23 = sld [smem:[#allocation12 + $0x28]] }
 0x88f   : > { %6870 = vmatmul.mubr.msk.f32.vlgmr.msra.gmra.mxu0 %vm1090_vm1, %v6864_v17  ;;  %6877 = vmatmul.mubr.msk.f32.vlgmr.msra.gmra.mxu1 %vm1090_vm1, %v6864_v17  ;;  %v3645_v51 = vadd.f32 %v3643_v47, %v3633_v18  ;;  %v3651_v52 = vadd.f32 %v3649_v48, %v3639_v32  ;;  %v3733_v41 = vadd.f32 %v3731_v34, %v3646_v45  ;;  %s8404_s19 = sld [smem:[#allocation12 + $0x3a]] }
 0x890   : > { %6883 = vmatprep.mubr.msk.f32.mxu0 %vm1090_vm1, %v8154_v28  ;;  %6887 = vmatpush3.msra.mxu1 %v8168_v40  ;;  %v3739_v24 = vadd.f32 %v3737_v49, %v3652_v46  ;;  %v3911_v61 = vmul.f32 %v6864_v17, %v3909_v23  ;;  %v3917_v62 = vmul.f32 %v6864_v17, %v3915_v25  ;;  %s8406_s20 = sld [smem:[#allocation12 + $0x1]] }
 0x891   : > { %6888 = vmatprep.subr.mxu1 %v8207_v19  ;;  %v3732_v59 = vadd.f32 %v3730_v26, %v3645_v51  ;;  %v3738_v60 = vadd.f32 %v3736_v55, %v3651_v52  ;;  %v3910_v3 = vmul.f32 %v3909_v23, %v3806_v38  ;;  %v3916_v4 = vmul.f32 %v3915_v25, %v3806_v38 }
 0x892   : > { %6889 = vmatpush3.msra.mxu1 %v8207_v19 }
 0x893   : > { %6900 = vmatprep.subr.mxu1 %v8168_v40 }
 0x94f   : > { %v6871_v9 = vpop.f32.mrf.mxu0  ;;  %v6878_v57 = vpop.f32.mrf.mxu1 }
 0x950   : > { %v3899_v33 = vmul.f32 %v6871_v9, %v3897_v53  ;;  %v3905_v36 = vmul.f32 %v6871_v9, %v3903_v14  ;;  %v3998_v5 = vmul.f32 %v6878_v57, %v3996_v54  ;;  %v4004_v20 = vmul.f32 %v6878_v57, %v4002_v58 }
 0x951   : > { %v3887_v63 = vpop.f32.mrf.mxu0  ;;  %v3986_v2 = vpop.f32.mrf.mxu1 }
 0x952   : > { %v3901_v0 = vadd.f32 %v3899_v33, %v3733_v41  ;;  %v3907_v56 = vadd.f32 %v3905_v36, %v3739_v24  ;;  %v3898_v22 = vmul.f32 %v3897_v53, %v3887_v63  ;;  %v3904_v1 = vmul.f32 %v3903_v14, %v3887_v63 }
 0x953   : > { %v3997_v11 = vmul.f32 %v3996_v54, %v3986_v2  ;;  %v4003_v12 = vmul.f32 %v4002_v58, %v3986_v2 }
 0x954   : > { %v3900_v6 = vadd.f32 %v3898_v22, %v3732_v59  ;;  %v3906_v7 = vadd.f32 %v3904_v1, %v3738_v60  ;;  %v3919_v8 = vadd.f32 %v3917_v62, %v3907_v56  ;;  %v3913_v10 = vadd.f32 %v3911_v61, %v3901_v0 }
 0x956   : > { %v3918_v13 = vadd.f32 %v3916_v4, %v3906_v7  ;;  %v8311_v15 = vadd.f32 %v4004_v20, %v3919_v8  ;;  %v3912_v16 = vadd.f32 %v3910_v3, %v3900_v6  ;;  %v4000_v17 = vadd.f32 %v3998_v5, %v3913_v10 }
 0x958   : > { %v4005_v18 = vadd.f32 %v4003_v12, %v3918_v13  ;;  %v3999_v32 = vadd.f32 %v3997_v11, %v3912_v16  ;;  %v4052_v38 = vsel %vm1090_vm1, %v8311_v15, 0.0  ;;  %v4008_v31 = vsel %vm1090_vm1, %v4000_v17, 0.0  ;;  %v8339_v11 = vld [vmem:[#allocation8 + $0x8] sm:$0xff] }
 0x95a   : > { %v4051_v39 = vsel %vm1090_vm1, %v4005_v18, 0.0  ;;  %v4007_v29 = vsel %vm1090_vm1, %v3999_v32, 0.0 }
 0x95b   : > { %v4053_v37 = vadd.f32 %v4052_v38, %v4051_v39  ;;  %v4009_v42 = vadd.f32 %v4008_v31, %v4007_v29 }
 0x95d   : > { %4054 = vadd.xlane.f32.xlu1 %v4053_v37  ;;  %4010 = vadd.xlane.f32.xlu0 %v4009_v42 }
 0x9e6   : > { %v4011_v43 = vpop.xlane.xlu0 %4010  ;;  %v4055_v57 = vpop.xlane.xlu1 %4054 }
 0x9e7   : > { %v4012_v44 = vrot.slane %v4011_v43, 4  ;;  %v4056_v54 = vrot.slane %v4055_v57, 4 }
 0x9e9   : > { %v4013_v45 = vadd.f32 %v4012_v44, %v4011_v43  ;;  %v4057_v58 = vadd.f32 %v4056_v54, %v4055_v57  ;;  %v4504_v43 = vstv %s8398_s6  ;;  %v4510_v44 = vstv %s8400_s26  ;;  %s8687_s6 = sld [smem:[#allocation12 + $0x9]] }
 0x9ea   : > { %s8689_s26 = sld [smem:[#allocation12 + $0x1b]] }
 0x9eb   : > { %v4014_v46 = vrot.slane %v4013_v45, 2  ;;  %v4058_v60 = vrot.slane %v4057_v58, 2 }
 0x9ed   : > { %v4015_v47 = vadd.f32 %v4014_v46, %v4013_v45  ;;  %v4059_v61 = vadd.f32 %v4058_v60, %v4057_v58  ;;  %v4276_v45 = vstv %s8406_s20  ;;  %s8571_s20 = sld [smem:[#allocation12 + $0x3d]] }
 0x9ef   : > { %v4016_v48 = vrot.slane %v4015_v47, 1  ;;  %v4060_v62 = vrot.slane %v4059_v61, 1 }
 0x9f1   : > { %v4017_v34 = vadd.f32 %v4016_v48, %v4015_v47  ;;  %v4061_v0 = vadd.f32 %v4060_v62, %v4059_v61  ;;  %v8980_v47 = vstv %s8402_s23  ;;  %v8979_v48 = vstv %s8404_s19 }
 0x9f3   : > { %6991 = vpush %v4017_v34 }
 0xa24   : > { %s6992_s4 = spop %6991 }
 0xa25   : > { %s4021_s18 = smul.f32 0.00390625, %s6992_s4  ;;  %s8408_s4 = sld [smem:[#allocation12 + $0x13]] }
 0xa27   : > { %v4022_v49 = vstv %s4021_s18  ;;  %s8410_s18 = sld [smem:[#allocation12 + $0x25]] }
 0xa28   : > { %v4023_v50 = vsub.f32 %v3999_v32, %v4022_v49  ;;  %v4024_v51 = vsub.f32 %v4000_v17, %v4022_v49 }
 0xa2a   : > { %v4025_v52 = vmul.f32 %v4023_v50, %v4023_v50  ;;  %v4026_v53 = vmul.f32 %v4024_v51, %v4024_v51 }
 0xa2b   : > { %v4282_v46 = vstv %s8408_s4  ;;  %s8573_s4 = sld [smem:[#allocation12 + $0x6]] }
 0xa2c   : > { %v4027_v14 = vsel %vm1090_vm1, %v4025_v52, 0.0  ;;  %v4028_v23 = vsel %vm1090_vm1, %v4026_v53, 0.0 }
 0xa2d   : > { %v4029_v25 = vadd.f32 %v4028_v23, %v4027_v14  ;;  %v4288_v34 = vstv %s8410_s18  ;;  %s8575_s18 = sld [smem:[#allocation12 + $0x18]] }
 0xa2f   : > { %4030 = vadd.xlane.f32.xlu0 %v4029_v25 }
 0xab8   : > { %v4031_v41 = vpop.xlane.xlu0 %4030 }
 0xab9   : > { %v4032_v24 = vrot.slane %v4031_v41, 4 }
 0xabb   : > { %v4033_v26 = vadd.f32 %v4032_v24, %v4031_v41 }
 0xabd   : > { %v4034_v55 = vrot.slane %v4033_v26, 2 }
 0xabf   : > { %v4035_v9 = vadd.f32 %v4034_v55, %v4033_v26 }
 0xac1   : > { %v4036_v33 = vrot.slane %v4035_v9, 1 }
 0xac3   : > { %v4037_v36 = vadd.f32 %v4036_v33, %v4035_v9 }
 0xac5   : > { %6993 = vpush %v4037_v36 }
 0xaf6   : > { %s6994_s0 = spop %6993 }
 0xaf7   : > { %s4041_s13 = smul.f32 0.00390625, %s6994_s0  ;;  %s8412_s0 = sld [smem:[#allocation12 + $0x37]] }
 0xaf9   : > { %s4042_s11 = sadd.f32 1e-05, %s4041_s13 }
 0xafa   : > { %s8414_s13 = sld [smem:[#allocation12]] }
 0xafb   : > { %v4043_v59 = vstv %s4042_s11  ;;  %s8416_s11 = sld [smem:[#allocation12 + $0x12]] }
 0xafc   : > { %7123 = vrsqrt.f32 %v4043_v59 }
 0xafd   : > { %v4294_v49 = vstv %s8412_s0  ;;  %s8577_s0 = sld [smem:[#allocation12 + $0x2a]] }
 0xb00   : > { %v4252_v55 = vstv %s8414_s13  ;;  %s8579_s13 = sld [smem:[#allocation12 + $0x3c]] }
 0xb01   : > { %v4258_v57 = vstv %s8416_s11  ;;  %s8581_s11 = sld [smem:[#allocation12 + $0x8]] }
 0xb09   : > { %v7124_v63 = vpop.eup %7123 }
 0xb0a   : > { %6995 = vpush %v7124_v63 }
 0xb0b   : > { %6997 = vpush %v4061_v0 }
 0xb3b   : > { %s6996_s5 = spop %6995 }
 0xb3c   : > { %v4046_v56 = vstv %s6996_s5  ;;  %s6998_s22 = spop %6997  ;;  %s8418_s5 = sld [smem:[#allocation12 + $0x24]] }
 0xb3d   : > { %v4047_v22 = vmul.f32 %v4046_v56, %v4023_v50  ;;  %v4048_v1 = vmul.f32 %v4046_v56, %v4024_v51  ;;  %s4065_s24 = smul.f32 0.00390625, %s6998_s22  ;;  %s8420_s22 = sld [smem:[#allocation12 + $0x36]]  ;;  %v4486_v56 = vstv %s8432_s7 }
 0xb3e   : > { %s8569_s7 = sld [smem:[#allocation12 + $0x2b]] }
 0xb3f   : > { %v8320_v2 = vmax.f32 %v4048_v1, 0.0  ;;  %v4066_v3 = vstv %s4065_s24  ;;  %v8327_v20 = vmax.f32 %v4047_v22, 0.0  ;;  %s8422_s24 = sld [smem:[#allocation12 + $0x2]]  ;;  %v4492_v22 = vstv %s8434_s1 }
 0xb40   : > { %v8322_v4 = vsub.f32 %v4005_v18, %v4066_v3  ;;  %v8325_v5 = vsub.f32 %v8311_v15, %v4066_v3  ;;  %v4498_v1 = vstv %s8436_s2  ;;  %s8565_s1 = sld [smem:[#allocation12 + $0x7]] }
 0xb41   : > { %6879 = vmatprep.subr.mxu0 %v8320_v2  ;;  %v8457_v50 = vmul.f32 %v4504_v43, %v8320_v2  ;;  %v8462_v51 = vmul.f32 %v4510_v44, %v8320_v2  ;;  %v8469_v14 = vmul.f32 %v8980_v47, %v8320_v2  ;;  %v8474_v23 = vmul.f32 %v8979_v48, %v8320_v2  ;;  %s8567_s2 = sld [smem:[#allocation12 + $0x19]] }
 0xb42   : > { %v4069_v6 = vmul.f32 %v8322_v4, %v8322_v4  ;;  %v4070_v7 = vmul.f32 %v8325_v5, %v8325_v5  ;;  %6880 = vmatpush3.msra.mxu0 %v8320_v2  ;;  %v4264_v54 = vstv %s8418_s5  ;;  %s8583_s5 = sld [smem:[#allocation12 + $0x1a]] }
 0xb43   : > { %6881 = vmatprep.subr.mxu0 %v8327_v20  ;;  %v4270_v58 = vstv %s8420_s22  ;;  %s8585_s22 = sld [smem:[#allocation12 + $0x2c]] }
 0xb44   : > { %6882 = vmatpush3.msra.mxu0 %v8327_v20  ;;  %v4071_v8 = vsel %vm1090_vm1, %v4069_v6, 0.0  ;;  %v4072_v10 = vsel %vm1090_vm1, %v4070_v7, 0.0  ;;  %v4615_v6 = vstv %s8448_s28  ;;  %v4621_v7 = vstv %s8452_s21  ;;  %s8681_s28 = sld [smem:[#allocation12 + $0x1c]] }
 0xb45   : > { %6884 = vmatmul.mubr.msk.f32.vlgmr.msra.gmra.mxu0 %vm1090_vm1, %v8339_v11  ;;  %v4073_v12 = vadd.f32 %v4072_v10, %v4071_v8  ;;  %6893 = vmatprep.subr.mxu0 %v8212_v21  ;;  %v4375_v59 = vstv %s8422_s24  ;;  %s8590_s24 = sld [smem:[#allocation12 + $0x3e]] }
 0xb46   : > { %6894 = vmatpush3.msra.mxu0 %v8212_v21  ;;  %s8685_s21 = sld [smem:[#allocation12 + $0x40]] }
 0xb47   : > { %4074 = vadd.xlane.f32.xlu1 %v4073_v12  ;;  %6895 = vmatprep.subr.mxu0 %v8218_v27 }
 0xb48   : > { %6896 = vmatpush3.msra.mxu0 %v8218_v27 }
 0xb49   : > { %6907 = vmatprep.subr.mxu0 %v8212_v21 }
 0xbd0   : > { %v4075_v13 = vpop.xlane.xlu1 %4074 }
 0xbd1   : > { %v4076_v15 = vrot.slane %v4075_v13, 4 }
 0xbd3   : > { %v4077_v16 = vadd.f32 %v4076_v15, %v4075_v13 }
 0xbd5   : > { %v4078_v17 = vrot.slane %v4077_v16, 2 }
 0xbd7   : > { %v4079_v18 = vadd.f32 %v4078_v17, %v4077_v16 }
 0xbd9   : > { %v4080_v32 = vrot.slane %v4079_v18, 1 }
 0xbdb   : > { %v4081_v39 = vadd.f32 %v4080_v32, %v4079_v18 }
 0xbdd   : > { %6999 = vpush %v4081_v39 }
 0xc05   : > { %v8348_v38 = vpop.f32.mrf.mxu0 }
 0xc06   : > { %v4278_v52 = vmul.f32 %v8348_v38, %v4276_v45  ;;  %v4284_v53 = vmul.f32 %v8348_v38, %v4282_v46  ;;  %v4290_v41 = vmul.f32 %v8348_v38, %v4288_v34  ;;  %v4296_v24 = vmul.f32 %v8348_v38, %v4294_v49 }
 0xc07   : > { %v8350_v29 = vpop.f32.mrf.mxu0 }
 0xc08   : > { %6890 = vmatprep.mubr.msk.f32.mxu1 %vm1090_vm1, %v8350_v29  ;;  %6897 = vmatprep.mubr.msk.f32.mxu0 %vm1090_vm1, %v8350_v29  ;;  %v4277_v26 = vmul.f32 %v4276_v45, %v8350_v29  ;;  %v4283_v9 = vmul.f32 %v4282_v46, %v8350_v29  ;;  %v4289_v33 = vmul.f32 %v4288_v34, %v8350_v29 }
 0xc09   : > { %6891 = vmatmul.mubr.msk.f32.vlgmr.msra.gmra.mxu1 %vm1090_vm1, %v8348_v38  ;;  %6898 = vmatmul.mubr.msk.f32.vlgmr.msra.gmra.mxu0 %vm1090_vm1, %v8348_v38  ;;  %v4295_v36 = vmul.f32 %v4294_v49, %v8350_v29 }
 0xc0a   : > { %6901 = vmatpush3.msra.mxu1 %v8168_v40  ;;  %6904 = vmatprep.mubr.msk.f32.mxu1 %vm1090_vm1, %v8327_v20 }
 0xc0b   : > { %6902 = vmatprep.subr.mxu1 %v8207_v19  ;;  %6908 = vmatpush3.msra.mxu0 %v8212_v21 }
 0xc0c   : > { %6911 = vmatprep.mubr.msk.f32.mxu0 %vm1090_vm1, %v8327_v20  ;;  %6903 = vmatpush3.msra.mxu1 %v8207_v19 }
 0xc0d   : > { %6909 = vmatprep.subr.mxu0 %v8218_v27  ;;  %6914 = vmatprep.subr.mxu1 %v8320_v2 }
 0xc0e   : > { %6910 = vmatpush3.msra.mxu0 %v8218_v27  ;;  %s7000_s10 = spop %6999  ;;  %6905 = vmatmul.mubr.msk.f32.vlgmr.msra.gmra.mxu1 %vm1090_vm1, %v8320_v2 }
 0xc0f   : > { %s4085_s15 = smul.f32 0.00390625, %s7000_s10  ;;  %6912 = vmatmul.mubr.msk.f32.vlgmr.msra.gmra.mxu0 %vm1090_vm1, %v8320_v2  ;;  %6915 = vmatpush3.msra.mxu1 %v8320_v2  ;;  %s8424_s10 = sld [smem:[#allocation12 + $0x14]] }
 0xc10   : > { %6916 = vmatprep.subr.mxu1 %v8327_v20  ;;  %6918 = vmatprep.mubr.msk.f32.mxu1 %vm1090_vm1, %v8228_v35 }
 0xc11   : > { %s4086_s14 = sadd.f32 1e-05, %s4085_s15  ;;  %6917 = vmatpush3.msra.mxu1 %v8327_v20  ;;  %6921 = vmatprep.subr.mxu0 %v8168_v40 }
 0xc12   : > { %6919 = vmatmul.mubr.msk.f32.vlgmr.msra.gmra.mxu1 %vm1090_vm1, %v8236_v30  ;;  %6922 = vmatpush3.msra.mxu0 %v8168_v40  ;;  %s8426_s15 = sld [smem:[#allocation12 + $0x26]] }
 0xc13   : > { %v4087_v31 = vstv %s4086_s14  ;;  %6923 = vmatprep.subr.mxu0 %v8207_v19  ;;  %6928 = vmatprep.subr.mxu1 %v8212_v21  ;;  %s8428_s14 = sld [smem:[#allocation12 + $0x38]] }
 0xc14   : > { %7125 = vrsqrt.f32 %v4087_v31  ;;  %6924 = vmatpush3.msra.mxu0 %v8207_v19  ;;  %6929 = vmatpush3.msra.mxu1 %v8212_v21 }
 0xc15   : > { %6930 = vmatprep.subr.mxu1 %v8218_v27  ;;  %v4381_v60 = vstv %s8424_s10  ;;  %s8695_s10 = sld [smem:[#allocation12 + $0xb]] }
 0xc16   : > { %6931 = vmatpush3.msra.mxu1 %v8218_v27 }
 0xc17   : > { %6942 = vmatprep.subr.mxu1 %v8168_v40 }
 0xc18   : > { %v4387_v61 = vstv %s8426_s15  ;;  %s8697_s15 = sld [smem:[#allocation12 + $0x1d]] }
 0xc19   : > { %v4393_v62 = vstv %s8428_s14  ;;  %s8702_s14 = sld [smem:[#allocation12 + $0x2f]] }
 0xc21   : > { %v7126_v35 = vpop.eup %7125 }
 0xc22   : > { %7001 = vpush %v7126_v35 }
 0xc53   : > { %s8391_s25 = spop %7001 }
 0xc54   : > { %v4090_v30 = vstv %s8391_s25  ;;  %s8430_s25 = sld [smem:[#allocation12 + $0x3]] }
 0xc55   : > { %v4092_v37 = vmul.f32 %v4090_v30, %v8325_v5  ;;  %v4091_v25 = vmul.f32 %v4090_v30, %v8322_v4  ;;  %v4603_v4 = vstv %s8438_s3  ;;  %v4609_v5 = vstv %s8442_s29  ;;  %s8679_s3 = sld [smem:[#allocation12 + $0xa]] }
 0xc56   : > { %s8683_s29 = sld [smem:[#allocation12 + $0x2e]] }
 0xc57   : > { %v8395_v42 = vmax.f32 %v4092_v37, 0.0  ;;  %v8492_v0 = vmax.f32 %v4091_v25, 0.0 }
 0xc59   : > { %6935 = vmatprep.subr.mxu0 %v8395_v42 }
 0xc5a   : > { %v4480_v63 = vstv %s8430_s25  ;;  %s8713_s25 = sld [smem:[#allocation12 + $0x41]] }
 0xcc9   : > { %v6892_v2 = vpop.f32.mrf.mxu1  ;;  %v6899_v3 = vpop.f32.mrf.mxu0 }
 0xcca   : > { %v4254_v8 = vmul.f32 %v6892_v2, %v4252_v55  ;;  %v4260_v10 = vmul.f32 %v6892_v2, %v4258_v57  ;;  %v4266_v12 = vmul.f32 %v6892_v2, %v4264_v54  ;;  %v4272_v13 = vmul.f32 %v6892_v2, %v4270_v58 }
 0xccb   : > { %v4377_v15 = vmul.f32 %v6899_v3, %v4375_v59  ;;  %v4383_v16 = vmul.f32 %v6899_v3, %v4381_v60  ;;  %v4389_v17 = vmul.f32 %v6899_v3, %v4387_v61  ;;  %v4395_v18 = vmul.f32 %v6899_v3, %v4393_v62  ;;  %v4242_v32 = vpop.f32.mrf.mxu1  ;;  %v4365_v46 = vpop.f32.mrf.mxu0 }
 0xccc   : > { %v4280_v39 = vadd.f32 %v4278_v52, %v4254_v8  ;;  %v4286_v38 = vadd.f32 %v4284_v53, %v4260_v10  ;;  %v4292_v29 = vadd.f32 %v4290_v41, %v4266_v12  ;;  %v4298_v31 = vadd.f32 %v4296_v24, %v4272_v13 }
 0xccd   : > { %v4253_v35 = vmul.f32 %v4252_v55, %v4242_v32  ;;  %v4259_v30 = vmul.f32 %v4258_v57, %v4242_v32  ;;  %v4265_v37 = vmul.f32 %v4264_v54, %v4242_v32  ;;  %v4271_v45 = vmul.f32 %v4270_v58, %v4242_v32 }
 0xcce   : > { %v4379_v34 = vadd.f32 %v4377_v15, %v4280_v39  ;;  %v4385_v49 = vadd.f32 %v4383_v16, %v4286_v38  ;;  %v4391_v25 = vadd.f32 %v4389_v17, %v4292_v29  ;;  %v4397_v2 = vadd.f32 %v4395_v18, %v4298_v31  ;;  %v6906_v48 = vpop.f32.mrf.mxu1 }
 0xccf   : > { %v4279_v3 = vadd.f32 %v4277_v26, %v4253_v35  ;;  %v4285_v47 = vadd.f32 %v4283_v9, %v4259_v30  ;;  %v4291_v52 = vadd.f32 %v4289_v33, %v4265_v37  ;;  %v4297_v53 = vadd.f32 %v4295_v36, %v4271_v45  ;;  %v6913_v9 = vpop.f32.mrf.mxu0 }
 0xcd0   : > { %v4376_v41 = vmul.f32 %v4375_v59, %v4365_v46  ;;  %v4382_v24 = vmul.f32 %v4381_v60, %v4365_v46  ;;  %v4388_v55 = vmul.f32 %v4387_v61, %v4365_v46  ;;  %v4394_v57 = vmul.f32 %v4393_v62, %v4365_v46  ;;  %v4470_v54 = vpop.f32.mrf.mxu1 }
 0xcd1   : > { %v4482_v58 = vmul.f32 %v6906_v48, %v4480_v63  ;;  %v4488_v8 = vmul.f32 %v6906_v48, %v4486_v56  ;;  %v4494_v10 = vmul.f32 %v6906_v48, %v4492_v22  ;;  %v4500_v26 = vmul.f32 %v6906_v48, %v4498_v1 }
 0xcd2   : > { %v4378_v33 = vadd.f32 %v4376_v41, %v4279_v3  ;;  %v4384_v36 = vadd.f32 %v4382_v24, %v4285_v47  ;;  %v4390_v59 = vadd.f32 %v4388_v55, %v4291_v52  ;;  %v4396_v60 = vadd.f32 %v4394_v57, %v4297_v53  ;;  %v8509_v61 = vpop.f32.mrf.mxu1 }
 0xcd3   : > { %v4484_v62 = vadd.f32 %v4482_v58, %v4379_v34  ;;  %v4490_v12 = vadd.f32 %v4488_v8, %v4385_v49  ;;  %v4496_v13 = vadd.f32 %v4494_v10, %v4391_v25  ;;  %v4502_v15 = vadd.f32 %v4500_v26, %v4397_v2 }
 0xcd4   : > { %v4605_v16 = vmul.f32 %v6913_v9, %v4603_v4  ;;  %v4611_v17 = vmul.f32 %v6913_v9, %v4609_v5  ;;  %v4617_v48 = vmul.f32 %v6913_v9, %v4615_v6  ;;  %v4623_v47 = vmul.f32 %v6913_v9, %v4621_v7  ;;  %v8519_v18 = vpop.f32.mrf.mxu1 }
 0xcd5   : > { %v4508_v32 = vadd.f32 %v8457_v50, %v4484_v62  ;;  %v4514_v39 = vadd.f32 %v8462_v51, %v4490_v12  ;;  %v4520_v38 = vadd.f32 %v8469_v14, %v4496_v13  ;;  %v4526_v29 = vadd.f32 %v8474_v23, %v4502_v15  ;;  %6925 = vmatprep.mubr.msk.f32.mxu0 %vm1090_vm1, %v8519_v18 }
 0xcd6   : > { %v4481_v31 = vmul.f32 %v4480_v63, %v4470_v54  ;;  %v4487_v35 = vmul.f32 %v4486_v56, %v4470_v54  ;;  %v4493_v30 = vmul.f32 %v4492_v22, %v4470_v54  ;;  %v4499_v37 = vmul.f32 %v4498_v1, %v4470_v54  ;;  %6932 = vmatprep.mubr.msk.f32.mxu1 %vm1090_vm1, %v8519_v18 }
 0xcd7   : > { %v8537_v50 = vadd.f32 %v4605_v16, %v4508_v32  ;;  %v8539_v51 = vadd.f32 %v4611_v17, %v4514_v39  ;;  %v8541_v14 = vadd.f32 %v4617_v48, %v4520_v38  ;;  %v8543_v23 = vadd.f32 %v4623_v47, %v4526_v29  ;;  %6926 = vmatmul.mubr.msk.f32.vlgmr.msra.gmra.mxu0 %vm1090_vm1, %v8509_v61 }
 0xcd8   : > { %v4483_v63 = vadd.f32 %v4481_v31, %v4378_v33  ;;  %v4489_v56 = vadd.f32 %v4487_v35, %v4384_v36  ;;  %v4495_v45 = vadd.f32 %v4493_v30, %v4390_v59  ;;  %v4501_v22 = vadd.f32 %v4499_v37, %v4396_v60  ;;  %6933 = vmatmul.mubr.msk.f32.vlgmr.msra.gmra.mxu1 %vm1090_vm1, %v8509_v61 }
 0xcd9   : > { %6936 = vmatpush3.msra.mxu0 %v8395_v42  ;;  %6939 = vmatprep.mubr.msk.f32.mxu0 %vm1090_vm1, %v8154_v28  ;;  %v4505_v28 = vmul.f32 %v4504_v43, %v8327_v20  ;;  %v9023_v1 = vstv %s8404_s19  ;;  %v4807_v34 = vstv %s8565_s1  ;;  %v4813_v43 = vstv %s8567_s2  ;;  %s8693_s19 = sld [smem:[#allocation12 + $0x3f]] }
 0xcda   : > { %6937 = vmatprep.subr.mxu0 %v8492_v0  ;;  %6943 = vmatpush3.msra.mxu1 %v8168_v40  ;;  %v4523_v46 = vmul.f32 %v9023_v1, %v8327_v20  ;;  %v4819_v49 = vstv %s8569_s7  ;;  %v4825_v3 = vstv %s8571_s20  ;;  %v4809_v55 = vmul.f32 %v8509_v61, %v4807_v34  ;;  %s8730_s1 = sld [smem:[#allocation12 + $0xc]] }
 0xcdb   : > { %6938 = vmatpush3.msra.mxu0 %v8492_v0  ;;  %6944 = vmatprep.subr.mxu1 %v8207_v19  ;;  %v4789_v57 = vstv %s8575_s18  ;;  %v4795_v54 = vstv %s8577_s0  ;;  %v4801_v58 = vstv %s8579_s13  ;;  %v4906_v8 = vstv %s8581_s11  ;;  %s8733_s2 = sld [smem:[#allocation12 + $0x1e]] }
 0xcdc   : > { %6940 = vmatmul.mubr.msk.f32.vlgmr.msra.gmra.mxu0 %vm1090_vm1, %v8339_v11  ;;  %6949 = vmatprep.subr.mxu0 %v8212_v21  ;;  %v4525_v53 = vadd.f32 %v4523_v46, %v4501_v22  ;;  %v4918_v10 = vstv %s8585_s22  ;;  %v4924_v26 = vstv %s8590_s24  ;;  %v4827_v60 = vmul.f32 %v8509_v61, %v4825_v3  ;;  %v7143_v46 = vld [vmem:[#allocation9 + $0x8] sm:$0xff]  ;;  %s8739_s7 = sld [smem:[#allocation12 + $0x30]] }
 0xcdd   : > { %6950 = vmatpush3.msra.mxu0 %v8212_v21  ;;  %6945 = vmatpush3.msra.mxu1 %v8207_v19  ;;  %v4507_v19 = vadd.f32 %v4505_v28, %v4483_v63  ;;  %s8745_s20 = sld [smem:[#allocation12 + $0x42]] }
 0xcde   : > { %6951 = vmatprep.subr.mxu0 %v8218_v27  ;;  %6956 = vmatprep.subr.mxu1 %v8168_v40  ;;  %v4593_v40 = vpop.f32.mrf.mxu0  ;;  %s8773_s18 = sld [smem:[#allocation12 + $0x1f]] }
 0xcdf   : > { %6952 = vmatpush3.msra.mxu0 %v8218_v27  ;;  %v9022_v27 = vstv %s8402_s23  ;;  %v4604_v25 = vmul.f32 %v4603_v4, %v4593_v40  ;;  %v4616_v2 = vmul.f32 %v4615_v6, %v4593_v40  ;;  %v4622_v41 = vmul.f32 %v4621_v7, %v4593_v40  ;;  %s8691_s23 = sld [smem:[#allocation12 + $0x2d]] }
 0xce0   : > { %6963 = vmatprep.subr.mxu0 %v8212_v21  ;;  %v4511_v21 = vmul.f32 %v4510_v44, %v8327_v20  ;;  %v4517_v11 = vmul.f32 %v9022_v27, %v8327_v20  ;;  %v4610_v44 = vmul.f32 %v4609_v5, %v4593_v40  ;;  %v4815_v4 = vmul.f32 %v8509_v61, %v4813_v43  ;;  %s8775_s0 = sld [smem:[#allocation12 + $0x31]] }
 0xce1   : > { %v4606_v24 = vadd.f32 %v4604_v25, %v4507_v19  ;;  %v4821_v5 = vmul.f32 %v8509_v61, %v4819_v49  ;;  %v4783_v6 = vstv %s8573_s4  ;;  %v4912_v7 = vstv %s8583_s5  ;;  %v7144_v25 = vld [vmem:[#allocation9] sm:$0xff]  ;;  %s8771_s4 = sld [smem:[#allocation12 + $0xd]] }
 0xce2   : > { %v4513_v52 = vadd.f32 %v4511_v21, %v4489_v56  ;;  %v4519_v20 = vadd.f32 %v4517_v11, %v4495_v45  ;;  %v4624_v36 = vadd.f32 %v4622_v41, %v4525_v53  ;;  %v4808_v53 = vmul.f32 %v4807_v34, %v8519_v18  ;;  %s8777_s13 = sld [smem:[#allocation12 + $0x43]] }
 0xce3   : > { %v4814_v41 = vmul.f32 %v4813_v43, %v8519_v18  ;;  %v5116_v34 = vstv %s8681_s28  ;;  %s8779_s11 = sld [smem:[#allocation12 + $0xe]] }
 0xce4   : > { %v4612_v9 = vadd.f32 %v4610_v44, %v4513_v52  ;;  %v4618_v33 = vadd.f32 %v4616_v2, %v4519_v20  ;;  %v7145_v44 = vld [vmem:[#allocation9 + $0x28] sm:$0xff]  ;;  %v7146_v2 = vld [vmem:[#allocation9 + $0x20] sm:$0xff]  ;;  %v7147_v52 = vld [vmem:[#allocation8 + $0x20] sm:$0xff]  ;;  %s8781_s5 = sld [smem:[#allocation12 + $0x20]] }
 0xce5   : > { %v7148_v20 = vld [vmem:[#allocation8 + $0x28] sm:$0xff]  ;;  %s8783_s22 = sld [smem:[#allocation12 + $0x32]] }
 0xce6   : > { %s8785_s24 = sld [smem:[#allocation12 + $0x44]] }
 0xce7   : > { %s8789_s28 = sld [smem:[#allocation12 + $0x22]] }
 0xd97   : > { %v6927_v59 = vpop.f32.mrf.mxu0 }
 0xd98   : > { %v4785_v62 = vmul.f32 %v6927_v59, %v4783_v6  ;;  %v4791_v12 = vmul.f32 %v6927_v59, %v4789_v57  ;;  %v4797_v13 = vmul.f32 %v6927_v59, %v4795_v54  ;;  %v4803_v15 = vmul.f32 %v6927_v59, %v4801_v58  ;;  %v6934_v16 = vpop.f32.mrf.mxu1 }
 0xd99   : > { %v4908_v17 = vmul.f32 %v6934_v16, %v4906_v8  ;;  %v4914_v48 = vmul.f32 %v6934_v16, %v4912_v7  ;;  %v4920_v47 = vmul.f32 %v6934_v16, %v4918_v10  ;;  %v4926_v32 = vmul.f32 %v6934_v16, %v4924_v26  ;;  %v4773_v39 = vpop.f32.mrf.mxu0 }
 0xd9a   : > { %v4787_v38 = vadd.f32 %v4785_v62, %v8537_v50  ;;  %v4793_v29 = vadd.f32 %v4791_v12, %v8539_v51  ;;  %v4799_v61 = vadd.f32 %v4797_v13, %v8541_v14  ;;  %v4805_v31 = vadd.f32 %v4803_v15, %v8543_v23 }
 0xd9b   : > { %v4784_v35 = vmul.f32 %v4783_v6, %v4773_v39  ;;  %v4790_v30 = vmul.f32 %v4789_v57, %v4773_v39  ;;  %v4796_v37 = vmul.f32 %v4795_v54, %v4773_v39  ;;  %v4802_v63 = vmul.f32 %v4801_v58, %v4773_v39 }
 0xd9c   : > { %v4811_v56 = vadd.f32 %v4809_v55, %v4787_v38  ;;  %v4817_v45 = vadd.f32 %v4815_v4, %v4793_v29  ;;  %v4823_v22 = vadd.f32 %v4821_v5, %v4799_v61  ;;  %v4829_v28 = vadd.f32 %v4827_v60, %v4805_v31  ;;  %v8645_v40 = vpop.f32.mrf.mxu0  ;;  %v4896_v4 = vpop.f32.mrf.mxu1 }
 0xd9d   : > { %v4786_v19 = vadd.f32 %v4784_v35, %v4606_v24  ;;  %v4792_v21 = vadd.f32 %v4790_v30, %v4612_v9  ;;  %v4798_v27 = vadd.f32 %v4796_v37, %v4618_v33  ;;  %v4804_v50 = vadd.f32 %v4802_v63, %v4624_v36 }
 0xd9e   : > { %v8647_v11 = vadd.f32 %v4908_v17, %v4811_v56  ;;  %v8649_v51 = vadd.f32 %v4914_v48, %v4817_v45  ;;  %v8651_v14 = vadd.f32 %v4920_v47, %v4823_v22  ;;  %v8653_v23 = vadd.f32 %v4926_v32, %v4829_v28  ;;  %v8655_v1 = vpop.f32.mrf.mxu0 }
 0xd9f   : > { %6946 = vmatprep.mubr.msk.f32.mxu1 %vm1090_vm1, %v8655_v1  ;;  %6953 = vmatprep.mubr.msk.f32.mxu0 %vm1090_vm1, %v8655_v1  ;;  %v4820_v24 = vmul.f32 %v4819_v49, %v8519_v18  ;;  %v4826_v55 = vmul.f32 %v4825_v3, %v8519_v18  ;;  %v4810_v5 = vadd.f32 %v4808_v53, %v4786_v19  ;;  %v5110_v6 = vstv %s8679_s3  ;;  %s8787_s3 = sld [smem:[#allocation12 + $0x10]] }
 0xda0   : > { %6947 = vmatmul.mubr.msk.f32.vlgmr.msra.gmra.mxu1 %vm1090_vm1, %v8645_v40  ;;  %6954 = vmatmul.mubr.msk.f32.vlgmr.msra.gmra.mxu0 %vm1090_vm1, %v8645_v40  ;;  %v4816_v57 = vadd.f32 %v4814_v41, %v4792_v21  ;;  %v5122_v9 = vstv %s8683_s29  ;;  %v4907_v43 = vmul.f32 %v4906_v8, %v4896_v4  ;;  %v5128_v33 = vstv %s8685_s21  ;;  %s8791_s29 = sld [smem:[#allocation12 + $0x34]] }
 0xda1   : > { %6957 = vmatpush3.msra.mxu1 %v7143_v46  ;;  %6960 = vmatprep.mubr.msk.f32.mxu1 %vm1090_vm1, %v8492_v0  ;;  %v4822_v54 = vadd.f32 %v4820_v24, %v4798_v27  ;;  %v4828_v58 = vadd.f32 %v4826_v55, %v4804_v50  ;;  %v4913_v49 = vmul.f32 %v4912_v7, %v4896_v4  ;;  %v5092_v13 = vstv %s8689_s26  ;;  %s8796_s21 = sld [smem:[#allocation12 + $0x46]] }
 0xda2   : > { %6958 = vmatprep.subr.mxu1 %v7144_v25  ;;  %6964 = vmatpush3.msra.mxu0 %v7145_v44  ;;  %v4919_v18 = vmul.f32 %v4918_v10, %v4896_v4  ;;  %v4925_v3 = vmul.f32 %v4924_v26, %v4896_v4  ;;  %v4909_v36 = vadd.f32 %v4907_v43, %v4810_v5  ;;  %v5086_v26 = vstv %s8687_s6  ;;  %s8799_s6 = sld [smem:[#allocation12 + $0xf]] }
 0xda3   : > { %6967 = vmatprep.mubr.msk.f32.mxu0 %vm1090_vm1, %v8492_v0  ;;  %6959 = vmatpush3.msra.mxu1 %v7144_v25  ;;  %v5112_v59 = vmul.f32 %v8645_v40, %v5110_v6  ;;  %v5118_v60 = vmul.f32 %v8645_v40, %v5116_v34  ;;  %v5124_v8 = vmul.f32 %v8645_v40, %v5122_v9  ;;  %v5098_v15 = vstv %s8691_s23  ;;  %s8801_s26 = sld [smem:[#allocation12 + $0x21]] }
 0xda4   : > { %6965 = vmatprep.subr.mxu0 %v7146_v2  ;;  %6970 = vmatprep.subr.mxu1 %v8395_v42  ;;  %v4915_v62 = vadd.f32 %v4913_v49, %v4816_v57  ;;  %v4921_v7 = vadd.f32 %v4919_v18, %v4822_v54  ;;  %v4927_v12 = vadd.f32 %v4925_v3, %v4828_v58  ;;  %v5104_v16 = vstv %s8693_s19  ;;  %s8806_s23 = sld [smem:[#allocation12 + $0x33]] }
 0xda5   : > { %6966 = vmatpush3.msra.mxu0 %v7146_v2  ;;  %6961 = vmatmul.mubr.msk.f32.vlgmr.msra.gmra.mxu1 %vm1090_vm1, %v8395_v42  ;;  %v5130_v10 = vmul.f32 %v8645_v40, %v5128_v33  ;;  %v5209_v17 = vstv %s8695_s10  ;;  %v5215_v48 = vstv %s8697_s15  ;;  %v5221_v47 = vstv %s8702_s14  ;;  %s8812_s19 = sld [smem:[#allocation12 + $0x45]] }
 0xda6   : > { %6968 = vmatmul.mubr.msk.f32.vlgmr.msra.gmra.mxu0 %vm1090_vm1, %v8395_v42  ;;  %6971 = vmatpush3.msra.mxu1 %v8395_v42  ;;  %v5227_v32 = vstv %s8713_s25  ;;  %v5111_v29 = vmul.f32 %v5110_v6, %v8655_v1  ;;  %v5117_v61 = vmul.f32 %v5116_v34, %v8655_v1  ;;  %v5123_v31 = vmul.f32 %v5122_v9, %v8655_v1  ;;  %s8819_s10 = sld [smem:[#allocation12 + $0x11]] }
 0xda7   : > { %6974 = vmatprep.mubr.msk.f32.mxu1 %vm1090_vm1, %v7147_v52  ;;  %6972 = vmatprep.subr.mxu1 %v8492_v0  ;;  %v5129_v35 = vmul.f32 %v5128_v33, %v8655_v1  ;;  %v5314_v5 = vstv %s8730_s1  ;;  %v5326_v6 = vstv %s8739_s7  ;;  %v5332_v34 = vstv %s8745_s20  ;;  %s8825_s15 = sld [smem:[#allocation12 + $0x23]] }
 0xda8   : > { %6977 = vmatprep.subr.mxu0 %v7143_v46  ;;  %6973 = vmatpush3.msra.mxu1 %v8492_v0  ;;  %s8836_s14 = sld [smem:[#allocation12 + $0x35]] }
 0xda9   : > { %6978 = vmatpush3.msra.mxu0 %v7143_v46  ;;  %6975 = vmatmul.mubr.msk.f32.vlgmr.msra.gmra.mxu1 %vm1090_vm1, %v7148_v20  ;;  %s6384_s25 = sld [smem:[#allocation12 + $0x47]] }
 0xdaa   : > { %6984 = vmatprep.subr.mxu1 %v7145_v44  ;;  %6979 = vmatprep.subr.mxu0 %v7144_v25 }
 0xdab   : > { %6985 = vmatpush3.msra.mxu1 %v7145_v44  ;;  %6980 = vmatpush3.msra.mxu0 %v7144_v25 }
 0xdac   : > { %6986 = vmatprep.subr.mxu1 %v7146_v2 }
 0xdad   : > { %6987 = vmatpush3.msra.mxu1 %v7146_v2 }
 0xe60   : > { %v6948_v39 = vpop.f32.mrf.mxu1  ;;  %v6955_v38 = vpop.f32.mrf.mxu0 }
 0xe61   : > { %v5088_v30 = vmul.f32 %v6948_v39, %v5086_v26  ;;  %v5094_v37 = vmul.f32 %v6948_v39, %v5092_v13  ;;  %v5100_v63 = vmul.f32 %v6948_v39, %v5098_v15  ;;  %v5106_v56 = vmul.f32 %v6948_v39, %v5104_v16 }
 0xe62   : > { %v5211_v45 = vmul.f32 %v6955_v38, %v5209_v17  ;;  %v5217_v22 = vmul.f32 %v6955_v38, %v5215_v48  ;;  %v5223_v28 = vmul.f32 %v6955_v38, %v5221_v47  ;;  %v5229_v40 = vmul.f32 %v6955_v38, %v5227_v32  ;;  %v5076_v19 = vpop.f32.mrf.mxu1  ;;  %v5199_v9 = vpop.f32.mrf.mxu0 }
 0xe63   : > { %v5090_v21 = vadd.f32 %v5088_v30, %v8647_v11  ;;  %v5096_v27 = vadd.f32 %v5094_v37, %v8649_v51  ;;  %v5102_v50 = vadd.f32 %v5100_v63, %v8651_v14  ;;  %v5108_v46 = vadd.f32 %v5106_v56, %v8653_v23 }
 0xe64   : > { %v5087_v1 = vmul.f32 %v5086_v26, %v5076_v19  ;;  %v5093_v25 = vmul.f32 %v5092_v13, %v5076_v19  ;;  %v5099_v44 = vmul.f32 %v5098_v15, %v5076_v19  ;;  %v5105_v2 = vmul.f32 %v5104_v16, %v5076_v19 }
 0xe65   : > { %v5114_v52 = vadd.f32 %v5112_v59, %v5090_v21  ;;  %v5120_v20 = vadd.f32 %v5118_v60, %v5096_v27  ;;  %v5126_v53 = vadd.f32 %v5124_v8, %v5102_v50  ;;  %v5132_v41 = vadd.f32 %v5130_v10, %v5108_v46  ;;  %v6962_v4 = vpop.f32.mrf.mxu1 }
 0xe66   : > { %v5089_v24 = vadd.f32 %v5087_v1, %v4909_v36  ;;  %v5095_v11 = vadd.f32 %v5093_v25, %v4915_v62  ;;  %v5101_v55 = vadd.f32 %v5099_v44, %v4921_v7  ;;  %v5107_v51 = vadd.f32 %v5105_v2, %v4927_v12  ;;  %v6969_v46 = vpop.f32.mrf.mxu0 }
 0xe67   : > { %v5320_v14 = vstv %s8733_s2  ;;  %v5213_v23 = vadd.f32 %v5211_v45, %v5114_v52  ;;  %v5219_v57 = vadd.f32 %v5217_v22, %v5120_v20  ;;  %v5225_v54 = vadd.f32 %v5223_v28, %v5126_v53  ;;  %v5304_v43 = vpop.f32.mrf.mxu1 }
 0xe68   : > { %v5231_v58 = vadd.f32 %v5229_v40, %v5132_v41  ;;  %v5113_v33 = vadd.f32 %v5111_v29, %v5089_v24  ;;  %v5119_v49 = vadd.f32 %v5117_v61, %v5095_v11  ;;  %v5125_v18 = vadd.f32 %v5123_v31, %v5101_v55 }
 0xe69   : > { %v5131_v3 = vadd.f32 %v5129_v35, %v5107_v51  ;;  %v5316_v59 = vmul.f32 %v6962_v4, %v5314_v5  ;;  %v5322_v36 = vmul.f32 %v6962_v4, %v5320_v14  ;;  %v5328_v60 = vmul.f32 %v6962_v4, %v5326_v6  ;;  %v8759_v62 = vpop.f32.mrf.mxu1 }
 0xe6a   : > { %v5334_v8 = vmul.f32 %v6962_v4, %v5332_v34  ;;  %v5210_v7 = vmul.f32 %v5209_v17, %v5199_v9  ;;  %v5216_v12 = vmul.f32 %v5215_v48, %v5199_v9  ;;  %v5222_v10 = vmul.f32 %v5221_v47, %v5199_v9 }
 0xe6b   : > { %v5228_v26 = vmul.f32 %v5227_v32, %v5199_v9  ;;  %v5318_v13 = vadd.f32 %v5316_v59, %v5213_v23  ;;  %v5324_v15 = vadd.f32 %v5322_v36, %v5219_v57  ;;  %v5330_v16 = vadd.f32 %v5328_v60, %v5225_v54  ;;  %v8761_v38 = vpop.f32.mrf.mxu1 }
 0xe6c   : > { %v5336_v39 = vadd.f32 %v5334_v8, %v5231_v58  ;;  %v5212_v29 = vadd.f32 %v5210_v7, %v5113_v33  ;;  %v5218_v61 = vadd.f32 %v5216_v12, %v5119_v49  ;;  %v5224_v31 = vadd.f32 %v5222_v10, %v5125_v18  ;;  %6981 = vmatprep.mubr.msk.f32.mxu0 %vm1090_vm1, %v8761_v38 }
 0xe6d   : > { %v5230_v35 = vadd.f32 %v5228_v26, %v5131_v3  ;;  %6988 = vmatprep.mubr.msk.f32.mxu1 %vm1090_vm1, %v8761_v38  ;;  %v5315_v17 = vmul.f32 %v5314_v5, %v5304_v43  ;;  %v5321_v48 = vmul.f32 %v5320_v14, %v5304_v43  ;;  %v5327_v47 = vmul.f32 %v5326_v6, %v5304_v43  ;;  %v5427_v6 = vpop.f32.mrf.mxu0 }
 0xe6e   : > { %v5333_v32 = vmul.f32 %v5332_v34, %v5304_v43  ;;  %6982 = vmatmul.mubr.msk.f32.vlgmr.msra.gmra.mxu0 %vm1090_vm1, %v8759_v62  ;;  %6989 = vmatmul.mubr.msk.f32.vlgmr.msra.gmra.mxu1 %vm1090_vm1, %v8759_v62  ;;  %v5338_v45 = vstv %s8771_s4  ;;  %v5344_v22 = vstv %s8773_s18  ;;  %v5350_v28 = vstv %s8775_s0 }
 0xe6f   : > { %v5317_v30 = vadd.f32 %v5315_v17, %v5212_v29  ;;  %v5323_v37 = vadd.f32 %v5321_v48, %v5218_v61  ;;  %v5329_v63 = vadd.f32 %v5327_v47, %v5224_v31  ;;  %v5356_v40 = vstv %s8777_s13 }
 0xe70   : > { %v5335_v56 = vadd.f32 %v5333_v32, %v5230_v35  ;;  %v5340_v19 = vmul.f32 %v5338_v45, %v8395_v42  ;;  %v5346_v21 = vmul.f32 %v5344_v22, %v8395_v42  ;;  %v5352_v27 = vmul.f32 %v5350_v28, %v8395_v42 }
 0xe71   : > { %v5358_v50 = vmul.f32 %v5356_v40, %v8395_v42  ;;  %v5437_v1 = vstv %s8779_s11  ;;  %v5443_v25 = vstv %s8781_s5  ;;  %v5449_v44 = vstv %s8783_s22  ;;  %s9024_s11 = sshll.u32 %s7636_s16, 6 }
 0xe72   : > { %v5342_v2 = vadd.f32 %v5340_v19, %v5318_v13  ;;  %v5348_v52 = vadd.f32 %v5346_v21, %v5324_v15  ;;  %v5354_v20 = vadd.f32 %v5352_v27, %v5330_v16  ;;  %v5455_v53 = vstv %s8785_s24  ;;  %s8880_s5 = scalar_lea.vmem [#allocation14], %s9024_s11  ;;  %s7381_s11 = smov [#allocation14]  }
 0xe73   : > { %v5360_v41 = vadd.f32 %v5358_v50, %v5336_v39  ;;  %v5339_v24 = vmul.f32 %v5338_v45, %v8492_v0  ;;  %v5345_v11 = vmul.f32 %v5344_v22, %v8492_v0  ;;  %v5351_v42 = vmul.f32 %v5350_v28, %v8492_v0 }
 0xe74   : > { %v5439_v55 = vmul.f32 %v6969_v46, %v5437_v1  ;;  %v5445_v51 = vmul.f32 %v6969_v46, %v5443_v25  ;;  %v5451_v4 = vmul.f32 %v6969_v46, %v5449_v44  ;;  %v5357_v5 = vmul.f32 %v5356_v40, %v8492_v0 }
 0xe75   : > { %v5457_v14 = vmul.f32 %v6969_v46, %v5455_v53  ;;  %v5641_v34 = vstv %s8787_s3  ;;  %v5647_v23 = vstv %s8789_s28  ;;  %v5653_v57 = vstv %s8791_s29 }
 0xe76   : > { %v5441_v54 = vadd.f32 %v5439_v55, %v5342_v2  ;;  %v5447_v58 = vadd.f32 %v5445_v51, %v5348_v52  ;;  %v5453_v9 = vadd.f32 %v5451_v4, %v5354_v20  ;;  %v5659_v43 = vstv %s8796_s21 }
 0xe77   : > { %v5459_v33 = vadd.f32 %v5457_v14, %v5360_v41  ;;  %v5341_v49 = vadd.f32 %v5339_v24, %v5317_v30  ;;  %v5347_v18 = vadd.f32 %v5345_v11, %v5323_v37  ;;  %v5353_v3 = vadd.f32 %v5351_v42, %v5329_v63 }
 0xe78   : > { %v5438_v0 = vmul.f32 %v5437_v1, %v5427_v6  ;;  %v5444_v59 = vmul.f32 %v5443_v25, %v5427_v6  ;;  %v5450_v36 = vmul.f32 %v5449_v44, %v5427_v6  ;;  %v5359_v60 = vadd.f32 %v5357_v5, %v5335_v56 }
 0xe79   : > { %v5617_v8 = vstv %s8799_s6  ;;  %v5623_v7 = vstv %s8801_s26  ;;  %v5629_v12 = vstv %s8806_s23  ;;  %v5635_v10 = vstv %s8812_s19 }
 0xe7a   : > { %v5456_v26 = vmul.f32 %v5455_v53, %v5427_v6  ;;  %v5642_v13 = vmul.f32 %v5641_v34, %v8761_v38  ;;  %v5643_v15 = vmul.f32 %v8759_v62, %v5641_v34  ;;  %v5648_v16 = vmul.f32 %v5647_v23, %v8761_v38 }
 0xe7b   : > { %v5440_v29 = vadd.f32 %v5438_v0, %v5341_v49  ;;  %v5446_v61 = vadd.f32 %v5444_v59, %v5347_v18  ;;  %v5452_v31 = vadd.f32 %v5450_v36, %v5353_v3  ;;  %v5649_v35 = vmul.f32 %v8759_v62, %v5647_v23 }
 0xe7c   : > { %v5458_v37 = vadd.f32 %v5456_v26, %v5359_v60  ;;  %v5740_v56 = vstv %s8819_s10  ;;  %v5654_v45 = vmul.f32 %v5653_v57, %v8761_v38  ;;  %v5655_v22 = vmul.f32 %v8759_v62, %v5653_v57 }
 0xe7d   : > { %v5746_v52 = vstv %s8825_s15  ;;  %v5661_v20 = vmul.f32 %v8759_v62, %v5659_v43 }
 0xf2e   : > { %v6983_v39 = vpop.f32.mrf.mxu0  ;;  %v6990_v17 = vpop.f32.mrf.mxu1 }
 0xf2f   : > { %v5619_v48 = vmul.f32 %v6983_v39, %v5617_v8  ;;  %v5625_v47 = vmul.f32 %v6983_v39, %v5623_v7  ;;  %v5631_v32 = vmul.f32 %v6983_v39, %v5629_v12  ;;  %v5637_v30 = vmul.f32 %v6983_v39, %v5635_v10 }
 0xf30   : > { %v5607_v63 = vpop.f32.mrf.mxu0  ;;  %v5730_v27 = vpop.f32.mrf.mxu1  ;;  %v5742_v24 = vmul.f32 %v6990_v17, %v5740_v56  ;;  %v5748_v14 = vmul.f32 %v6990_v17, %v5746_v52 }
 0xf31   : > { %v5618_v28 = vmul.f32 %v5617_v8, %v5607_v63  ;;  %v5621_v40 = vadd.f32 %v5619_v48, %v5441_v54  ;;  %v5624_v19 = vmul.f32 %v5623_v7, %v5607_v63  ;;  %v5627_v21 = vadd.f32 %v5625_v47, %v5447_v58 }
 0xf32   : > { %v5630_v50 = vmul.f32 %v5629_v12, %v5607_v63  ;;  %v5633_v46 = vadd.f32 %v5631_v32, %v5453_v9  ;;  %v5636_v1 = vmul.f32 %v5635_v10, %v5607_v63  ;;  %v5639_v25 = vadd.f32 %v5637_v30, %v5459_v33 }
 0xf33   : > { %v5620_v44 = vadd.f32 %v5618_v28, %v5440_v29  ;;  %v5626_v2 = vadd.f32 %v5624_v19, %v5446_v61  ;;  %v5741_v41 = vmul.f32 %v5740_v56, %v5730_v27  ;;  %v5747_v11 = vmul.f32 %v5746_v52, %v5730_v27 }
 0xf34   : > { %v5632_v53 = vadd.f32 %v5630_v50, %v5452_v31  ;;  %v5645_v55 = vadd.f32 %v5643_v15, %v5621_v40  ;;  %v5651_v4 = vadd.f32 %v5649_v35, %v5627_v21  ;;  %v5638_v5 = vadd.f32 %v5636_v1, %v5458_v37 }
 0xf35   : > { %v5644_v42 = vadd.f32 %v5642_v13, %v5620_v44  ;;  %v5650_v51 = vadd.f32 %v5648_v16, %v5626_v2  ;;  %v5657_v6 = vadd.f32 %v5655_v22, %v5633_v46  ;;  %v5663_v34 = vadd.f32 %v5661_v20, %v5639_v25 }
 0xf36   : > { %v5744_v57 = vadd.f32 %v5742_v24, %v5645_v55  ;;  %v5656_v62 = vadd.f32 %v5654_v45, %v5632_v53  ;;  %v5752_v58 = vstv %s8836_s14  ;;  %v5660_v9 = vmul.f32 %v5659_v43, %v8761_v38 }
 0xf37   : > { %v5743_v23 = vadd.f32 %v5741_v41, %v5644_v42  ;;  %v8844_v54 = vadd.f32 %v5747_v11, %v5650_v51  ;;  %v5753_v33 = vmul.f32 %v5752_v58, %v5730_v27  ;;  %v8852_v3 = vadd.f32 %v5748_v14, %v5651_v4 }
 0xf38   : > { %v5764_v18 = vsel %vm1090_vm1, %v5744_v57, 0.0  ;;  %v5754_v59 = vmul.f32 %v6990_v17, %v5752_v58  ;;  %v5662_v8 = vadd.f32 %v5660_v9, %v5638_v5  ;;  %v5758_v7 = vstv %s6384_s25 }
 0xf39   : > { %v5763_v49 = vsel %vm1090_vm1, %v5743_v23, 0.0  ;;  %v5807_v36 = vsel %vm1090_vm1, %v8844_v54, 0.0  ;;  %v8856_v60 = vadd.f32 %v5753_v33, %v5656_v62  ;;  %v5759_v12 = vmul.f32 %v5758_v7, %v5730_v27 }
 0xf3a   : > { %v5765_v0 = vadd.f32 %v5764_v18, %v5763_v49  ;;  %v5808_v38 = vsel %vm1090_vm1, %v8852_v3, 0.0  ;;  %v8860_v43 = vadd.f32 %v5754_v59, %v5657_v6  ;;  %v5760_v26 = vmul.f32 %v6990_v17, %v5758_v7 }
 0xf3b   : > { %v5809_v10 = vadd.f32 %v5808_v38, %v5807_v36  ;;  %v5851_v13 = vsel %vm1090_vm1, %v8856_v60, 0.0  ;;  %v8864_v15 = vadd.f32 %v5759_v12, %v5662_v8 }
 0xf3c   : > { %5766 = vadd.xlane.f32.xlu0 %v5765_v0  ;;  %v5852_v16 = vsel %vm1090_vm1, %v8860_v43, 0.0  ;;  %v8868_v39 = vadd.f32 %v5760_v26, %v5663_v34 }
 0xf3d   : > { %v5853_v29 = vadd.f32 %v5852_v16, %v5851_v13  ;;  %v5895_v61 = vsel %vm1090_vm1, %v8864_v15, 0.0 }
 0xf3e   : > { %v5896_v31 = vsel %vm1090_vm1, %v8868_v39, 0.0 }
 0xf3f   : > { %v5897_v35 = vadd.f32 %v5896_v31, %v5895_v61 }
 0xf40   : > { %5810 = vadd.xlane.f32.xlu0 %v5809_v10 }
 0xf44   : > { %5854 = vadd.xlane.f32.xlu0 %v5853_v29 }
 0xf48   : > { %5898 = vadd.xlane.f32.xlu0 %v5897_v35 }
 0xfc5   : > { %v5767_v17 = vpop.xlane.xlu0 %5766 }
 0xfc6   : > { %v5768_v48 = vrot.slane %v5767_v17, 4 }
 0xfc8   : > { %v5769_v47 = vadd.f32 %v5768_v48, %v5767_v17 }
 0xfc9   : > { %v5811_v20 = vpop.xlane.xlu0 %5810 }
 0xfca   : > { %v5770_v32 = vrot.slane %v5769_v47, 2  ;;  %v5812_v53 = vrot.slane %v5811_v20, 4 }
 0xfcc   : > { %v5771_v30 = vadd.f32 %v5770_v32, %v5769_v47  ;;  %v5813_v41 = vadd.f32 %v5812_v53, %v5811_v20 }
 0xfcd   : > { %v5855_v38 = vpop.xlane.xlu0 %5854 }
 0xfce   : > { %v5772_v37 = vrot.slane %v5771_v30, 1  ;;  %v5814_v11 = vrot.slane %v5813_v41, 2  ;;  %v5856_v10 = vrot.slane %v5855_v38, 4 }
 0xfd0   : > { %v5773_v63 = vadd.f32 %v5772_v37, %v5771_v30  ;;  %v5815_v42 = vadd.f32 %v5814_v11, %v5813_v41  ;;  %v5857_v26 = vadd.f32 %v5856_v10, %v5855_v38 }
 0xfd2   : > { %7003 = vpush %v5773_v63  ;;  %v5816_v55 = vrot.slane %v5815_v42, 1  ;;  %v5858_v16 = vrot.slane %v5857_v26, 2 }
 0xfd4   : > { %v5817_v4 = vadd.f32 %v5816_v55, %v5815_v42  ;;  %v5859_v29 = vadd.f32 %v5858_v16, %v5857_v26 }
 0xfd6   : > { %v5860_v61 = vrot.slane %v5859_v29, 1 }
 0xfd8   : > { %v5861_v35 = vadd.f32 %v5860_v61, %v5859_v29 }
0x1003   : > { %s7004_s1 = spop %7003 }
0x1004   : > { %s5777_s2 = smul.f32 0.00390625, %s7004_s1 }
0x1006   : > { %v5778_v56 = vstv %s5777_s2  ;;  %s6398_s2 = sshll.u32 %s7450_s9, 10  ;;  %s5951_s9 = scalar_lea.sflag [#allocation4], %s7636_s16 }
0x1007   : > { %v5779_v45 = vsub.f32 %v5743_v23, %v5778_v56  ;;  %v5780_v22 = vsub.f32 %v5744_v57, %v5778_v56 }
0x1009   : > { %v5781_v28 = vmul.f32 %v5779_v45, %v5779_v45  ;;  %v5782_v40 = vmul.f32 %v5780_v22, %v5780_v22 }
0x100b   : > { %v5783_v19 = vsel %vm1090_vm1, %v5781_v28, 0.0  ;;  %v5784_v21 = vsel %vm1090_vm1, %v5782_v40, 0.0 }
0x100c   : > { %v5785_v27 = vadd.f32 %v5784_v21, %v5783_v19 }
0x100e   : > { %5786 = vadd.xlane.f32.xlu1 %v5785_v27 }
0x1097   : > { %v5787_v50 = vpop.xlane.xlu1 %5786 }
0x1098   : > { %v5788_v46 = vrot.slane %v5787_v50, 4 }
0x109a   : > { %v5789_v1 = vadd.f32 %v5788_v46, %v5787_v50 }
0x109c   : > { %v5790_v25 = vrot.slane %v5789_v1, 2 }
0x109e   : > { %v5791_v44 = vadd.f32 %v5790_v25, %v5789_v1 }
0x10a0   : > { %v5792_v2 = vrot.slane %v5791_v44, 1 }
0x10a2   : > { %v5793_v52 = vadd.f32 %v5792_v2, %v5791_v44 }
0x10a4   : > { %7005 = vpush %v5793_v52 }
0x10d5   : > { %s7006_s7 = spop %7005 }
0x10d6   : > { %s5797_s20 = smul.f32 0.00390625, %s7006_s7 }
0x10d8   : > { %s5798_s4 = sadd.f32 1e-05, %s5797_s20  ;;  %s5964_s20 = sshll.u32 %s8880_s5, 4  ;;  %s8911_s20 = int_to_ptr.vmem [resolvable:$true] %s5964_s20 }
0x10da   : > { %v5799_v24 = vstv %s5798_s4 }
0x10db   : > { %7127 = vrsqrt.f32 %v5799_v24 }
0x10e8   : > { %v7128_v51 = vpop.eup %7127 }
0x10e9   : > { %7007 = vpush %v7128_v51 }
0x10ea   : > { %7009 = vpush %v5817_v4 }
0x111a   : > { %s7008_s18 = spop %7007 }
0x111b   : > { %v5802_v5 = vstv %s7008_s18  ;;  %s7010_s0 = spop %7009 }
0x111c   : > { %v5803_v14 = vmul.f32 %v5802_v5, %v5779_v45  ;;  %v5804_v6 = vmul.f32 %v5802_v5, %v5780_v22  ;;  %s5821_s13 = smul.f32 0.00390625, %s7010_s0  ;;  %s8909_s0 = scalar_lea.hbm %s8966_s8, %s6398_s2 }
0x111e   : > { %v5805_v34 = vmax.f32 %v5803_v14, 0.0  ;;  %v5806_v23 = vmax.f32 %v5804_v6, 0.0  ;;  %v5822_v57 = vstv %s5821_s13  ;;  %s7287_s13 = scalar_lea.vmem %s8911_s20, 1024 }
0x111f   : > { %v5823_v62 = vsub.f32 %v8844_v54, %v5822_v57  ;;  %v5824_v58 = vsub.f32 %v8852_v3, %v5822_v57  ;;  %p7288_p9 = scmp.ne.s32.totalorder %s8911_s20, %s7287_s13 }
0x1120   : > { %5939 = vst.msk [vmem:[%s8880_s5] sm:$0xff] %vm1090_vm1, %v5805_v34  ;;  %5940 = vst.msk [vmem:[%s8880_s5 + $0x8] sm:$0xff] %vm1090_vm1, %v5806_v23 }
0x1121   : > { %v5825_v9 = vmul.f32 %v5823_v62, %v5823_v62  ;;  %v5826_v33 = vmul.f32 %v5824_v58, %v5824_v58  ;;  %p7289_p0 = pnand %p7288_p9, %p7543_p12 }
0x1123   : > { %v5827_v49 = vsel %vm1090_vm1, %v5825_v9, 0.0  ;;  %v5828_v18 = vsel %vm1090_vm1, %v5826_v33, 0.0  ;;  %p7290_p2 = pneg %p7289_p0 }
0x1124   : > { %v5829_v0 = vadd.f32 %v5828_v18, %v5827_v49 }
0x1126   : > { %5830 = vadd.xlane.f32.xlu1 %v5829_v0 }
0x11af   : > { %v5831_v54 = vpop.xlane.xlu1 %5830 }
0x11b0   : > { %v5832_v59 = vrot.slane %v5831_v54, 4 }
0x11b2   : > { %v5833_v3 = vadd.f32 %v5832_v59, %v5831_v54 }
0x11b4   : > { %v5834_v36 = vrot.slane %v5833_v3, 2 }
0x11b6   : > { %v5835_v8 = vadd.f32 %v5834_v36, %v5833_v3 }
0x11b8   : > { %v5836_v7 = vrot.slane %v5835_v8, 1 }
0x11ba   : > { %v5837_v12 = vadd.f32 %v5836_v7, %v5835_v8 }
0x11bc   : > { %7011 = vpush %v5837_v12 }
0x11ed   : > { %s7012_s22 = spop %7011 }
0x11ee   : > { %s5841_s24 = smul.f32 0.00390625, %s7012_s22  ;;  %s7291_s22 = sshll.u32 %s7381_s11, 4  ;;  %s7292_s22 = int_to_ptr.vmem [resolvable:$false] %s7291_s22 }
0x11ef   : > { %p7294_p10 = scmp.lt.s32.totalorder %s8911_s20, %s7292_s22 }
0x11f0   : > { %s5842_s3 = sadd.f32 1e-05, %s5841_s24  ;;  %s7293_s24 = scalar_lea.vmem %s7292_s22, 2048 }
0x11f1   : > { %p7295_p1 = scmp.lt.s32.totalorder %s7293_s24, %s7287_s13 }
0x11f2   : > { %v5843_v13 = vstv %s5842_s3 }
0x11f3   : > { %7129 = vrsqrt.f32 %v5843_v13  ;;  %p7296_p11 = por %p7295_p1, %p7294_p10 }
0x11f5   : > { %p7297_p4 = pnand %p7296_p11, %p7290_p2 }
0x1200   : > { %v7130_v31 = vpop.eup %7129 }
0x1201   : > { %7013 = vpush %v7130_v31 }
0x1202   : > { %7015 = vpush %v5861_v35 }
0x1232   : > { %s7014_s28 = spop %7013 }
0x1233   : > { %v5846_v17 = vstv %s7014_s28  ;;  %s7016_s29 = spop %7015 }
0x1234   : > { %v5847_v48 = vmul.f32 %v5846_v17, %v5823_v62  ;;  %v5848_v47 = vmul.f32 %v5846_v17, %v5824_v58  ;;  %s5865_s21 = smul.f32 0.00390625, %s7016_s29 }
0x1236   : > { %v5849_v32 = vmax.f32 %v5847_v48, 0.0  ;;  %v5850_v30 = vmax.f32 %v5848_v47, 0.0  ;;  %v5866_v37 = vstv %s5865_s21 }
0x1237   : > { %v5867_v63 = vsub.f32 %v8856_v60, %v5866_v37  ;;  %v5868_v56 = vsub.f32 %v8860_v43, %v5866_v37  ;;  %v5899_v43 = vpop.xlane.xlu0 %5898 }
0x1238   : > { %6385 = vst.msk [vmem:[%s8880_s5 + $0x10] sm:$0xff] %vm1090_vm1, %v5849_v32  ;;  %6386 = vst.msk [vmem:[%s8880_s5 + $0x18] sm:$0xff] %vm1090_vm1, %v5850_v30  ;;  %v5900_v44 = vrot.slane %v5899_v43, 4 }
0x1239   : > { %v5869_v45 = vmul.f32 %v5867_v63, %v5867_v63  ;;  %v5870_v22 = vmul.f32 %v5868_v56, %v5868_v56 }
0x123a   : > { %v5901_v2 = vadd.f32 %v5900_v44, %v5899_v43 }
0x123b   : > { %v5871_v28 = vsel %vm1090_vm1, %v5869_v45, 0.0  ;;  %v5872_v40 = vsel %vm1090_vm1, %v5870_v22, 0.0 }
0x123c   : > { %v5873_v19 = vadd.f32 %v5872_v40, %v5871_v28  ;;  %v5902_v20 = vrot.slane %v5901_v2, 2 }
0x123e   : > { %5874 = vadd.xlane.f32.xlu1 %v5873_v19  ;;  %v5903_v53 = vadd.f32 %v5902_v20, %v5901_v2 }
0x1240   : > { %v5904_v41 = vrot.slane %v5903_v53, 1 }
0x1242   : > { %v5905_v11 = vadd.f32 %v5904_v41, %v5903_v53 }
0x12c7   : > { %v5875_v21 = vpop.xlane.xlu1 %5874 }
0x12c8   : > { %v5876_v27 = vrot.slane %v5875_v21, 4 }
0x12ca   : > { %v5877_v50 = vadd.f32 %v5876_v27, %v5875_v21 }
0x12cc   : > { %v5878_v46 = vrot.slane %v5877_v50, 2 }
0x12ce   : > { %v5879_v1 = vadd.f32 %v5878_v46, %v5877_v50 }
0x12d0   : > { %v5880_v60 = vrot.slane %v5879_v1, 1 }
0x12d2   : > { %v5881_v25 = vadd.f32 %v5880_v60, %v5879_v1 }
0x12d4   : > { %7017 = vpush %v5881_v25 }
0x1305   : > { %s7018_s6 = spop %7017 }
0x1306   : > { %s5885_s26 = smul.f32 0.00390625, %s7018_s6 }
0x1308   : > { %s5886_s23 = sadd.f32 1e-05, %s5885_s26 }
0x130a   : > { %v5887_v52 = vstv %s5886_s23 }
0x130b   : > { %7131 = vrsqrt.f32 %v5887_v52 }
0x1318   : > { %v7132_v24 = vpop.eup %7131 }
0x1319   : > { %7019 = vpush %v7132_v24 }
0x131a   : > { %7021 = vpush %v5905_v11 }
0x134a   : > { %s7020_s19 = spop %7019 }
0x134b   : > { %v5890_v42 = vstv %s7020_s19  ;;  %s7022_s10 = spop %7021 }
0x134c   : > { %v5891_v55 = vmul.f32 %v5890_v42, %v5867_v63  ;;  %v5892_v51 = vmul.f32 %v5890_v42, %v5868_v56  ;;  %s5909_s15 = smul.f32 0.00390625, %s7022_s10 }
0x134e   : > { %v5893_v4 = vmax.f32 %v5891_v55, 0.0  ;;  %v5894_v5 = vmax.f32 %v5892_v51, 0.0  ;;  %v5910_v14 = vstv %s5909_s15 }
0x134f   : > { %v5911_v6 = vsub.f32 %v8864_v15, %v5910_v14  ;;  %v5912_v34 = vsub.f32 %v8868_v39, %v5910_v14 }
0x1350   : > { %6387 = vst.msk [vmem:[%s8880_s5 + $0x20] sm:$0xff] %vm1090_vm1, %v5893_v4  ;;  %6388 = vst.msk [vmem:[%s8880_s5 + $0x28] sm:$0xff] %vm1090_vm1, %v5894_v5 }
0x1351   : > { %v5913_v23 = vmul.f32 %v5911_v6, %v5911_v6  ;;  %v5914_v57 = vmul.f32 %v5912_v34, %v5912_v34 }
0x1353   : > { %v5915_v62 = vsel %vm1090_vm1, %v5913_v23, 0.0  ;;  %v5916_v58 = vsel %vm1090_vm1, %v5914_v57, 0.0 }
0x1354   : > { %v5917_v9 = vadd.f32 %v5916_v58, %v5915_v62 }
0x1356   : > { %5918 = vadd.xlane.f32.xlu1 %v5917_v9 }
0x13df   : > { %v5919_v33 = vpop.xlane.xlu1 %5918 }
0x13e0   : > { %v5920_v49 = vrot.slane %v5919_v33, 4 }
0x13e2   : > { %v5921_v18 = vadd.f32 %v5920_v49, %v5919_v33 }
0x13e4   : > { %v5922_v15 = vrot.slane %v5921_v18, 2 }
0x13e6   : > { %v5923_v0 = vadd.f32 %v5922_v15, %v5921_v18 }
0x13e8   : > { %v5924_v39 = vrot.slane %v5923_v0, 1 }
0x13ea   : > { %v5925_v54 = vadd.f32 %v5924_v39, %v5923_v0 }
0x13ec   : > { %7023 = vpush %v5925_v54 }
0x141d   : > { %s7024_s14 = spop %7023 }
0x141e   : > { %s5929_s25 = smul.f32 0.00390625, %s7024_s14 }
0x1420   : > { %s5930_s1 = sadd.f32 1e-05, %s5929_s25 }
0x1422   : > { %v5931_v59 = vstv %s5930_s1 }
0x1423   : > { %7133 = vrsqrt.f32 %v5931_v59 }
0x1430   : > { %v7134_v3 = vpop.eup %7133 }
0x1431   : > { %7025 = vpush %v7134_v3 }
0x1462   : > { %s7026_s7 = spop %7025 }
0x1463   : > { %v5934_v36 = vstv %s7026_s7 }
0x1464   : > { %v5935_v8 = vmul.f32 %v5934_v36, %v5911_v6  ;;  %v5936_v7 = vmul.f32 %v5934_v36, %v5912_v34 }
0x1466   : > { %v5937_v12 = vmax.f32 %v5935_v8, 0.0  ;;  %v5938_v38 = vmax.f32 %v5936_v7, 0.0 }
0x1468   : > { %6389 = vst.msk [vmem:[%s8880_s5 + $0x30] sm:$0xff] %vm1090_vm1, %v5937_v12  ;;  %6390 = vst.msk [vmem:[%s8880_s5 + $0x38] sm:$0xff] %vm1090_vm1, %v5938_v38 }
0x1469   : > { %7300 = shalt.err (!%p7297_p4)
}
0x146a   : > { %s7301_s5 = scalar_lea.hbm %s8909_s0, 1024  ;;  %s7305_s29 = scalar_lea.hbm %s8966_s8, 2048 }
0x146b   : > { %p7302_p6 = scmp.ne.s32.totalorder %s8909_s0, %s7301_s5  ;;  %p7306_p3 = scmp.lt.s32.totalorder %s8909_s0, %s8966_s8 }
0x146c   : > { %p7307_p7 = scmp.lt.s32.totalorder %s7305_s29, %s7301_s5 }
0x146d   : > { %p7303_p8 = pnand %p7302_p6, %p7543_p12 }
0x146e   : > { %p7308_p13 = por %p7307_p7, %p7306_p3 }
0x146f   : > { %p7304_p5 = pneg %p7303_p8 }
0x1471   : > { %p7309_p9 = pnand %p7308_p13, %p7304_p5 }
0x1473   : > { %7312 = shalt.err (!%p7309_p9)
}
0x1474   : > { %s7382_s26 = smov 128   ;;  %s7383_s23 = smov 8  }
0x1475   : > { %7047 = dma.vmem_to_hbm [thread:$0]  (%p7543_p12), %s8911_s20, 1024, %s8909_s0, %s5951_s9, %s7382_s26, %s7382_s26, %s7383_s23  }
0x1476 PF: > { %s5979_s19 = sand.u32 1, %s7359_s27   ;;  %p9025_p0 = scmp.ne.s32.totalorder %s8992_s12, 0 }
0x1477   : > { %p9026_p2 = scmp.ge.s32.totalorder %s7371_s30, 2  ;;  %s5980_s10 = scalar_lea.sflag [#allocation4], %s5979_s19 }
0x1479   : > { %p7070_p10 = pnand %p9026_p2, %p9025_p0 }
0x147b   : > { %p7071_p1 = pneg %p7070_p10 }
0x147d   : > { %7354 = dma.done.wait (%p7071_p1), %s5980_s10, 1024  }
0x147e   : > { %7356 = vsyncadd (%p7071_p1), %s5980_s10, 4294966272  ;;  %s9027_s30 = sld [smem:[#allocation24_spill]] }
0x147f   : > { %s9028_s27 = sld [smem:[#allocation22_spill]] }
0x1480   : > { %s9029_s28 = sld [smem:[#allocation23_spill]] }
0x1481   : > { %s9030_s29 = sld [smem:[#allocation25_spill]] }
0x1484   : > { %p27_p11 = scmp.ge.s32.totalorder %s9027_s30, 4  }
0x1486   :  { %29 = sbr.rel (!%p27_p11) target bundleno = 19 (0x13), region = 138 }
0x148b   :  { %5985 = vsyncpa [#allocation3], 1 }
0x148c   :  { %5987 = vsyncpa [#allocation3 + $0x1], 1 }
0x148d   :  { %5988 = vsyncpa [#allocation7], 1 }
0x148e   :  { %5990 = vsyncpa [#allocation7 + $0x1], 1 }
0x148f   :  { %5991 = vsyncpa [#allocation10], 1 }
0x1490   :  { %5992 = vsyncpa [#allocation4], 1 }
0x1491   :  { %5994 = vsyncpa [#allocation4 + $0x1], 1 }
0x1492   :  { %5995 = vsyncpa [#allocation5], 1 }
0x1493   :  { %5997 = vsyncpa [#allocation5 + $0x1], 1 }
0x1494   :  { %5998 = vsyncpa [#allocation13], 1 }

</bundles_post_ra>
